<compile_context>
chip_gen: v5e
topology: v5e:2x2
jax: 0.10.0
libtpu: 0.0.40
codegen_flags: <defaults>
</compile_context>

<pallas_src>
import functools

import jax
import jax.numpy as jnp
from jax.experimental import pallas as pl
from jax.experimental.pallas import tpu as pltpu

LN_EPS = 1e-5


def _layernorm(x, gamma, beta):
    # Two-pass variance: E[(x - mu)^2] (no catastrophic cancellation).
    mu = jnp.mean(x, axis=-1, keepdims=True)
    d = x - mu
    var = jnp.mean(d * d, axis=-1, keepdims=True)
    return d * jax.lax.rsqrt(var + LN_EPS) * gamma + beta


def _gelu_tanh(x):
    c = 0.7978845608028654  # sqrt(2/pi)
    return 0.5 * x * (1.0 + jnp.tanh(c * (x + 0.044715 * x * x * x)))


def process_l_kernel(num_heads,
                     rz1_ref, rz2_ref,            # scalar-prefetch (SMEM)
                     latent_ref,
                     ln1_g_ref, ln1_b_ref,
                     wqkv_ref, bqkv_ref,
                     wo_ref, bo_ref,
                     ln2_g_ref, ln2_b_ref,
                     w1_ref, b1_ref,
                     w2_ref, b2_ref,
                     out_ref,
                     x_acc):
    l = pl.program_id(0)

    B, N, D = latent_ref.shape
    M = B * N
    H = num_heads
    Dh = D // H
    Hd = w2_ref.shape[1]
    scale = 1.0 / (Dh ** 0.5)

    # First layer: seed the resident f32 accumulator (flattened rows).
    @pl.when(l == 0)
    def _():
        x_acc[...] = latent_ref[...].astype(jnp.float32).reshape(M, D)

    x = x_acc[...]                                    # (M, D) f32
    rz1 = rz1_ref[l]
    rz2 = rz2_ref[l]

    # ---------- pre-norm multi-head self-attention ----------
    xn = _layernorm(x, ln1_g_ref[0, 0], ln1_b_ref[0, 0])
    # One fused (M, D) x (D, 3D) MXU matmul; cast to bf16 exactly once.
    qkv = (jnp.dot(xn.astype(jnp.bfloat16), wqkv_ref[0],
                   preferred_element_type=jnp.float32)
           + bqkv_ref[0, 0]).astype(jnp.bfloat16)     # (M, 3D) bf16
    qkv = qkv.reshape(B, N, 3 * D)

    # Per-head attention (scores genuinely need the batch/head structure);
    # head outputs are concatenated once and projected with a single full-D
    # contraction matmul against the original wo.
    heads = []
    for h in range(H):
        qh = qkv[:, :, h * Dh:(h + 1) * Dh]
        kh = qkv[:, :, D + h * Dh:D + (h + 1) * Dh]
        vh = qkv[:, :, 2 * D + h * Dh:2 * D + (h + 1) * Dh]
        s = jnp.einsum('bqd,bkd->bqk', qh, kh,
                       preferred_element_type=jnp.float32) * scale
        s = s - jnp.max(s, axis=-1, keepdims=True)
        p = jnp.exp(s)
        p = p * pl.reciprocal(jnp.sum(p, axis=-1, keepdims=True), approx=True)
        oh = jnp.einsum('bqk,bkd->bqd', p.astype(jnp.bfloat16), vh,
                        preferred_element_type=jnp.float32)
        heads.append(oh.astype(jnp.bfloat16))
    o = jnp.concatenate(heads, axis=-1).reshape(M, D)          # (M, D) bf16
    attn = jnp.dot(o, wo_ref[0],
                   preferred_element_type=jnp.float32) + bo_ref[0, 0]

    x = x + rz1 * attn

    # ---------- pre-norm GEGLU MLP ----------
    xn2 = _layernorm(x, ln2_g_ref[0, 0], ln2_b_ref[0, 0]).astype(jnp.bfloat16)
    hproj = jnp.dot(xn2, w1_ref[0],
                    preferred_element_type=jnp.float32) + b1_ref[0, 0]
    a = hproj[:, :Hd]          # value half   (lane-aligned split for Hd%128==0)
    g = hproj[:, Hd:]          # gate half
    # TODO(synk): verify value/gate chunk order against the exact PyTorch
    # GEGLU convention used in the repo (here: x * gelu(gate)).
    hidden = (a * _gelu_tanh(g)).astype(jnp.bfloat16)
    mlp = jnp.dot(hidden, w2_ref[0],
                  preferred_element_type=jnp.float32) + b2_ref[0, 0]

    x = x + rz2 * mlp
    x_acc[...] = x

    # Cast to the output dtype only once, at the last layer.
    @pl.when(l == pl.num_programs(0) - 1)
    def _():
        out_ref[...] = x.reshape(B, N, D).astype(out_ref.dtype)


def process_l_pallas(latent, params, num_heads):
    B, N, D = latent.shape
    L = params['rz1'].shape[0]
    Hd = params['w2'].shape[1]

    def bf16(a):
        return a.astype(jnp.bfloat16)

    # Wrapper-side weight plumbing (pure layout work, no extra compute):
    wqkv = bf16(jnp.concatenate(
        [params['wq'], params['wk'], params['wv']], axis=-1))       # (L,D,3D)
    bqkv = jnp.concatenate(
        [params['bq'], params['bk'], params['bv']], axis=-1)        # (L,1,3D)
    wo = bf16(params['wo'])                                         # (L,D,D)
    w1 = bf16(params['w1'])                                         # (L,D,2Hd)
    w2 = bf16(params['w2'])                                         # (L,Hd,D)

    def lspec(shape):
        n_trail = len(shape) - 1
        return pl.BlockSpec(shape, lambda l, *_: (l,) + (0,) * n_trail)

    lat_spec = pl.BlockSpec((B, N, D), lambda l, *_: (0, 0, 0))

    grid_spec = pltpu.PrefetchScalarGridSpec(
        num_scalar_prefetch=2,           # rezero_1, rezero_2 -> SMEM
        grid=(L,),                       # one grid step per layer, nb=1
        in_specs=[
            lat_spec,                    # latent (read only at layer 0)
            lspec((1, 1, D)),            # ln1 gamma
            lspec((1, 1, D)),            # ln1 beta
            lspec((1, D, 3 * D)),        # fused wqkv (bf16)
            lspec((1, 1, 3 * D)),        # fused bqkv (f32)
            lspec((1, D, D)),            # wo (bf16)
            lspec((1, 1, D)),            # bo
            lspec((1, 1, D)),            # ln2 gamma
            lspec((1, 1, D)),            # ln2 beta
            lspec((1, D, 2 * Hd)),       # fused geglu in-proj weight (bf16)
            lspec((1, 1, 2 * Hd)),       # fused geglu in-proj bias
            lspec((1, Hd, D)),           # geglu out weight (bf16)
            lspec((1, 1, D)),            # geglu out bias
        ],
        out_specs=pl.BlockSpec((B, N, D), lambda l, *_: (0, 0, 0)),
        scratch_shapes=[pltpu.VMEM((B * N, D), jnp.float32)],   # f32 residual
    )

    kernel = functools.partial(process_l_kernel, num_heads)
    return pl.pallas_call(
        kernel,
        out_shape=jax.ShapeDtypeStruct((B, N, D), latent.dtype),
        grid_spec=grid_spec,
        compiler_params=pltpu.CompilerParams(
            dimension_semantics=("arbitrary",),
            vmem_limit_bytes=48 * 1024 * 1024),
    )(params['rz1'], params['rz2'], latent,
      params['ln1_g'], params['ln1_b'],
      wqkv, bqkv, wo, params['bo'],
      params['ln2_g'], params['ln2_b'],
      w1, params['b1'], w2, params['b2'])


def process_l_ref(latent, params, num_heads):
    """Pure-JAX reference mirroring the kernel math (bf16 MXU, f32 elsewhere)."""
    L = params['rz1'].shape[0]
    B, N, D = latent.shape
    H = num_heads
    Dh = D // H
    bf = jnp.bfloat16
    f32 = jnp.float32
    x = latent.astype(f32)
    for l in range(L):
        xn = _layernorm(x, params['ln1_g'][l, 0], params['ln1_b'][l, 0]).astype(bf)
        q = jnp.einsum('bnd,de->bne', xn, params['wq'][l].astype(bf),
                       preferred_element_type=f32) + params['bq'][l, 0]
        k = jnp.einsum('bnd,de->bne', xn, params['wk'][l].astype(bf),
                       preferred_element_type=f32) + params['bk'][l, 0]
        v = jnp.einsum('bnd,de->bne', xn, params['wv'][l].astype(bf),
                       preferred_element_type=f32) + params['bv'][l, 0]
        q = q.reshape(B, N, H, Dh).astype(bf)
        k = k.reshape(B, N, H, Dh).astype(bf)
        v = v.reshape(B, N, H, Dh).astype(bf)
        s = jnp.einsum('bqhd,bkhd->bhqk', q, k,
                       preferred_element_type=f32) / (Dh ** 0.5)
        p = jax.nn.softmax(s, axis=-1)
        o = jnp.einsum('bhqk,bkhd->bqhd', p.astype(bf), v,
                       preferred_element_type=f32).reshape(B, N, D)
        attn = jnp.einsum('bnd,de->bne', o.astype(bf), params['wo'][l].astype(bf),
                          preferred_element_type=f32) + params['bo'][l, 0]
        x = x + params['rz1'][l] * attn

        xn2 = _layernorm(x, params['ln2_g'][l, 0], params['ln2_b'][l, 0]).astype(bf)
        h = jnp.einsum('bnd,dh->bnh', xn2, params['w1'][l].astype(bf),
                       preferred_element_type=f32) + params['b1'][l, 0]
        hid = h.shape[-1] // 2
        hidden = (h[..., :hid] * _gelu_tanh(h[..., hid:])).astype(bf)
        mlp = jnp.einsum('bnh,hd->bnd', hidden, params['w2'][l].astype(bf),
                         preferred_element_type=f32) + params['b2'][l, 0]
        x = x + params['rz2'][l] * mlp
    return x.astype(latent.dtype)


def init_params(key, num_layers, dim, hidden_dim):
    L, D, Hd = num_layers, dim, hidden_dim
    keys = jax.random.split(key, 14)

    def w(k, shape, scale=0.02):
        return (scale * jax.random.normal(k, shape)).astype(jnp.float32)

    return dict(
        ln1_g=jnp.ones((L, 1, D), jnp.float32),
        ln1_b=jnp.zeros((L, 1, D), jnp.float32),
        ln2_g=jnp.ones((L, 1, D), jnp.float32),
        ln2_b=jnp.zeros((L, 1, D), jnp.float32),
        wq=w(keys[0], (L, D, D)), bq=w(keys[1], (L, 1, D)),
        wk=w(keys[2], (L, D, D)), bk=w(keys[3], (L, 1, D)),
        wv=w(keys[4], (L, D, D)), bv=w(keys[5], (L, 1, D)),
        wo=w(keys[6], (L, D, D)), bo=w(keys[7], (L, 1, D)),
        w1=w(keys[8], (L, D, 2 * Hd)), b1=w(keys[9], (L, 1, 2 * Hd)),
        w2=w(keys[10], (L, Hd, D)), b2=w(keys[11], (L, 1, D)),
        rz1=w(keys[12], (L,), scale=0.5),   # PyTorch inits these to zero
        rz2=w(keys[13], (L,), scale=0.5),
    )


if __name__ == "__main__":
    B, N, D = 2, 16, 128        # batch, num latents, dim (lane-aligned D)
    num_heads = 4
    hidden_dim = 256
    num_layers = 2

    key = jax.random.PRNGKey(0)
    k_lat, k_par = jax.random.split(key)
    latent = jax.random.normal(k_lat, (B, N, D), dtype=jnp.float32)
    params = init_params(k_par, num_layers, D, hidden_dim)

    out = process_l_pallas(latent, params, num_heads)
    out = jax.block_until_ready(out)

    ref = process_l_ref(latent, params, num_heads)
    assert out.shape == (B, N, D)
    assert jnp.allclose(out, ref, rtol=2e-3, atol=2e-3), (
        float(jnp.max(jnp.abs(out - ref))))

    print("KERNEL_OK")
</pallas_src>

<mosaic_0001>
module attributes {stable_mosaic.version = 11 : i64} {
  func.func @process_l_kernel(%arg0: i32, %arg1: memref<2xf32, #tpu.memory_space<smem>>, %arg2: memref<2xf32, #tpu.memory_space<smem>>, %arg3: memref<2x16x128xf32, #tpu.memory_space<vmem>>, %arg4: memref<1x1x128xf32, #tpu.memory_space<vmem>>, %arg5: memref<1x1x128xf32, #tpu.memory_space<vmem>>, %arg6: memref<1x128x384xbf16, #tpu.memory_space<vmem>>, %arg7: memref<1x1x384xf32, #tpu.memory_space<vmem>>, %arg8: memref<1x128x128xbf16, #tpu.memory_space<vmem>>, %arg9: memref<1x1x128xf32, #tpu.memory_space<vmem>>, %arg10: memref<1x1x128xf32, #tpu.memory_space<vmem>>, %arg11: memref<1x1x128xf32, #tpu.memory_space<vmem>>, %arg12: memref<1x128x512xbf16, #tpu.memory_space<vmem>>, %arg13: memref<1x1x512xf32, #tpu.memory_space<vmem>>, %arg14: memref<1x256x128xbf16, #tpu.memory_space<vmem>>, %arg15: memref<1x1x128xf32, #tpu.memory_space<vmem>>, %arg16: memref<2x16x128xf32, #tpu.memory_space<vmem>>, %arg17: memref<32x128xf32, #tpu.memory_space<vmem>>) attributes {dimension_semantics = [#tpu.dimension_semantics<arbitrary>], iteration_bounds = array<i64: 2>, scalar_prefetch = 2 : i64, scratch_operands = 1 : i64, tpu.core_type = #tpu.core_type<tc>, window_params = [{pipeline_mode = #tpu.pipeline_mode<synchronous>, transform_indices = @transform_0, window_bounds = array<i64: 2, 16, 128>}, {transform_indices = @transform_1, window_bounds = array<i64: 1, 1, 128>}, {transform_indices = @transform_2, window_bounds = array<i64: 1, 1, 128>}, {transform_indices = @transform_3, window_bounds = array<i64: 1, 128, 384>}, {transform_indices = @transform_4, window_bounds = array<i64: 1, 1, 384>}, {transform_indices = @transform_5, window_bounds = array<i64: 1, 128, 128>}, {transform_indices = @transform_6, window_bounds = array<i64: 1, 1, 128>}, {transform_indices = @transform_7, window_bounds = array<i64: 1, 1, 128>}, {transform_indices = @transform_8, window_bounds = array<i64: 1, 1, 128>}, {transform_indices = @transform_9, window_bounds = array<i64: 1, 128, 512>}, {transform_indices = @transform_10, window_bounds = array<i64: 1, 1, 512>}, {transform_indices = @transform_11, window_bounds = array<i64: 1, 256, 128>}, {transform_indices = @transform_12, window_bounds = array<i64: 1, 1, 128>}, {pipeline_mode = #tpu.pipeline_mode<synchronous>, transform_indices = @transform_13, window_bounds = array<i64: 2, 16, 128>}]} {
    %c0_i32 = arith.constant 0 : i32
    %0 = arith.cmpi eq, %arg0, %c0_i32 : i32
    %1 = arith.extui %0 : i1 to i32
    %c0_i32_0 = arith.constant 0 : i32
    %2 = arith.cmpi ne, %1, %c0_i32_0 : i32
    scf.if %2 {
      %c0_78 = arith.constant 0 : index
      %c0_79 = arith.constant 0 : index
      %c0_80 = arith.constant 0 : index
      %201 = vector.load %arg3[%c0_78, %c0_79, %c0_80] : memref<2x16x128xf32, #tpu.memory_space<vmem>>, vector<2x16x128xf32>
      %202 = vector.shape_cast %201 : vector<2x16x128xf32> to vector<32x128xf32>
      %c0_81 = arith.constant 0 : index
      %c0_82 = arith.constant 0 : index
      %203 = vector.load %arg17[%c0_81, %c0_82] : memref<32x128xf32, #tpu.memory_space<vmem>>, vector<32x128xf32>
      tpu.vector_store %arg17[%c0_81, %c0_82], %202 {strides = array<i32>} : memref<32x128xf32, #tpu.memory_space<vmem>>, vector<32x128xf32>,
    } else {
    }
    %c0 = arith.constant 0 : index
    %c0_1 = arith.constant 0 : index
    %3 = vector.load %arg17[%c0, %c0_1] : memref<32x128xf32, #tpu.memory_space<vmem>>, vector<32x128xf32>
    %4 = arith.index_cast %arg0 : i32 to index
    %5 = memref.load %arg1[%4] : memref<2xf32, #tpu.memory_space<smem>>
    %6 = arith.index_cast %arg0 : i32 to index
    %7 = memref.load %arg2[%6] : memref<2xf32, #tpu.memory_space<smem>>
    %c0_2 = arith.constant 0 : index
    %c0_3 = arith.constant 0 : index
    %c0_4 = arith.constant 0 : index
    %8 = vector.load %arg4[%c0_2, %c0_3, %c0_4] : memref<1x1x128xf32, #tpu.memory_space<vmem>>, vector<1x1x128xf32>
    %9 = vector.shape_cast %8 : vector<1x1x128xf32> to vector<128xf32>
    %c0_5 = arith.constant 0 : index
    %c0_6 = arith.constant 0 : index
    %c0_7 = arith.constant 0 : index
    %10 = vector.load %arg5[%c0_5, %c0_6, %c0_7] : memref<1x1x128xf32, #tpu.memory_space<vmem>>, vector<1x1x128xf32>
    %11 = vector.shape_cast %10 : vector<1x1x128xf32> to vector<128xf32>
    %cst = arith.constant dense<0.000000e+00> : vector<32xf32>
    %12 = vector.multi_reduction <add>, %3, %cst [1] : vector<32x128xf32> to vector<32xf32>
    %13 = vector.shape_cast %12 : vector<32xf32> to vector<32x1xf32>
    %cst_8 = arith.constant 1.280000e+02 : f32
    %14 = vector.broadcast %cst_8 : f32 to vector<32x1xf32>
    %15 = arith.divf %13, %14 : vector<32x1xf32>
    %16 = vector.broadcast %15 : vector<32x1xf32> to vector<32x128xf32>
    %17 = arith.subf %3, %16 : vector<32x128xf32>
    %18 = arith.mulf %17, %17 : vector<32x128xf32>
    %cst_9 = arith.constant dense<0.000000e+00> : vector<32xf32>
    %19 = vector.multi_reduction <add>, %18, %cst_9 [1] : vector<32x128xf32> to vector<32xf32>
    %20 = vector.shape_cast %19 : vector<32xf32> to vector<32x1xf32>
    %cst_10 = arith.constant 1.280000e+02 : f32
    %21 = vector.broadcast %cst_10 : f32 to vector<32x1xf32>
    %22 = arith.divf %20, %21 : vector<32x1xf32>
    %cst_11 = arith.constant 9.99999974E-6 : f32
    %23 = vector.broadcast %cst_11 : f32 to vector<32x1xf32>
    %24 = arith.addf %22, %23 : vector<32x1xf32>
    %25 = math.rsqrt %24 : vector<32x1xf32>
    %26 = vector.broadcast %25 : vector<32x1xf32> to vector<32x128xf32>
    %27 = arith.mulf %17, %26 : vector<32x128xf32>
    %28 = vector.shape_cast %9 : vector<128xf32> to vector<1x128xf32>
    %29 = vector.broadcast %28 : vector<1x128xf32> to vector<32x128xf32>
    %30 = arith.mulf %27, %29 : vector<32x128xf32>
    %31 = vector.shape_cast %11 : vector<128xf32> to vector<1x128xf32>
    %32 = vector.broadcast %31 : vector<1x128xf32> to vector<32x128xf32>
    %33 = arith.addf %30, %32 : vector<32x128xf32>
    %34 = arith.truncf %33 : vector<32x128xf32> to vector<32x128xbf16>
    %c0_12 = arith.constant 0 : index
    %c0_13 = arith.constant 0 : index
    %c0_14 = arith.constant 0 : index
    %35 = vector.load %arg6[%c0_12, %c0_13, %c0_14] : memref<1x128x384xbf16, #tpu.memory_space<vmem>>, vector<1x128x384xbf16>
    %36 = vector.shape_cast %35 : vector<1x128x384xbf16> to vector<128x384xbf16>
    %cst_15 = arith.constant dense<0.000000e+00> : vector<32x384xf32>
    %37 = tpu.matmul %34, %36, %cst_15 {dimension_numbers = #tpu.dot_dimension_numbers<[1], [0], [0], [1], [0, 0, 1, 1], [], []>} : vector<32x128xbf16>, vector<128x384xbf16>, vector<32x384xf32> -> vector<32x384xf32>
    %c0_16 = arith.constant 0 : index
    %c0_17 = arith.constant 0 : index
    %c0_18 = arith.constant 0 : index
    %38 = vector.load %arg7[%c0_16, %c0_17, %c0_18] : memref<1x1x384xf32, #tpu.memory_space<vmem>>, vector<1x1x384xf32>
    %39 = vector.shape_cast %38 : vector<1x1x384xf32> to vector<384xf32>
    %40 = vector.shape_cast %39 : vector<384xf32> to vector<1x384xf32>
    %41 = vector.broadcast %40 : vector<1x384xf32> to vector<32x384xf32>
    %42 = arith.addf %37, %41 : vector<32x384xf32>
    %43 = arith.truncf %42 : vector<32x384xf32> to vector<32x384xbf16>
    %44 = vector.shape_cast %43 : vector<32x384xbf16> to vector<2x16x384xbf16>
    %45 = vector.extract_strided_slice %44 {offsets = [0, 0, 0], sizes = [2, 16, 32], strides = [1, 1, 1]} : vector<2x16x384xbf16> to vector<2x16x32xbf16>
    %46 = vector.extract_strided_slice %44 {offsets = [0, 0, 128], sizes = [2, 16, 32], strides = [1, 1, 1]} : vector<2x16x384xbf16> to vector<2x16x32xbf16>
    %47 = vector.extract_strided_slice %44 {offsets = [0, 0, 256], sizes = [2, 16, 32], strides = [1, 1, 1]} : vector<2x16x384xbf16> to vector<2x16x32xbf16>
    "tpu.trace_start"() <{level = 10 : i32, message = "bqd,bkd->bqk"}> : () -> ()
    %cst_19 = arith.constant dense<0.000000e+00> : vector<2x16x16xf32>
    %48 = tpu.matmul %45, %46, %cst_19 {dimension_numbers = #tpu.dot_dimension_numbers<[2], [2], [1], [1], [0, 0, 0, 1, 1, 1], [0], [0]>} : vector<2x16x32xbf16>, vector<2x16x32xbf16>, vector<2x16x16xf32> -> vector<2x16x16xf32>
    "tpu.trace_stop"() : () -> ()
    %cst_20 = arith.constant 0.176776692 : f32
    %49 = vector.broadcast %cst_20 : f32 to vector<2x16x16xf32>
    %50 = arith.mulf %48, %49 : vector<2x16x16xf32>
    %cst_21 = arith.constant dense<0xFF800000> : vector<2x16xf32>
    %51 = vector.multi_reduction <maximumf>, %50, %cst_21 [2] : vector<2x16x16xf32> to vector<2x16xf32>
    %52 = vector.shape_cast %51 : vector<2x16xf32> to vector<2x16x1xf32>
    %53 = vector.broadcast %52 : vector<2x16x1xf32> to vector<2x16x16xf32>
    %54 = arith.subf %50, %53 : vector<2x16x16xf32>
    %55 = math.exp %54 : vector<2x16x16xf32>
    %cst_22 = arith.constant dense<0.000000e+00> : vector<2x16xf32>
    %56 = vector.multi_reduction <add>, %55, %cst_22 [2] : vector<2x16x16xf32> to vector<2x16xf32>
    %57 = vector.shape_cast %56 : vector<2x16xf32> to vector<2x16x1xf32>
    %58 = tpu.reciprocal %57 {approx = true} : vector<2x16x1xf32> -> vector<2x16x1xf32>
    %59 = vector.broadcast %58 : vector<2x16x1xf32> to vector<2x16x16xf32>
    %60 = arith.mulf %55, %59 : vector<2x16x16xf32>
    %61 = arith.truncf %60 : vector<2x16x16xf32> to vector<2x16x16xbf16>
    "tpu.trace_start"() <{level = 10 : i32, message = "bqk,bkd->bqd"}> : () -> ()
    %cst_23 = arith.constant dense<0.000000e+00> : vector<2x16x32xf32>
    %62 = tpu.matmul %61, %47, %cst_23 {dimension_numbers = #tpu.dot_dimension_numbers<[2], [1], [1], [2], [0, 0, 0, 1, 1, 2], [0], [0]>} : vector<2x16x16xbf16>, vector<2x16x32xbf16>, vector<2x16x32xf32> -> vector<2x16x32xf32>
    "tpu.trace_stop"() : () -> ()
    %63 = arith.truncf %62 : vector<2x16x32xf32> to vector<2x16x32xbf16>
    %64 = vector.extract_strided_slice %44 {offsets = [0, 0, 32], sizes = [2, 16, 32], strides = [1, 1, 1]} : vector<2x16x384xbf16> to vector<2x16x32xbf16>
    %65 = vector.extract_strided_slice %44 {offsets = [0, 0, 160], sizes = [2, 16, 32], strides = [1, 1, 1]} : vector<2x16x384xbf16> to vector<2x16x32xbf16>
    %66 = vector.extract_strided_slice %44 {offsets = [0, 0, 288], sizes = [2, 16, 32], strides = [1, 1, 1]} : vector<2x16x384xbf16> to vector<2x16x32xbf16>
    "tpu.trace_start"() <{level = 10 : i32, message = "bqd,bkd->bqk"}> : () -> ()
    %cst_24 = arith.constant dense<0.000000e+00> : vector<2x16x16xf32>
    %67 = tpu.matmul %64, %65, %cst_24 {dimension_numbers = #tpu.dot_dimension_numbers<[2], [2], [1], [1], [0, 0, 0, 1, 1, 1], [0], [0]>} : vector<2x16x32xbf16>, vector<2x16x32xbf16>, vector<2x16x16xf32> -> vector<2x16x16xf32>
    "tpu.trace_stop"() : () -> ()
    %cst_25 = arith.constant 0.176776692 : f32
    %68 = vector.broadcast %cst_25 : f32 to vector<2x16x16xf32>
    %69 = arith.mulf %67, %68 : vector<2x16x16xf32>
    %cst_26 = arith.constant dense<0xFF800000> : vector<2x16xf32>
    %70 = vector.multi_reduction <maximumf>, %69, %cst_26 [2] : vector<2x16x16xf32> to vector<2x16xf32>
    %71 = vector.shape_cast %70 : vector<2x16xf32> to vector<2x16x1xf32>
    %72 = vector.broadcast %71 : vector<2x16x1xf32> to vector<2x16x16xf32>
    %73 = arith.subf %69, %72 : vector<2x16x16xf32>
    %74 = math.exp %73 : vector<2x16x16xf32>
    %cst_27 = arith.constant dense<0.000000e+00> : vector<2x16xf32>
    %75 = vector.multi_reduction <add>, %74, %cst_27 [2] : vector<2x16x16xf32> to vector<2x16xf32>
    %76 = vector.shape_cast %75 : vector<2x16xf32> to vector<2x16x1xf32>
    %77 = tpu.reciprocal %76 {approx = true} : vector<2x16x1xf32> -> vector<2x16x1xf32>
    %78 = vector.broadcast %77 : vector<2x16x1xf32> to vector<2x16x16xf32>
    %79 = arith.mulf %74, %78 : vector<2x16x16xf32>
    %80 = arith.truncf %79 : vector<2x16x16xf32> to vector<2x16x16xbf16>
    "tpu.trace_start"() <{level = 10 : i32, message = "bqk,bkd->bqd"}> : () -> ()
    %cst_28 = arith.constant dense<0.000000e+00> : vector<2x16x32xf32>
    %81 = tpu.matmul %80, %66, %cst_28 {dimension_numbers = #tpu.dot_dimension_numbers<[2], [1], [1], [2], [0, 0, 0, 1, 1, 2], [0], [0]>} : vector<2x16x16xbf16>, vector<2x16x32xbf16>, vector<2x16x32xf32> -> vector<2x16x32xf32>
    "tpu.trace_stop"() : () -> ()
    %82 = arith.truncf %81 : vector<2x16x32xf32> to vector<2x16x32xbf16>
    %83 = vector.extract_strided_slice %44 {offsets = [0, 0, 64], sizes = [2, 16, 32], strides = [1, 1, 1]} : vector<2x16x384xbf16> to vector<2x16x32xbf16>
    %84 = vector.extract_strided_slice %44 {offsets = [0, 0, 192], sizes = [2, 16, 32], strides = [1, 1, 1]} : vector<2x16x384xbf16> to vector<2x16x32xbf16>
    %85 = vector.extract_strided_slice %44 {offsets = [0, 0, 320], sizes = [2, 16, 32], strides = [1, 1, 1]} : vector<2x16x384xbf16> to vector<2x16x32xbf16>
    "tpu.trace_start"() <{level = 10 : i32, message = "bqd,bkd->bqk"}> : () -> ()
    %cst_29 = arith.constant dense<0.000000e+00> : vector<2x16x16xf32>
    %86 = tpu.matmul %83, %84, %cst_29 {dimension_numbers = #tpu.dot_dimension_numbers<[2], [2], [1], [1], [0, 0, 0, 1, 1, 1], [0], [0]>} : vector<2x16x32xbf16>, vector<2x16x32xbf16>, vector<2x16x16xf32> -> vector<2x16x16xf32>
    "tpu.trace_stop"() : () -> ()
    %cst_30 = arith.constant 0.176776692 : f32
    %87 = vector.broadcast %cst_30 : f32 to vector<2x16x16xf32>
    %88 = arith.mulf %86, %87 : vector<2x16x16xf32>
    %cst_31 = arith.constant dense<0xFF800000> : vector<2x16xf32>
    %89 = vector.multi_reduction <maximumf>, %88, %cst_31 [2] : vector<2x16x16xf32> to vector<2x16xf32>
    %90 = vector.shape_cast %89 : vector<2x16xf32> to vector<2x16x1xf32>
    %91 = vector.broadcast %90 : vector<2x16x1xf32> to vector<2x16x16xf32>
    %92 = arith.subf %88, %91 : vector<2x16x16xf32>
    %93 = math.exp %92 : vector<2x16x16xf32>
    %cst_32 = arith.constant dense<0.000000e+00> : vector<2x16xf32>
    %94 = vector.multi_reduction <add>, %93, %cst_32 [2] : vector<2x16x16xf32> to vector<2x16xf32>
    %95 = vector.shape_cast %94 : vector<2x16xf32> to vector<2x16x1xf32>
    %96 = tpu.reciprocal %95 {approx = true} : vector<2x16x1xf32> -> vector<2x16x1xf32>
    %97 = vector.broadcast %96 : vector<2x16x1xf32> to vector<2x16x16xf32>
    %98 = arith.mulf %93, %97 : vector<2x16x16xf32>
    %99 = arith.truncf %98 : vector<2x16x16xf32> to vector<2x16x16xbf16>
    "tpu.trace_start"() <{level = 10 : i32, message = "bqk,bkd->bqd"}> : () -> ()
    %cst_33 = arith.constant dense<0.000000e+00> : vector<2x16x32xf32>
    %100 = tpu.matmul %99, %85, %cst_33 {dimension_numbers = #tpu.dot_dimension_numbers<[2], [1], [1], [2], [0, 0, 0, 1, 1, 2], [0], [0]>} : vector<2x16x16xbf16>, vector<2x16x32xbf16>, vector<2x16x32xf32> -> vector<2x16x32xf32>
    "tpu.trace_stop"() : () -> ()
    %101 = arith.truncf %100 : vector<2x16x32xf32> to vector<2x16x32xbf16>
    %102 = vector.extract_strided_slice %44 {offsets = [0, 0, 96], sizes = [2, 16, 32], strides = [1, 1, 1]} : vector<2x16x384xbf16> to vector<2x16x32xbf16>
    %103 = vector.extract_strided_slice %44 {offsets = [0, 0, 224], sizes = [2, 16, 32], strides = [1, 1, 1]} : vector<2x16x384xbf16> to vector<2x16x32xbf16>
    %104 = vector.extract_strided_slice %44 {offsets = [0, 0, 352], sizes = [2, 16, 32], strides = [1, 1, 1]} : vector<2x16x384xbf16> to vector<2x16x32xbf16>
    "tpu.trace_start"() <{level = 10 : i32, message = "bqd,bkd->bqk"}> : () -> ()
    %cst_34 = arith.constant dense<0.000000e+00> : vector<2x16x16xf32>
    %105 = tpu.matmul %102, %103, %cst_34 {dimension_numbers = #tpu.dot_dimension_numbers<[2], [2], [1], [1], [0, 0, 0, 1, 1, 1], [0], [0]>} : vector<2x16x32xbf16>, vector<2x16x32xbf16>, vector<2x16x16xf32> -> vector<2x16x16xf32>
    "tpu.trace_stop"() : () -> ()
    %cst_35 = arith.constant 0.176776692 : f32
    %106 = vector.broadcast %cst_35 : f32 to vector<2x16x16xf32>
    %107 = arith.mulf %105, %106 : vector<2x16x16xf32>
    %cst_36 = arith.constant dense<0xFF800000> : vector<2x16xf32>
    %108 = vector.multi_reduction <maximumf>, %107, %cst_36 [2] : vector<2x16x16xf32> to vector<2x16xf32>
    %109 = vector.shape_cast %108 : vector<2x16xf32> to vector<2x16x1xf32>
    %110 = vector.broadcast %109 : vector<2x16x1xf32> to vector<2x16x16xf32>
    %111 = arith.subf %107, %110 : vector<2x16x16xf32>
    %112 = math.exp %111 : vector<2x16x16xf32>
    %cst_37 = arith.constant dense<0.000000e+00> : vector<2x16xf32>
    %113 = vector.multi_reduction <add>, %112, %cst_37 [2] : vector<2x16x16xf32> to vector<2x16xf32>
    %114 = vector.shape_cast %113 : vector<2x16xf32> to vector<2x16x1xf32>
    %115 = tpu.reciprocal %114 {approx = true} : vector<2x16x1xf32> -> vector<2x16x1xf32>
    %116 = vector.broadcast %115 : vector<2x16x1xf32> to vector<2x16x16xf32>
    %117 = arith.mulf %112, %116 : vector<2x16x16xf32>
    %118 = arith.truncf %117 : vector<2x16x16xf32> to vector<2x16x16xbf16>
    "tpu.trace_start"() <{level = 10 : i32, message = "bqk,bkd->bqd"}> : () -> ()
    %cst_38 = arith.constant dense<0.000000e+00> : vector<2x16x32xf32>
    %119 = tpu.matmul %118, %104, %cst_38 {dimension_numbers = #tpu.dot_dimension_numbers<[2], [1], [1], [2], [0, 0, 0, 1, 1, 2], [0], [0]>} : vector<2x16x16xbf16>, vector<2x16x32xbf16>, vector<2x16x32xf32> -> vector<2x16x32xf32>
    "tpu.trace_stop"() : () -> ()
    %120 = arith.truncf %119 : vector<2x16x32xf32> to vector<2x16x32xbf16>
    %121 = tpu.concatenate %63, %82, %101, %120 in 2 : vector<2x16x32xbf16>, vector<2x16x32xbf16>, vector<2x16x32xbf16>, vector<2x16x32xbf16> -> vector<2x16x128xbf16>
    %122 = vector.shape_cast %121 : vector<2x16x128xbf16> to vector<32x128xbf16>
    %c0_39 = arith.constant 0 : index
    %c0_40 = arith.constant 0 : index
    %c0_41 = arith.constant 0 : index
    %123 = vector.load %arg8[%c0_39, %c0_40, %c0_41] : memref<1x128x128xbf16, #tpu.memory_space<vmem>>, vector<1x128x128xbf16>
    %124 = vector.shape_cast %123 : vector<1x128x128xbf16> to vector<128x128xbf16>
    %cst_42 = arith.constant dense<0.000000e+00> : vector<32x128xf32>
    %125 = tpu.matmul %122, %124, %cst_42 {dimension_numbers = #tpu.dot_dimension_numbers<[1], [0], [0], [1], [0, 0, 1, 1], [], []>} : vector<32x128xbf16>, vector<128x128xbf16>, vector<32x128xf32> -> vector<32x128xf32>
    %c0_43 = arith.constant 0 : index
    %c0_44 = arith.constant 0 : index
    %c0_45 = arith.constant 0 : index
    %126 = vector.load %arg9[%c0_43, %c0_44, %c0_45] : memref<1x1x128xf32, #tpu.memory_space<vmem>>, vector<1x1x128xf32>
    %127 = vector.shape_cast %126 : vector<1x1x128xf32> to vector<128xf32>
    %128 = vector.shape_cast %127 : vector<128xf32> to vector<1x128xf32>
    %129 = vector.broadcast %128 : vector<1x128xf32> to vector<32x128xf32>
    %130 = arith.addf %125, %129 : vector<32x128xf32>
    %131 = vector.broadcast %5 : f32 to vector<32x128xf32>
    %132 = arith.mulf %131, %130 : vector<32x128xf32>
    %133 = arith.addf %3, %132 : vector<32x128xf32>
    %c0_46 = arith.constant 0 : index
    %c0_47 = arith.constant 0 : index
    %c0_48 = arith.constant 0 : index
    %134 = vector.load %arg10[%c0_46, %c0_47, %c0_48] : memref<1x1x128xf32, #tpu.memory_space<vmem>>, vector<1x1x128xf32>
    %135 = vector.shape_cast %134 : vector<1x1x128xf32> to vector<128xf32>
    %c0_49 = arith.constant 0 : index
    %c0_50 = arith.constant 0 : index
    %c0_51 = arith.constant 0 : index
    %136 = vector.load %arg11[%c0_49, %c0_50, %c0_51] : memref<1x1x128xf32, #tpu.memory_space<vmem>>, vector<1x1x128xf32>
    %137 = vector.shape_cast %136 : vector<1x1x128xf32> to vector<128xf32>
    %cst_52 = arith.constant dense<0.000000e+00> : vector<32xf32>
    %138 = vector.multi_reduction <add>, %133, %cst_52 [1] : vector<32x128xf32> to vector<32xf32>
    %139 = vector.shape_cast %138 : vector<32xf32> to vector<32x1xf32>
    %cst_53 = arith.constant 1.280000e+02 : f32
    %140 = vector.broadcast %cst_53 : f32 to vector<32x1xf32>
    %141 = arith.divf %139, %140 : vector<32x1xf32>
    %142 = vector.broadcast %141 : vector<32x1xf32> to vector<32x128xf32>
    %143 = arith.subf %133, %142 : vector<32x128xf32>
    %144 = arith.mulf %143, %143 : vector<32x128xf32>
    %cst_54 = arith.constant dense<0.000000e+00> : vector<32xf32>
    %145 = vector.multi_reduction <add>, %144, %cst_54 [1] : vector<32x128xf32> to vector<32xf32>
    %146 = vector.shape_cast %145 : vector<32xf32> to vector<32x1xf32>
    %cst_55 = arith.constant 1.280000e+02 : f32
    %147 = vector.broadcast %cst_55 : f32 to vector<32x1xf32>
    %148 = arith.divf %146, %147 : vector<32x1xf32>
    %cst_56 = arith.constant 9.99999974E-6 : f32
    %149 = vector.broadcast %cst_56 : f32 to vector<32x1xf32>
    %150 = arith.addf %148, %149 : vector<32x1xf32>
    %151 = math.rsqrt %150 : vector<32x1xf32>
    %152 = vector.broadcast %151 : vector<32x1xf32> to vector<32x128xf32>
    %153 = arith.mulf %143, %152 : vector<32x128xf32>
    %154 = vector.shape_cast %135 : vector<128xf32> to vector<1x128xf32>
    %155 = vector.broadcast %154 : vector<1x128xf32> to vector<32x128xf32>
    %156 = arith.mulf %153, %155 : vector<32x128xf32>
    %157 = vector.shape_cast %137 : vector<128xf32> to vector<1x128xf32>
    %158 = vector.broadcast %157 : vector<1x128xf32> to vector<32x128xf32>
    %159 = arith.addf %156, %158 : vector<32x128xf32>
    %160 = arith.truncf %159 : vector<32x128xf32> to vector<32x128xbf16>
    %c0_57 = arith.constant 0 : index
    %c0_58 = arith.constant 0 : index
    %c0_59 = arith.constant 0 : index
    %161 = vector.load %arg12[%c0_57, %c0_58, %c0_59] : memref<1x128x512xbf16, #tpu.memory_space<vmem>>, vector<1x128x512xbf16>
    %162 = vector.shape_cast %161 : vector<1x128x512xbf16> to vector<128x512xbf16>
    %cst_60 = arith.constant dense<0.000000e+00> : vector<32x512xf32>
    %163 = tpu.matmul %160, %162, %cst_60 {dimension_numbers = #tpu.dot_dimension_numbers<[1], [0], [0], [1], [0, 0, 1, 1], [], []>} : vector<32x128xbf16>, vector<128x512xbf16>, vector<32x512xf32> -> vector<32x512xf32>
    %c0_61 = arith.constant 0 : index
    %c0_62 = arith.constant 0 : index
    %c0_63 = arith.constant 0 : index
    %164 = vector.load %arg13[%c0_61, %c0_62, %c0_63] : memref<1x1x512xf32, #tpu.memory_space<vmem>>, vector<1x1x512xf32>
    %165 = vector.shape_cast %164 : vector<1x1x512xf32> to vector<512xf32>
    %166 = vector.shape_cast %165 : vector<512xf32> to vector<1x512xf32>
    %167 = vector.broadcast %166 : vector<1x512xf32> to vector<32x512xf32>
    %168 = arith.addf %163, %167 : vector<32x512xf32>
    %169 = vector.extract_strided_slice %168 {offsets = [0, 0], sizes = [32, 256], strides = [1, 1]} : vector<32x512xf32> to vector<32x256xf32>
    %170 = vector.extract_strided_slice %168 {offsets = [0, 256], sizes = [32, 256], strides = [1, 1]} : vector<32x512xf32> to vector<32x256xf32>
    %cst_64 = arith.constant 5.000000e-01 : f32
    %171 = vector.broadcast %cst_64 : f32 to vector<32x256xf32>
    %172 = arith.mulf %171, %170 : vector<32x256xf32>
    %cst_65 = arith.constant 4.471500e-02 : f32
    %173 = vector.broadcast %cst_65 : f32 to vector<32x256xf32>
    %174 = arith.mulf %173, %170 : vector<32x256xf32>
    %175 = arith.mulf %174, %170 : vector<32x256xf32>
    %176 = arith.mulf %175, %170 : vector<32x256xf32>
    %177 = arith.addf %170, %176 : vector<32x256xf32>
    %cst_66 = arith.constant 0.797884583 : f32
    %178 = vector.broadcast %cst_66 : f32 to vector<32x256xf32>
    %179 = arith.mulf %178, %177 : vector<32x256xf32>
    %180 = math.tanh %179 : vector<32x256xf32>
    %cst_67 = arith.constant 1.000000e+00 : f32
    %181 = vector.broadcast %cst_67 : f32 to vector<32x256xf32>
    %182 = arith.addf %181, %180 : vector<32x256xf32>
    %183 = arith.mulf %172, %182 : vector<32x256xf32>
    %184 = arith.mulf %169, %183 : vector<32x256xf32>
    %185 = arith.truncf %184 : vector<32x256xf32> to vector<32x256xbf16>
    %c0_68 = arith.constant 0 : index
    %c0_69 = arith.constant 0 : index
    %c0_70 = arith.constant 0 : index
    %186 = vector.load %arg14[%c0_68, %c0_69, %c0_70] : memref<1x256x128xbf16, #tpu.memory_space<vmem>>, vector<1x256x128xbf16>
    %187 = vector.shape_cast %186 : vector<1x256x128xbf16> to vector<256x128xbf16>
    %cst_71 = arith.constant dense<0.000000e+00> : vector<32x128xf32>
    %188 = tpu.matmul %185, %187, %cst_71 {dimension_numbers = #tpu.dot_dimension_numbers<[1], [0], [0], [1], [0, 0, 1, 1], [], []>} : vector<32x256xbf16>, vector<256x128xbf16>, vector<32x128xf32> -> vector<32x128xf32>
    %c0_72 = arith.constant 0 : index
    %c0_73 = arith.constant 0 : index
    %c0_74 = arith.constant 0 : index
    %189 = vector.load %arg15[%c0_72, %c0_73, %c0_74] : memref<1x1x128xf32, #tpu.memory_space<vmem>>, vector<1x1x128xf32>
    %190 = vector.shape_cast %189 : vector<1x1x128xf32> to vector<128xf32>
    %191 = vector.shape_cast %190 : vector<128xf32> to vector<1x128xf32>
    %192 = vector.broadcast %191 : vector<1x128xf32> to vector<32x128xf32>
    %193 = arith.addf %188, %192 : vector<32x128xf32>
    %194 = vector.broadcast %7 : f32 to vector<32x128xf32>
    %195 = arith.mulf %194, %193 : vector<32x128xf32>
    %196 = arith.addf %133, %195 : vector<32x128xf32>
    %c0_75 = arith.constant 0 : index
    %c0_76 = arith.constant 0 : index
    %197 = vector.load %arg17[%c0_75, %c0_76] : memref<32x128xf32, #tpu.memory_space<vmem>>, vector<32x128xf32>
    tpu.vector_store %arg17[%c0_75, %c0_76], %196 {strides = array<i32>} : memref<32x128xf32, #tpu.memory_space<vmem>>, vector<32x128xf32>,
    %c1_i32 = arith.constant 1 : i32
    %198 = arith.cmpi eq, %arg0, %c1_i32 : i32
    %199 = arith.extui %198 : i1 to i32
    %c0_i32_77 = arith.constant 0 : i32
    %200 = arith.cmpi ne, %199, %c0_i32_77 : i32
    scf.if %200 {
      %201 = vector.shape_cast %196 : vector<32x128xf32> to vector<2x16x128xf32>
      %c0_78 = arith.constant 0 : index
      %c0_79 = arith.constant 0 : index
      %c0_80 = arith.constant 0 : index
      %202 = vector.load %arg16[%c0_78, %c0_79, %c0_80] : memref<2x16x128xf32, #tpu.memory_space<vmem>>, vector<2x16x128xf32>
      tpu.vector_store %arg16[%c0_78, %c0_79, %c0_80], %201 {strides = array<i32>} : memref<2x16x128xf32, #tpu.memory_space<vmem>>, vector<2x16x128xf32>,
    } else {
    }
    return
  }
  func.func @transform_0(%arg0: i32, %arg1: memref<2xf32, #tpu.memory_space<smem>>, %arg2: memref<2xf32, #tpu.memory_space<smem>>) -> (i32, i32, i32) {
    %c0_i32 = arith.constant 0 : i32
    %c0_i32_0 = arith.constant 0 : i32
    %c0_i32_1 = arith.constant 0 : i32
    %c0_i32_2 = arith.constant 0 : i32
    return %c0_i32, %c0_i32_0, %c0_i32_1 : i32, i32, i32
  }
  func.func @transform_1(%arg0: i32, %arg1: memref<2xf32, #tpu.memory_space<smem>>, %arg2: memref<2xf32, #tpu.memory_space<smem>>) -> (i32, i32, i32) {
    %c0_i32 = arith.constant 0 : i32
    %c0_i32_0 = arith.constant 0 : i32
    %c0_i32_1 = arith.constant 0 : i32
    return %arg0, %c0_i32, %c0_i32_0 : i32, i32, i32
  }
  func.func @transform_2(%arg0: i32, %arg1: memref<2xf32, #tpu.memory_space<smem>>, %arg2: memref<2xf32, #tpu.memory_space<smem>>) -> (i32, i32, i32) {
    %c0_i32 = arith.constant 0 : i32
    %c0_i32_0 = arith.constant 0 : i32
    %c0_i32_1 = arith.constant 0 : i32
    return %arg0, %c0_i32, %c0_i32_0 : i32, i32, i32
  }
  func.func @transform_3(%arg0: i32, %arg1: memref<2xf32, #tpu.memory_space<smem>>, %arg2: memref<2xf32, #tpu.memory_space<smem>>) -> (i32, i32, i32) {
    %c0_i32 = arith.constant 0 : i32
    %c0_i32_0 = arith.constant 0 : i32
    %c0_i32_1 = arith.constant 0 : i32
    return %arg0, %c0_i32, %c0_i32_0 : i32, i32, i32
  }
  func.func @transform_4(%arg0: i32, %arg1: memref<2xf32, #tpu.memory_space<smem>>, %arg2: memref<2xf32, #tpu.memory_space<smem>>) -> (i32, i32, i32) {
    %c0_i32 = arith.constant 0 : i32
    %c0_i32_0 = arith.constant 0 : i32
    %c0_i32_1 = arith.constant 0 : i32
    return %arg0, %c0_i32, %c0_i32_0 : i32, i32, i32
  }
  func.func @transform_5(%arg0: i32, %arg1: memref<2xf32, #tpu.memory_space<smem>>, %arg2: memref<2xf32, #tpu.memory_space<smem>>) -> (i32, i32, i32) {
    %c0_i32 = arith.constant 0 : i32
    %c0_i32_0 = arith.constant 0 : i32
    %c0_i32_1 = arith.constant 0 : i32
    return %arg0, %c0_i32, %c0_i32_0 : i32, i32, i32
  }
  func.func @transform_6(%arg0: i32, %arg1: memref<2xf32, #tpu.memory_space<smem>>, %arg2: memref<2xf32, #tpu.memory_space<smem>>) -> (i32, i32, i32) {
    %c0_i32 = arith.constant 0 : i32
    %c0_i32_0 = arith.constant 0 : i32
    %c0_i32_1 = arith.constant 0 : i32
    return %arg0, %c0_i32, %c0_i32_0 : i32, i32, i32
  }
  func.func @transform_7(%arg0: i32, %arg1: memref<2xf32, #tpu.memory_space<smem>>, %arg2: memref<2xf32, #tpu.memory_space<smem>>) -> (i32, i32, i32) {
    %c0_i32 = arith.constant 0 : i32
    %c0_i32_0 = arith.constant 0 : i32
    %c0_i32_1 = arith.constant 0 : i32
    return %arg0, %c0_i32, %c0_i32_0 : i32, i32, i32
  }
  func.func @transform_8(%arg0: i32, %arg1: memref<2xf32, #tpu.memory_space<smem>>, %arg2: memref<2xf32, #tpu.memory_space<smem>>) -> (i32, i32, i32) {
    %c0_i32 = arith.constant 0 : i32
    %c0_i32_0 = arith.constant 0 : i32
    %c0_i32_1 = arith.constant 0 : i32
    return %arg0, %c0_i32, %c0_i32_0 : i32, i32, i32
  }
  func.func @transform_9(%arg0: i32, %arg1: memref<2xf32, #tpu.memory_space<smem>>, %arg2: memref<2xf32, #tpu.memory_space<smem>>) -> (i32, i32, i32) {
    %c0_i32 = arith.constant 0 : i32
    %c0_i32_0 = arith.constant 0 : i32
    %c0_i32_1 = arith.constant 0 : i32
    return %arg0, %c0_i32, %c0_i32_0 : i32, i32, i32
  }
  func.func @transform_10(%arg0: i32, %arg1: memref<2xf32, #tpu.memory_space<smem>>, %arg2: memref<2xf32, #tpu.memory_space<smem>>) -> (i32, i32, i32) {
    %c0_i32 = arith.constant 0 : i32
    %c0_i32_0 = arith.constant 0 : i32
    %c0_i32_1 = arith.constant 0 : i32
    return %arg0, %c0_i32, %c0_i32_0 : i32, i32, i32
  }
  func.func @transform_11(%arg0: i32, %arg1: memref<2xf32, #tpu.memory_space<smem>>, %arg2: memref<2xf32, #tpu.memory_space<smem>>) -> (i32, i32, i32) {
    %c0_i32 = arith.constant 0 : i32
    %c0_i32_0 = arith.constant 0 : i32
    %c0_i32_1 = arith.constant 0 : i32
    return %arg0, %c0_i32, %c0_i32_0 : i32, i32, i32
  }
  func.func @transform_12(%arg0: i32, %arg1: memref<2xf32, #tpu.memory_space<smem>>, %arg2: memref<2xf32, #tpu.memory_space<smem>>) -> (i32, i32, i32) {
    %c0_i32 = arith.constant 0 : i32
    %c0_i32_0 = arith.constant 0 : i32
    %c0_i32_1 = arith.constant 0 : i32
    return %arg0, %c0_i32, %c0_i32_0 : i32, i32, i32
  }
  func.func @transform_13(%arg0: i32, %arg1: memref<2xf32, #tpu.memory_space<smem>>, %arg2: memref<2xf32, #tpu.memory_space<smem>>) -> (i32, i32, i32) {
    %c0_i32 = arith.constant 0 : i32
    %c0_i32_0 = arith.constant 0 : i32
    %c0_i32_1 = arith.constant 0 : i32
    %c0_i32_2 = arith.constant 0 : i32
    return %c0_i32, %c0_i32_0, %c0_i32_1 : i32, i32, i32
  }
}

</mosaic_0001>

<bundles_post_ra>
// kernel: tpu_custom_call.1
= control target key start
LH: loop header
LB: loop body
LE: loop exit
PB: predicated region body
PF: predicated region fallthrough
CT: control target
= control target key end

     0   :  { %s4016_s24 = smov [#allocation4]   ;;  %s4017_s25 = smov [#allocation5]   ;;  %s4939_s0 = inlined_call_operand.hbm [shape: f32[2], index: 0, kind: input, shape index: {}]   ;;  %s4940_s2 = inlined_call_operand.hbm [shape: f32[2,16,128], index: 2, kind: input, shape index: {}]   ;;  %s4941_s3 = inlined_call_operand.vmem [shape: f32[2,1,128], index: 3, kind: input, shape index: {}]   ;;  %s4942_s4 = inlined_call_operand.hbm [shape: f32[2,1,128], index: 4, kind: input, shape index: {}]   ;;  %s4943_s5 = inlined_call_operand.hbm [shape: bf16[2,128,384], index: 5, kind: input, shape index: {}]   ;;  %s4944_s6 = inlined_call_operand.hbm [shape: f32[2,1,384], index: 6, kind: input, shape index: {}]   ;;  %s4945_s7 = inlined_call_operand.hbm [shape: bf16[2,128,128], index: 7, kind: input, shape index: {}]   ;;  %s4946_s8 = inlined_call_operand.hbm [shape: f32[2,1,128], index: 8, kind: input, shape index: {}]   ;;  %s4947_s9 = inlined_call_operand.hbm [shape: f32[2,1,128], index: 9, kind: input, shape index: {}]   ;;  %s4948_s10 = inlined_call_operand.hbm [shape: f32[2,1,128], index: 10, kind: input, shape index: {}]   ;;  %s4949_s11 = inlined_call_operand.hbm [shape: bf16[2,128,512], index: 11, kind: input, shape index: {}]   ;;  %s4950_s12 = inlined_call_operand.vmem [shape: f32[2,1,512], index: 12, kind: input, shape index: {}]   ;;  %s4951_s13 = inlined_call_operand.hbm [shape: bf16[2,256,128], index: 13, kind: input, shape index: {}]   ;;  %s4952_s14 = inlined_call_operand.vmem [shape: f32[2,1,128], index: 14, kind: input, shape index: {}]   ;;  %s4953_s15 = inlined_call_operand.hbm [shape: f32[2,16,128], index: 15, kind: output, shape index: {}]   ;;  %s4954_s1 = inlined_call_operand.hbm [shape: f32[2], index: 1, kind: input, shape index: {}]  }
   0x1   :  { %4966 = sst [smem:[#allocation35_spill]] %s4940_s2  ;;  %s21_s20 = sshll.u32 %s4939_s0, 4  ;;  %s22_s20 = int_to_ptr.hbm [resolvable:$true] %s21_s20 }
   0x2   :  { %4967 = sst [smem:[#allocation36_spill]] %s4941_s3  ;;  %s26_s23 = sshll.u32 %s4954_s1, 4  ;;  %s27_s23 = int_to_ptr.hbm [resolvable:$true] %s26_s23 }
   0x3   :  { %4968 = sst [smem:[#allocation37_spill]] %s4942_s4 }
   0x4   :  { %4969 = sst [smem:[#allocation38_spill]] %s4943_s5 }
   0x5   :  { %4970 = sst [smem:[#allocation39_spill]] %s4944_s6 }
   0x6   :  { %4971 = sst [smem:[#allocation40_spill]] %s4949_s11 }
   0x7   :  { %4972 = sst [smem:[#allocation41_spill]] %s4950_s12 }
   0x8   :  { %4973 = sst [smem:[#allocation42_spill]] %s4951_s13 }
   0x9   :  { %4974 = sst [smem:[#allocation43_spill]] %s4952_s14 }
   0xa   :  { %4975 = sst [smem:[#allocation44_spill]] %s4953_s15 }
   0xb   :  { %24 = dma.hbm_to_smem %s22_s20, 16, %s4016_s24, [#allocation3] }
   0xc   :  { %29 = dma.hbm_to_smem %s27_s23, 16, %s4017_s25, [#allocation3] }
   0xd   :  { %3970 = dma.done.wait [#allocation3], 32 }
   0xe   :  { %3971 = vsyncadd [#allocation3], 4294967264 }
   0xf   :  { %32 = sfence }
  0x10   :  { %33 = vsyncpa [#allocation7], 0 }
  0x11   :  { %34 = vsyncpa [#allocation10], 0 }
  0x12   :  { %36 = vsyncpa [#allocation10 + $0x1], 0 }
  0x13   :  { %37 = vsyncpa [#allocation13], 0 }
  0x14   :  { %39 = vsyncpa [#allocation13 + $0x1], 0 }
  0x15   :  { %40 = vsyncpa [#allocation16], 0 }
  0x16   :  { %42 = vsyncpa [#allocation16 + $0x1], 0 }
  0x17   :  { %43 = vsyncpa [#allocation19], 0 }
  0x18   :  { %45 = vsyncpa [#allocation19 + $0x1], 0 }
  0x19   :  { %46 = vsyncpa [#allocation22], 0 }
  0x1a   :  { %48 = vsyncpa [#allocation22 + $0x1], 0 }
  0x1b   :  { %49 = vsyncpa [#allocation8], 0  ;;  %s4120_s0 = smov 0   ;;  %s4122_s1 = smov 0  }
  0x1c   :  { %s4124_s26 = smov 0   ;;  %s4126_s27 = smov 0  }
  0x1d LB: > { %4976 = sst [smem:[#allocation32_spill]] %s4010_s26  ;;  %s4141_s28 = sadd.s32 1, %s4014_s27   ;;  %s4014_s27 = sphi %s4126_s27, %s5002_s27   ;;  %s4010_s26 = sphi %s4124_s26, %s5004_s26   ;;  %s4006_s1 = sphi %s4122_s1, %s5006_s1   ;;  %s4002_s0 = sphi %s4120_s0, %s5005_s0  }
  0x1e   : > { %4977 = sst [smem:[#allocation33_spill]] %s4141_s28  ;;  %s109_s29 = sadd.s32 1, %s4010_s26 }
  0x1f   : > { %s106_s30 = ssub.s32 %s4014_s27, %s4141_s28  ;;  %p116_p0 = scmp.ne.s32.totalorder %s4010_s26, %s4006_s1 }
  0x20   : > { %p107_p1 = scmp.eq.s32.totalorder %s106_s30, 0  ;;  %p117_p2 = scmp.eq.s32.totalorder %s4014_s27, 0 }
  0x21   : > { %p3440_p3 = scmp.lt.s32.totalorder %s4014_s27, 2  ;;  %s4154_s17 = sand.u32 1, %s4014_s27  }
  0x22   : > { %s4151_s16 = scalar_select %p107_p1, %s4010_s26, %s109_s29  }
  0x23   : > { %p118_p4 = por %p117_p2, %p116_p0  ;;  %s4157_s18 = sand.u32 1, %s4010_s26  }
  0x24   : > { %4978 = sst [smem:[#allocation34_spill]] %s4151_s16  ;;  %s450_s23 = scalar_lea.vmem [#allocation9], %s4157_s18 }
  0x25   : > { %s4979_s4 = sld [smem:[#allocation37_spill]]  ;;  %s457_s24 = sshll.u32 %s450_s23, 4  ;;  %s458_s24 = int_to_ptr.vmem [resolvable:$true] %s457_s24 }
  0x26   : > { %p4164_p5 = pnand %p3440_p3, %p118_p4  ;;  %s3377_s29 = smul.u32 3, %s4157_s18 }
  0x27   : > { %s3378_s30 = smul.u32 3, %s4014_s27  ;;  %s4963_s16 = scalar_lea.sflag [#allocation10], %s4154_s17 }
  0x28   : > { %p4173_p7 = pneg %p4164_p5 }
  0x2b   : > { %s453_s21 = scalar_lea.hbm %s4979_s4, %s4014_s27  ;;  %s3633_s23 = scalar_lea.hbm %s4979_s4, 2 }
  0x2c   : > { %s455_s22 = sshll.u32 %s453_s21, 4  ;;  %s456_s22 = int_to_ptr.hbm [resolvable:$true] %s455_s22 }
  0x2d   : > { %s3626_s26 = sshra.s32 %s456_s22, 4  ;;  %s3627_s26 = int_to_ptr.hbm [resolvable:$true] %s3626_s26 }
  0x2e   : > { %s3628_s28 = scalar_lea.hbm %s3627_s26, 1  ;;  %p3634_p10 = scmp.lt.s32.totalorder %s3627_s26, %s4979_s4 }
  0x2f   : > { %p3629_p6 = scmp.ne.s32.totalorder %s3627_s26, %s3628_s28  ;;  %p3635_p11 = scmp.lt.s32.totalorder %s3633_s23, %s3628_s28 }
  0x31   : > { %p3631_p8 = pnand %p4173_p7, %p3629_p6  ;;  %p3636_p12 = por %p3635_p11, %p3634_p10 }
  0x33   : > { %p3632_p9 = pneg %p3631_p8 }
  0x35   : > { %p3637_p13 = pnand %p3636_p12, %p3632_p9 }
  0x37   : > { %3640 = shalt.err (!%p3637_p13)
}
  0x38   : > { %3414 = dma.hbm_to_vmem [thread:$0]  (!%p4164_p5), %s456_s22, 16, %s458_s24, %s4963_s16  }
  0x39   : > { %s4982_s6 = sld [smem:[#allocation39_spill]]  ;;  %s490_s13 = scalar_lea.vmem [#allocation12], %s3377_s29 }
  0x3a   : > { %s498_s11 = sshll.u32 %s490_s13, 4  ;;  %s4962_s14 = scalar_lea.sflag [#allocation13], %s4154_s17  ;;  %s499_s11 = int_to_ptr.vmem [resolvable:$true] %s498_s11 }
  0x3f   : > { %s494_s20 = scalar_lea.hbm %s4982_s6, %s3378_s30  ;;  %s3663_s22 = scalar_lea.hbm %s4982_s6, 6 }
  0x40   : > { %s496_s21 = sshll.u32 %s494_s20, 4  ;;  %s497_s21 = int_to_ptr.hbm [resolvable:$true] %s496_s21 }
  0x41   : > { %s3656_s15 = sshra.s32 %s497_s21, 4  ;;  %s3657_s15 = int_to_ptr.hbm [resolvable:$true] %s3656_s15 }
  0x42   : > { %s3658_s26 = scalar_lea.hbm %s3657_s15, 3  ;;  %p3664_p3 = scmp.lt.s32.totalorder %s3657_s15, %s4982_s6 }
  0x43   : > { %p3659_p0 = scmp.ne.s32.totalorder %s3657_s15, %s3658_s26  ;;  %p3665_p4 = scmp.lt.s32.totalorder %s3663_s22, %s3658_s26 }
  0x45   : > { %p3661_p1 = pnand %p3659_p0, %p4173_p7  ;;  %p3666_p6 = por %p3665_p4, %p3664_p3 }
  0x47   : > { %p3662_p2 = pneg %p3661_p1 }
  0x49   : > { %p3667_p8 = pnand %p3666_p6, %p3662_p2 }
  0x4b   : > { %3670 = shalt.err (!%p3667_p8)
}
  0x4c   : > { %3420 = dma.hbm_to_vmem [thread:$0]  (!%p4164_p5), %s497_s21, 48, %s499_s11, %s4962_s14  }
  0x4d   : > { %s533_s29 = scalar_lea.hbm %s4946_s8, %s4014_s27  ;;  %s530_s20 = scalar_lea.vmem [#allocation15], %s4157_s18 }
  0x4e   : > { %s535_s30 = sshll.u32 %s533_s29, 4  ;;  %s537_s15 = sshll.u32 %s530_s20, 4  ;;  %s536_s30 = int_to_ptr.hbm [resolvable:$true] %s535_s30  ;;  %s538_s15 = int_to_ptr.vmem [resolvable:$true] %s537_s15 }
  0x4f   : > { %s4961_s26 = scalar_lea.sflag [#allocation16], %s4154_s17  ;;  %s3686_s28 = sshra.s32 %s536_s30, 4  ;;  %s3687_s28 = int_to_ptr.hbm [resolvable:$true] %s3686_s28 }
  0x50   : > { %s3688_s23 = scalar_lea.hbm %s3687_s28, 1  ;;  %s3693_s11 = scalar_lea.hbm %s4946_s8, 2 }
  0x51   : > { %p3689_p9 = scmp.ne.s32.totalorder %s3687_s28, %s3688_s23  ;;  %p3694_p12 = scmp.lt.s32.totalorder %s3687_s28, %s4946_s8 }
  0x52   : > { %p3695_p13 = scmp.lt.s32.totalorder %s3693_s11, %s3688_s23 }
  0x53   : > { %p3691_p10 = pnand %p3689_p9, %p4173_p7 }
  0x54   : > { %p3696_p0 = por %p3695_p13, %p3694_p12 }
  0x55   : > { %p3692_p11 = pneg %p3691_p10 }
  0x57   : > { %p3697_p1 = pnand %p3696_p0, %p3692_p11 }
  0x59   : > { %3700 = shalt.err (!%p3697_p1)
}
  0x5a   : > { %3426 = dma.hbm_to_vmem [thread:$0]  (!%p4164_p5), %s536_s30, 16, %s538_s15, %s4961_s26  }
  0x5b   : > { %s567_s29 = scalar_lea.hbm %s4948_s10, %s4014_s27  ;;  %s564_s20 = scalar_lea.vmem [#allocation18], %s4157_s18 }
  0x5c   : > { %s571_s22 = sshll.u32 %s564_s20, 4  ;;  %s569_s28 = sshll.u32 %s567_s29, 4  ;;  %s572_s22 = int_to_ptr.vmem [resolvable:$true] %s571_s22  ;;  %s570_s28 = int_to_ptr.hbm [resolvable:$true] %s569_s28 }
  0x5d   : > { %s4960_s23 = scalar_lea.sflag [#allocation19], %s4154_s17  ;;  %s3716_s24 = sshra.s32 %s570_s28, 4  ;;  %s3717_s24 = int_to_ptr.hbm [resolvable:$true] %s3716_s24 }
  0x5e   : > { %s3718_s11 = scalar_lea.hbm %s3717_s24, 1  ;;  %s3723_s30 = scalar_lea.hbm %s4948_s10, 2 }
  0x5f   : > { %p3719_p2 = scmp.ne.s32.totalorder %s3717_s24, %s3718_s11  ;;  %p3724_p6 = scmp.lt.s32.totalorder %s3717_s24, %s4948_s10 }
  0x60   : > { %p3725_p8 = scmp.lt.s32.totalorder %s3723_s30, %s3718_s11 }
  0x61   : > { %p3721_p3 = pnand %p3719_p2, %p4173_p7 }
  0x62   : > { %p3726_p9 = por %p3725_p8, %p3724_p6 }
  0x63   : > { %p3722_p4 = pneg %p3721_p3 }
  0x65   : > { %p3727_p10 = pnand %p3726_p9, %p3722_p4 }
  0x67   : > { %3730 = shalt.err (!%p3727_p10)
}
  0x68   : > { %3432 = dma.hbm_to_vmem [thread:$0]  (!%p4164_p5), %s570_s28, 16, %s572_s22, %s4960_s23  }
  0x69   : > { %s4242_s13 = sadd.s32 4294967295, %s4014_s27   ;;  %p122_p11 = scmp.ne.s32.totalorder %s4006_s1, %s4002_s0 }
  0x6a   : > { %p123_p12 = scmp.eq.s32.totalorder %s4242_s13, 0  ;;  %p2931_p13 = scmp.ge.s32.totalorder %s4014_s27, 1 }
  0x6b   : > { %p414_p0 = scmp.lt.s32.totalorder %s4014_s27, 3  ;;  %p2932_p2 = scmp.ne.s32.totalorder %s4242_s13, 0 }
  0x6c   : > { %p4251_p1 = por %p123_p12, %p122_p11  ;;  %s4985_s2 = sld [smem:[#allocation35_spill]] }
  0x6d   : > { %p4256_p3 = pnand %p2931_p13, %p414_p0  ;;  %s4018_s0 = smov [#allocation6]  }
  0x6e   : > { %s427_s11 = sshll.u32 %s4018_s0, 4  ;;  %s3375_s21 = smul.u32 192, %s4157_s18  ;;  %s428_s11 = int_to_ptr.vmem [resolvable:$true] %s427_s11 }
  0x6f   : > { %p3407_p4 = pneg %p4256_p3  ;;  %s3376_s3 = smul.u32 192, %s4014_s27 }
  0x70   : > { %s4019_s30 = smov 128   ;;  %s4020_s15 = smov 8  }
  0x71   : > { %p3408_p6 = pnand %p3407_p4, %p123_p12  ;;  %s4986_s5 = sld [smem:[#allocation38_spill]] }
  0x72   : > { %s425_s24 = sshll.u32 %s4985_s2, 4  ;;  %s468_s26 = scalar_lea.vmem [#allocation11], %s3375_s21  ;;  %s426_s24 = int_to_ptr.hbm [resolvable:$true] %s425_s24 }
  0x73   : > { %3410 = dma.hbm_to_vmem [thread:$0]  (!%p3408_p6), %s426_s24, 512, %s428_s11, [#allocation7], %s4019_s30, %s4019_s30, %s4020_s15  }
  0x74   : > { %s476_s14 = sshll.u32 %s468_s26, 4  ;;  %s2935_s16 = sshll.u32 %s4157_s18, 6  ;;  %s477_s14 = int_to_ptr.vmem [resolvable:$true] %s476_s14 }
  0x77   : > { %s473_s22 = scalar_lea.hbm %s4986_s5, %s3376_s3  ;;  %s3783_s24 = scalar_lea.hbm %s4986_s5, 384 }
  0x78   : > { %s474_s28 = sshll.u32 %s473_s22, 4  ;;  %s475_s28 = int_to_ptr.hbm [resolvable:$true] %s474_s28 }
  0x79   : > { %s3776_s0 = sshra.s32 %s475_s28, 4  ;;  %s3777_s0 = int_to_ptr.hbm [resolvable:$true] %s3776_s0 }
  0x7a   : > { %s3778_s2 = scalar_lea.hbm %s3777_s0, 192  ;;  %p3784_p11 = scmp.lt.s32.totalorder %s3777_s0, %s4986_s5 }
  0x7b   : > { %p3779_p8 = scmp.ne.s32.totalorder %s3777_s0, %s3778_s2  ;;  %p3785_p13 = scmp.lt.s32.totalorder %s3783_s24, %s3778_s2 }
  0x7d   : > { %p3781_p9 = pnand %p3779_p8, %p4173_p7  ;;  %p3786_p0 = por %p3785_p13, %p3784_p11 }
  0x7f   : > { %p3782_p10 = pneg %p3781_p9 }
  0x81   : > { %p3787_p4 = pnand %p3786_p0, %p3782_p10 }
  0x83   : > { %3790 = shalt.err (!%p3787_p4)
}
  0x84   : > { %s4021_s26 = smov 192   ;;  %s4022_s21 = smov 12  }
  0x85   : > { %s4987_s3 = scalar_lea.sflag [#allocation10], %s4154_s17  ;;  %s3292_s30 = sshll.u32 %s4014_s27, 6 }
  0x86   : > { %3417 = dma.hbm_to_vmem [thread:$0]  (!%p4164_p5), %s475_s28, 3072, %s477_s14, %s4987_s3, %s4021_s26, %s4021_s26, %s4022_s21  }
  0x87   : > { %s514_s15 = scalar_lea.hbm %s4945_s7, %s3292_s30  ;;  %s509_s12 = scalar_lea.vmem [#allocation14], %s2935_s16 }
  0x88   : > { %s517_s22 = sshll.u32 %s509_s12, 4  ;;  %s515_s2 = sshll.u32 %s514_s15, 4  ;;  %s518_s22 = int_to_ptr.vmem [resolvable:$true] %s517_s22  ;;  %s516_s2 = int_to_ptr.hbm [resolvable:$true] %s515_s2 }
  0x89   : > { %s3806_s0 = sshra.s32 %s516_s2, 4  ;;  %s3813_s14 = scalar_lea.hbm %s4945_s7, 128  ;;  %s3807_s0 = int_to_ptr.hbm [resolvable:$true] %s3806_s0 }
  0x8a   : > { %s3808_s24 = scalar_lea.hbm %s3807_s0, 64  ;;  %p3814_p10 = scmp.lt.s32.totalorder %s3807_s0, %s4945_s7 }
  0x8b   : > { %p3809_p6 = scmp.ne.s32.totalorder %s3807_s0, %s3808_s24  ;;  %p3815_p11 = scmp.lt.s32.totalorder %s3813_s14, %s3808_s24 }
  0x8d   : > { %p3811_p8 = pnand %p3809_p6, %p4173_p7  ;;  %p3816_p13 = por %p3815_p11, %p3814_p10 }
  0x8f   : > { %p3812_p9 = pneg %p3811_p8 }
  0x91   : > { %p3817_p0 = pnand %p3816_p13, %p3812_p9 }
  0x93   : > { %3820 = shalt.err (!%p3817_p0)
}
  0x94   : > { %s4964_s16 = smov 64   ;;  %s4965_s21 = smov 4  }
  0x95   : > { %s4988_s3 = scalar_lea.sflag [#allocation13], %s4154_s17  ;;  %s550_s6 = scalar_lea.hbm %s4947_s9, %s4014_s27 }
  0x96   : > { %3423 = dma.hbm_to_vmem [thread:$0]  (!%p4164_p5), %s516_s2, 1024, %s518_s22, %s4988_s3, %s4964_s16, %s4964_s16, %s4965_s21  }
  0x97   : > { %s547_s15 = scalar_lea.vmem [#allocation17], %s4157_s18  ;;  %s552_s0 = sshll.u32 %s550_s6, 4  ;;  %s553_s0 = int_to_ptr.hbm [resolvable:$true] %s552_s0 }
  0x98   : > { %s554_s12 = sshll.u32 %s547_s15, 4  ;;  %s2938_s24 = sshll.u32 %s4157_s18, 8  ;;  %s555_s12 = int_to_ptr.vmem [resolvable:$true] %s554_s12 }
  0x99   : > { %s3836_s11 = sshra.s32 %s553_s0, 4  ;;  %s3843_s22 = scalar_lea.hbm %s4947_s9, 2  ;;  %s3837_s11 = int_to_ptr.hbm [resolvable:$true] %s3836_s11 }
  0x9a   : > { %s3838_s23 = scalar_lea.hbm %s3837_s11, 1  ;;  %p3844_p9 = scmp.lt.s32.totalorder %s3837_s11, %s4947_s9 }
  0x9b   : > { %p3839_p4 = scmp.ne.s32.totalorder %s3837_s11, %s3838_s23  ;;  %p3845_p10 = scmp.lt.s32.totalorder %s3843_s22, %s3838_s23 }
  0x9d   : > { %p3841_p6 = pnand %p3839_p4, %p4173_p7  ;;  %p3846_p11 = por %p3845_p10, %p3844_p9 }
  0x9f   : > { %p3842_p8 = pneg %p3841_p6 }
  0xa1   : > { %p3847_p13 = pnand %p3846_p11, %p3842_p8 }
  0xa3   : > { %3850 = shalt.err (!%p3847_p13)
}
  0xa4   : > { %s4989_s3 = scalar_lea.sflag [#allocation16], %s4154_s17  ;;  %s3293_s30 = sshll.u32 %s4014_s27, 8 }
  0xa5   : > { %3429 = dma.hbm_to_vmem [thread:$0]  (!%p4164_p5), %s553_s0, 16, %s555_s12, %s4989_s3  }
  0xa6   : > { %s4990_s15 = sld [smem:[#allocation40_spill]]  ;;  %s582_s28 = scalar_lea.vmem [#allocation20], %s2938_s24 }
  0xa7   : > { %s590_s16 = sshll.u32 %s582_s28, 4  ;;  %s591_s16 = int_to_ptr.vmem [resolvable:$true] %s590_s16 }
  0xac   : > { %s587_s14 = scalar_lea.hbm %s4990_s15, %s3293_s30  ;;  %s3873_s12 = scalar_lea.hbm %s4990_s15, 512 }
  0xad   : > { %s588_s2 = sshll.u32 %s587_s14, 4  ;;  %s589_s2 = int_to_ptr.hbm [resolvable:$true] %s588_s2 }
  0xae   : > { %s3866_s11 = sshra.s32 %s589_s2, 4  ;;  %s3867_s11 = int_to_ptr.hbm [resolvable:$true] %s3866_s11 }
  0xaf   : > { %s3868_s23 = scalar_lea.hbm %s3867_s11, 256  ;;  %p3874_p8 = scmp.lt.s32.totalorder %s3867_s11, %s4990_s15 }
  0xb0   : > { %p3869_p0 = scmp.ne.s32.totalorder %s3867_s11, %s3868_s23  ;;  %p3875_p9 = scmp.lt.s32.totalorder %s3873_s12, %s3868_s23 }
  0xb2   : > { %p3871_p4 = pnand %p3869_p0, %p4173_p7  ;;  %p3876_p10 = por %p3875_p9, %p3874_p8 }
  0xb4   : > { %p3872_p6 = pneg %p3871_p4 }
  0xb6   : > { %p3877_p11 = pnand %p3876_p10, %p3872_p6 }
  0xb8   : > { %3880 = shalt.err (!%p3877_p11)
}
  0xb9   : > { %s4025_s24 = smov 256   ;;  %s4026_s30 = smov 16  }
  0xba   : > { %s4991_s4 = scalar_lea.sflag [#allocation19], %s4154_s17  ;;  %s2941_s6 = sshll.u32 %s4157_s18, 7 }
  0xbb   : > { %3435 = dma.hbm_to_vmem [thread:$0]  (!%p4164_p5), %s589_s2, 4096, %s591_s16, %s4991_s4, %s4025_s24, %s4025_s24, %s4026_s30  }
  0xbc   : > { %s3294_s14 = sshll.u32 %s4014_s27, 7  ;;  %s4992_s11 = sld [smem:[#allocation42_spill]] }
  0xbd   : > { %s611_s12 = scalar_lea.vmem [#allocation21], %s2941_s6  ;;  %s608_s3 = scalar_lea.sflag [#allocation22], %s4157_s18 }
  0xbe   : > { %s619_s0 = sshll.u32 %s611_s12, 4  ;;  %s620_s0 = int_to_ptr.vmem [resolvable:$true] %s619_s0 }
  0xc2   : > { %s616_s23 = scalar_lea.hbm %s4992_s11, %s3294_s14  ;;  %s3903_s27 = scalar_lea.hbm %s4992_s11, 256 }
  0xc3   : > { %s617_s26 = sshll.u32 %s616_s23, 4  ;;  %s618_s26 = int_to_ptr.hbm [resolvable:$true] %s617_s26 }
  0xc4   : > { %s3896_s21 = sshra.s32 %s618_s26, 4  ;;  %s3897_s21 = int_to_ptr.hbm [resolvable:$true] %s3896_s21 }
  0xc5   : > { %s3898_s5 = scalar_lea.hbm %s3897_s21, 128  ;;  %p3904_p6 = scmp.lt.s32.totalorder %s3897_s21, %s4992_s11 }
  0xc6   : > { %p3899_p13 = scmp.ne.s32.totalorder %s3897_s21, %s3898_s5  ;;  %p3905_p8 = scmp.lt.s32.totalorder %s3903_s27, %s3898_s5 }
  0xc8   : > { %p3901_p0 = pnand %p3899_p13, %p4173_p7  ;;  %p3906_p9 = por %p3905_p8, %p3904_p6 }
  0xca   : > { %p3902_p4 = pneg %p3901_p0 }
  0xcc   : > { %p3907_p10 = pnand %p3906_p9, %p3902_p4 }
  0xce   : > { %3910 = shalt.err (!%p3907_p10)
}
  0xcf   : > { %s4993_s18 = smov 4   ;;  %s4994_s30 = smov 64  }
  0xd0   : > { %3438 = dma.hbm_to_vmem [thread:$0]  (!%p4164_p5), %s618_s26, 2048, %s620_s0, %s608_s3, %s4994_s30, %s4994_s30, %s4993_s18  }
  0xd1   : > { %637 = sbr.rel (%p4256_p3) target bundleno = 2670 (0xa6e), region = 72 }
  0xd6   : > { %3973 = dma.done.wait (%p123_p12), [#allocation7], 512  }
  0xd7   : > { %3975 = vsyncadd (%p123_p12), [#allocation7], 4294966784  ;;  %s644_s5 = sand.u32 1, %s4242_s13   ;;  %s4365_s19 = sand.u32 1, %s4006_s1  }
  0xd8   : > { %s645_s25 = scalar_lea.sflag [#allocation10], %s644_s5  ;;  %s647_s21 = scalar_lea.vmem [#allocation9], %s4365_s19 }
  0xd9   : > { %3977 = dma.done.wait (%p4251_p1), %s645_s25, 3088  }
  0xda   : > { %3979 = vsyncadd (%p4251_p1), %s645_s25, 4294964208  ;;  %s3379_s20 = smul.u32 192, %s4365_s19  ;;  %s664_s14 = scalar_lea.sflag [#allocation13], %s644_s5 }
  0xdb   : > { %s3380_s4 = smul.u32 3, %s4365_s19 }
  0xdc   : > { %s4374_s6 = scalar_lea.vmem [#allocation11], %s3379_s20 }
  0xdd   : > { %s4376_s28 = scalar_lea.vmem [#allocation12], %s3380_s4 }
  0xde   : > { %3981 = dma.done.wait (%p4251_p1), %s664_s14, 1072  }
  0xdf   : > { %3983 = vsyncadd (%p4251_p1), %s664_s14, 4294966224  ;;  %s2946_s22 = sshll.u32 %s4365_s19, 6  ;;  %s684_s26 = scalar_lea.sflag [#allocation16], %s644_s5 }
  0xe0   : > { %s4383_s23 = scalar_lea.vmem [#allocation14], %s2946_s22  ;;  %s686_s12 = scalar_lea.vmem [#allocation15], %s4365_s19 }
  0xe1   : > { %3985 = dma.done.wait (%p4251_p1), %s684_s26, 32  }
  0xe2   : > { %3987 = vsyncadd (%p4251_p1), %s684_s26, 4294967264  ;;  %s695_s0 = scalar_lea.vmem [#allocation17], %s4365_s19  ;;  %s702_s3 = scalar_lea.sflag [#allocation19], %s644_s5 }
  0xe3   : > { %3989 = dma.done.wait (%p4251_p1), %s702_s3, 4112  }
  0xe4   : > { %3991 = vsyncadd (%p4251_p1), %s702_s3, 4294963184  ;;  %s2947_s16 = sshll.u32 %s4365_s19, 8  ;;  %s2948_s27 = sshll.u32 %s4365_s19, 7 }
  0xe5   : > { %s4398_s2 = scalar_lea.vmem [#allocation20], %s2947_s16  ;;  %s721_s24 = scalar_lea.sflag [#allocation22], %s4365_s19 }
  0xe6   : > { %s4401_s18 = scalar_lea.vmem [#allocation21], %s2948_s27 }
  0xe7   : > { %3993 = dma.done.wait (%p4251_p1), %s721_s24, 2048  }
  0xe8   : > { %3995 = vsyncadd (%p4251_p1), %s721_s24, 4294965248  ;;  %p809_p5 = scmp.lt.s32.totalorder %s4242_s13, 1  ;;  %s4995_s20 = sld [smem:[#allocation36_spill]] }
  0xe9   : > { %s4996_s3 = sld [smem:[#allocation41_spill]] }
  0xea   : > { %s4409_s30 = scalar_select %p809_p5, %s4242_s13, 1 }
  0xeb   : > { %s4997_s24 = sld [smem:[#allocation43_spill]] }
  0xec   : > { %s2949_s14 = sshll.u32 %s4409_s30, 2 }
  0xed   : > { %823 = sbr.rel (%p2932_p2) target bundleno = 247 (0xf7), region = 116 }
  0xee   : > { %s811_s4 = scalar_lea.vmem %s4995_s20, %s4409_s30 }
  0xef   : > { %s4419_s16 = scalar_lea.vmem %s4996_s3, %s2949_s14 }
  0xf1   : > { %s818_s17 = scalar_lea.vmem %s4997_s24, %s4409_s30 }
  0xf2   : > { %v824_v0 = vld [vmem:[#allocation6] sm:$0xff]  ;;  %v825_v1 = vld [vmem:[#allocation6 + $0x8] sm:$0xff]  ;;  %v826_v2 = vld [vmem:[#allocation6 + $0x10] sm:$0xff] }
  0xf3   : > { %828 = vst [vmem:[#allocation2 + $0x10] sm:$0xff] %v824_v0  ;;  %v827_v3 = vld [vmem:[#allocation6 + $0x18] sm:$0xff] }
  0xf4   : > { %829 = vst [vmem:[#allocation2] sm:$0xff] %v825_v1 }
  0xf5   : > { %830 = vst [vmem:[#allocation2 + $0x18] sm:$0xff] %v826_v2 }
  0xf6   : > { %831 = vst [vmem:[#allocation2 + $0x8] sm:$0xff] %v827_v3 }
  0xf7 PF: > { %v4027_v8 = vmov 128.0   ;;  %v3037_v31 = vld [vmem:[%s4374_s6 + $0xa8] sm:$0xf]  ;;  %v3317_v32 = vld [vmem:[%s4374_s6 + $0xb0] sm:$0xf0]  ;;  %vm1186_vm13 = vcmask 261120  }
  0xf8   : > { %3500 = vrcp.f32 %v4027_v8  ;;  %v3316_v33 = vld [vmem:[%s4374_s6 + $0xac] sm:$0xf]  ;;  %v3038_v34 = vor.u32 %v3317_v32, %v3037_v31  ;;  %v3039_v35 = vld [vmem:[%s4374_s6 + $0xb4] sm:$0xf0]  ;;  %v3045_v36 = vld [vmem:[%s4374_s6 + $0xb0] sm:$0xf] }
  0xf9   : > { %v3318_v37 = vld [vmem:[%s4374_s6 + $0xb8] sm:$0xf0]  ;;  %v3042_v38 = vor.u32 %v3316_v33, %v3039_v35  ;;  %v3025_v40 = vld [vmem:[%s4374_s6 + $0x90] sm:$0xf]  ;;  %v3313_v42 = vld [vmem:[%s4374_s6 + $0x94] sm:$0xf] }
  0xfa   : > { %v832_v5 = vld [vmem:[#allocation2 + $0x10] sm:$0xff]  ;;  %v3046_v39 = vor.u32 %v3318_v37, %v3045_v36  ;;  %1111 = vmatpush.bf16.msra.mxu0 %v3038_v34  ;;  %v3314_v41 = vld [vmem:[%s4374_s6 + $0x98] sm:$0xf0]  ;;  %v3027_v44 = vld [vmem:[%s4374_s6 + $0x9c] sm:$0xf0]  ;;  %vm1241_vm14 = vcmask 130048  }
  0xfb   : > { %840 = vadd.xlane.f32.xlu0 %v832_v5  ;;  %v833_v7 = vld [vmem:[#allocation2] sm:$0xff]  ;;  %1130 = vmatpush.bf16.msra.mxu1 %v3042_v38  ;;  %v3026_v43 = vor.u32 %v3314_v41, %v3025_v40  ;;  %v3033_v45 = vld [vmem:[%s4374_s6 + $0x98] sm:$0xf]  ;;  %v3030_v47 = vor.u32 %v3313_v42, %v3027_v44  ;;  %v3015_v53 = vld [vmem:[%s4374_s6 + $0x84] sm:$0xf0]  ;;  %s4030_s20 = smov 32  }
  0xfc   : > { %v834_v4 = vld [vmem:[#allocation2 + $0x18] sm:$0xff]  ;;  %1149 = vmatpush.bf16.msra.mxu2 %v3046_v39  ;;  %v3315_v46 = vld [vmem:[%s4374_s6 + $0xa0] sm:$0xf0]  ;;  %v3021_v54 = vld [vmem:[%s4374_s6 + $0x80] sm:$0xf]  ;;  %vm1912_vm15 = vcmask 523264  }
  0xfd   : > { %844 = vadd.xlane.f32.xlu1 %v834_v4  ;;  %v835_v6 = vld [vmem:[#allocation2 + $0x8] sm:$0xff]  ;;  %v3034_v48 = vor.u32 %v3315_v46, %v3033_v45  ;;  %v3013_v49 = vld [vmem:[%s4374_s6 + $0x78] sm:$0xf]  ;;  %v3310_v51 = vld [vmem:[%s4374_s6 + $0x7c] sm:$0xf]  ;;  %p3287_p7 = scmp.ne.s32.totalorder %s4242_s13, 1 }
  0xfe   : > { %v3501_v9 = vpop.eup %3500  ;;  %1112 = vmatpush.bf16.msra.mxu0 %v3026_v43  ;;  %v3311_v50 = vld [vmem:[%s4374_s6 + $0x80] sm:$0xf0]  ;;  %v3312_v55 = vld [vmem:[%s4374_s6 + $0x88] sm:$0xf0]  ;;  %v3018_v56 = vor.u32 %v3310_v51, %v3015_v53  ;;  %v3001_v58 = vld [vmem:[%s4374_s6 + $0x60] sm:$0xf] }
  0xff   : > { %v849_v10 = vmul.f32 128.0, %v3501_v9  ;;  %vm853_vm0 = vweird.f32 %v3501_v9  ;;  %1131 = vmatpush.bf16.msra.mxu1 %v3030_v47  ;;  %v3014_v52 = vor.u32 %v3311_v50, %v3013_v49  ;;  %v3022_v57 = vor.u32 %v3312_v55, %v3021_v54  ;;  %v3308_v59 = vld [vmem:[%s4374_s6 + $0x68] sm:$0xf0]  ;;  %v3307_v60 = vld [vmem:[%s4374_s6 + $0x64] sm:$0xf] }
 0x100   : > { %1150 = vmatpush.bf16.msra.mxu2 %v3034_v48  ;;  %v3002_v61 = vor.u32 %v3308_v59, %v3001_v58  ;;  %v3003_v62 = vld [vmem:[%s4374_s6 + $0x6c] sm:$0xf0]  ;;  %v3009_v63 = vld [vmem:[%s4374_s6 + $0x68] sm:$0xf]  ;;  %v3309_v0 = vld [vmem:[%s4374_s6 + $0x70] sm:$0xf0] }
 0x101   : > { %v850_v11 = vsub.f32 1.0, %v849_v10  ;;  %v3006_v1 = vor.u32 %v3307_v60, %v3003_v62  ;;  %v3010_v2 = vor.u32 %v3309_v0, %v3009_v63  ;;  %v2989_v3 = vld [vmem:[%s4374_s6 + $0x48] sm:$0xf]  ;;  %v2997_v8 = vld [vmem:[%s4374_s6 + $0x50] sm:$0xf] }
 0x102   : > { %1113 = vmatpush.bf16.msra.mxu0 %v3014_v52  ;;  %v2973_v31 = vld [vmem:[%s4374_s6 + $0x20] sm:$0xf]  ;;  %v3300_v32 = vld [vmem:[%s4374_s6 + $0x28] sm:$0xf0]  ;;  %v3295_v38 = vld [vmem:[%s4374_s6 + $0x4] sm:$0xf] }
 0x103   : > { %842 = vadd.xlane.f32.xlu0 %v833_v7  ;;  %v851_v12 = vmul.f32 %v3501_v9, %v850_v11  ;;  %1132 = vmatpush.bf16.msra.mxu1 %v3018_v56  ;;  %v2974_v35 = vor.u32 %v3300_v32, %v2973_v31  ;;  %v2953_v36 = vld [vmem:[%s4374_s6] sm:$0xf]  ;;  %v3296_v37 = vld [vmem:[%s4374_s6 + $0x8] sm:$0xf0]  ;;  %v2955_v42 = vld [vmem:[%s4374_s6 + $0xc] sm:$0xf0] }
 0x104   : > { %1151 = vmatpush.bf16.msra.mxu2 %v3022_v57  ;;  %v2954_v41 = vor.u32 %v3296_v37, %v2953_v36  ;;  %v2961_v43 = vld [vmem:[%s4374_s6 + $0x8] sm:$0xf]  ;;  %v3297_v44 = vld [vmem:[%s4374_s6 + $0x10] sm:$0xf0]  ;;  %v2958_v45 = vor.u32 %v3295_v38, %v2955_v42 }
 0x105   : > { %846 = vadd.xlane.f32.xlu1 %v835_v6  ;;  %v852_v13 = vadd.f32 %v3501_v9, %v851_v12  ;;  %v2977_v12 = vld [vmem:[%s4374_s6 + $0x30] sm:$0xf]  ;;  %v2962_v46 = vor.u32 %v3297_v44, %v2961_v43 }
 0x106   : > { %1114 = vmatpush.bf16.msra.mxu0 %v3002_v61 }
 0x107   : > { %v4427_v14 = vsel %vm853_vm0, %v3501_v9, %v852_v13  ;;  %1133 = vmatpush.bf16.msra.mxu1 %v3006_v1  ;;  %v3306_v9 = vld [vmem:[%s4374_s6 + $0x58] sm:$0xf0]  ;;  %vm1917_vm0 = vcmask 785408  }
 0x108   : > { %1152 = vmatpush.bf16.msra.mxu2 %v3010_v2  ;;  %v2998_v11 = vor.u32 %v3306_v9, %v2997_v8  ;;  %v3302_v13 = vld [vmem:[%s4374_s6 + $0x38] sm:$0xf0] }
 0x10c   : > { %1153 = vmatpush.bf16.msra.mxu2 %v2998_v11 }
 0x16e   : > { %v841_v16 = vpop.xlane.xlu0 %840 }
 0x16f   : > { %v855_v18 = vmul.f32 %v4427_v14, %v841_v16  ;;  %v2978_v16 = vor.u32 %v3302_v13, %v2977_v12  ;;  %v3494_v12 = vld [vmem:[%s811_s4] ss:$0 sm:$0xff] }
 0x170   : > { %v845_v15 = vpop.xlane.xlu1 %844 }
 0x171   : > { %v857_v17 = vmul.f32 %v4427_v14, %v845_v15  ;;  %v4433_v20 = vsub.f32 %v832_v5, %v855_v18  ;;  %v3304_v5 = vld [vmem:[%s4374_s6 + $0x4c] sm:$0xf]  ;;  %v3301_v15 = vld [vmem:[%s4374_s6 + $0x34] sm:$0xf]  ;;  %v2985_v18 = vld [vmem:[%s4374_s6 + $0x38] sm:$0xf] }
 0x173   : > { %v4431_v19 = vsub.f32 %v834_v4, %v857_v17  ;;  %v863_v22 = vmul.f32 %v4433_v20, %v4433_v20  ;;  %v3305_v4 = vld [vmem:[%s4374_s6 + $0x50] sm:$0xf0]  ;;  %v2979_v17 = vld [vmem:[%s4374_s6 + $0x3c] sm:$0xf0] }
 0x175   : > { %v865_v21 = vmul.f32 %v4431_v19, %v4431_v19  ;;  %867 = vadd.xlane.f32.xlu2 %v863_v22  ;;  %v2982_v22 = vor.u32 %v3301_v15, %v2979_v17 }
 0x176   : > { %v843_v24 = vpop.xlane.xlu0 %842 }
 0x177   : > { %871 = vadd.xlane.f32.xlu0 %v865_v21  ;;  %v856_v26 = vmul.f32 %v4427_v14, %v843_v24  ;;  %v3303_v21 = vld [vmem:[%s4374_s6 + $0x40] sm:$0xf0]  ;;  %v2965_v24 = vld [vmem:[%s4374_s6 + $0x18] sm:$0xf] }
 0x178   : > { %v847_v23 = vpop.xlane.xlu1 %846 }
 0x179   : > { %v858_v25 = vmul.f32 %v4427_v14, %v847_v23  ;;  %v4443_v28 = vsub.f32 %v833_v7, %v856_v26  ;;  %v2991_v7 = vld [vmem:[%s4374_s6 + $0x54] sm:$0xf0]  ;;  %v2986_v23 = vor.u32 %v3303_v21, %v2985_v18  ;;  %v3298_v26 = vld [vmem:[%s4374_s6 + $0x1c] sm:$0xf] }
 0x17a   : > { %v2994_v10 = vor.u32 %v3304_v5, %v2991_v7 }
 0x17b   : > { %v4441_v27 = vsub.f32 %v835_v6, %v858_v25  ;;  %v864_v30 = vmul.f32 %v4443_v28, %v4443_v28  ;;  %v2990_v6 = vor.u32 %v3305_v4, %v2989_v3  ;;  %1154 = vmatpush.bf16.msra.mxu2 %v2986_v23  ;;  %v3299_v25 = vld [vmem:[%s4374_s6 + $0x20] sm:$0xf0] }
 0x17c   : > { %1134 = vmatpush.bf16.msra.mxu1 %v2994_v10 }
 0x17d   : > { %v866_v29 = vmul.f32 %v4441_v27, %v4441_v27  ;;  %869 = vadd.xlane.f32.xlu2 %v864_v30  ;;  %1115 = vmatpush.bf16.msra.mxu0 %v2990_v6  ;;  %v2967_v30 = vld [vmem:[%s4374_s6 + $0x24] sm:$0xf0] }
 0x17e   : > { %v2970_v34 = vor.u32 %v3298_v26, %v2967_v30 }
 0x17f   : > { %873 = vadd.xlane.f32.xlu1 %v866_v29  ;;  %v2966_v29 = vor.u32 %v3299_v25, %v2965_v24  ;;  %1155 = vmatpush.bf16.msra.mxu2 %v2974_v35 }
 0x180   : > { %1135 = vmatpush.bf16.msra.mxu1 %v2982_v22  ;;  %v3495_v22 = vld [vmem:[%s647_s21] ss:$0 sm:$0xff]  ;;  %s4028_s21 = smov 96  }
 0x181   : > { %1116 = vmatpush.bf16.msra.mxu0 %v2978_v16 }
 0x183   : > { %1156 = vmatpush.bf16.msra.mxu2 %v2962_v46 }
 0x184   : > { %1136 = vmatpush.bf16.msra.mxu1 %v2970_v34 }
 0x185   : > { %1117 = vmatpush.bf16.msra.mxu0 %v2966_v29 }
 0x188   : > { %1137 = vmatpush.bf16.msra.mxu1 %v2958_v45 }
 0x189   : > { %1118 = vmatpush.bf16.msra.mxu0 %v2954_v41 }
 0x1e8   : > { %v868_v33 = vpop.xlane.xlu2 %867 }
 0x1e9   : > { %v875_v39 = vmul.f32 %v868_v33, %v4427_v14 }
 0x1ea   : > { %v872_v40 = vpop.xlane.xlu0 %871 }
 0x1eb   : > { %v879_v47 = vadd.f32 1e-05, %v875_v39  ;;  %v877_v48 = vmul.f32 %v872_v40, %v4427_v14  ;;  %v975_v39 = vld [vmem:[%s4376_s28] sm:$0x7]  ;;  %s4029_s28 = smov 64  }
 0x1ec   : > { %v977_v40 = vperm.slane %v975_v39, 0  ;;  %v978_v41 = vperm.slane %v975_v39, 1 }
 0x1ed   : > { %3502 = vrsqrt.f32 %v879_v47  ;;  %v881_v49 = vadd.f32 1e-05, %v877_v48  ;;  %vm889_vm2 = vweird.f32 %v879_v47 }
 0x1ef   : > { %3504 = vrsqrt.f32 %v881_v49  ;;  %vm909_vm9 = vweird.f32 %v881_v49 }
 0x1f0   : > { %v870_v51 = vpop.xlane.xlu2 %869 }
 0x1f1   : > { %v876_v53 = vmul.f32 %v870_v51, %v4427_v14 }
 0x1f2   : > { %v874_v50 = vpop.xlane.xlu1 %873 }
 0x1f3   : > { %v878_v52 = vmul.f32 %v874_v50, %v4427_v14  ;;  %v3503_v54 = vpop.eup %3502  ;;  %v880_v56 = vadd.f32 1e-05, %v876_v53 }
 0x1f4   : > { %v884_v57 = vmul.f32 %v3503_v54, %v879_v47  ;;  %vm890_vm1 = vweird.f32 %v3503_v54 }
 0x1f5   : > { %v882_v55 = vadd.f32 1e-05, %v878_v52  ;;  %v3505_v60 = vpop.eup %3504  ;;  %vm891_vm3 = vmor %vm889_vm2, %vm890_vm1  ;;  %vm899_vm5 = vweird.f32 %v880_v56 }
 0x1f6   : > { %v885_v58 = vmul.f32 %v3503_v54, %v884_v57  ;;  %v904_v2 = vmul.f32 %v3505_v60, %v881_v49  ;;  %vm910_vm10 = vweird.f32 %v3505_v60 }
 0x1f7   : > { %3506 = vrsqrt.f32 %v882_v55  ;;  %vm919_vm7 = vweird.f32 %v882_v55  ;;  %vm911_vm12 = vmor %vm909_vm9, %vm910_vm10 }
 0x1f8   : > { %3508 = vrsqrt.f32 %v880_v56  ;;  %v886_v59 = vmul.f32 0.5, %v885_v58  ;;  %v905_v7 = vmul.f32 %v3505_v60, %v904_v2 }
 0x1fa   : > { %v887_v61 = vsub.f32 1.5, %v886_v59  ;;  %v906_v13 = vmul.f32 0.5, %v905_v7 }
 0x1fc   : > { %v888_v1 = vmul.f32 %v3503_v54, %v887_v61  ;;  %v907_v23 = vsub.f32 1.5, %v906_v13 }
 0x1fd   : > { %v3507_v62 = vpop.eup %3506 }
 0x1fe   : > { %v3509_v63 = vpop.eup %3508  ;;  %v914_v0 = vmul.f32 %v3507_v62, %v882_v55  ;;  %v892_v6 = vsel %vm891_vm3, %v3503_v54, %v888_v1  ;;  %vm920_vm8 = vweird.f32 %v3507_v62  ;;  %v908_v29 = vmul.f32 %v3505_v60, %v907_v23 }
 0x1ff   : > { %v894_v3 = vmul.f32 %v3509_v63, %v880_v56  ;;  %vm900_vm4 = vweird.f32 %v3509_v63  ;;  %v923_v11 = vmul.f32 %v892_v6, %v4433_v20  ;;  %vm921_vm11 = vmor %vm919_vm7, %vm920_vm8 }
 0x200   : > { %v915_v4 = vmul.f32 %v3507_v62, %v914_v0  ;;  %vm901_vm6 = vmor %vm899_vm5, %vm900_vm4 }
 0x201   : > { %v895_v5 = vmul.f32 %v3509_v63, %v894_v3  ;;  %v930_v21 = vmul.f32 %v3494_v12, %v923_v11 }
 0x202   : > { %v916_v9 = vmul.f32 0.5, %v915_v4 }
 0x203   : > { %v896_v8 = vmul.f32 0.5, %v895_v5  ;;  %v937_v25 = vadd.f32 %v3495_v22, %v930_v21 }
 0x204   : > { %v917_v16 = vsub.f32 1.5, %v916_v9 }
 0x205   : > { %v897_v10 = vsub.f32 1.5, %v896_v8 }
 0x206   : > { %v918_v24 = vmul.f32 %v3507_v62, %v917_v16 }
 0x207   : > { %v898_v15 = vmul.f32 %v3509_v63, %v897_v10 }
 0x208   : > { %v922_v31 = vsel %vm921_vm11, %v3507_v62, %v918_v24  ;;  %v979_v62 = vperm.slane %v975_v39, 2 }
 0x209   : > { %v902_v17 = vsel %vm901_vm6, %v3509_v63, %v898_v15  ;;  %v926_v32 = vmul.f32 %v922_v31, %v4441_v27 }
 0x20a   : > { %v924_v18 = vmul.f32 %v902_v17, %v4443_v28  ;;  %v912_v28 = vsel %vm911_vm12, %v3505_v60, %v908_v29 }
 0x20b   : > { %v925_v33 = vmul.f32 %v912_v28, %v4431_v19  ;;  %v933_v34 = vmul.f32 %v3494_v12, %v926_v32 }
 0x20c   : > { %v931_v20 = vmul.f32 %v3494_v12, %v924_v18 }
 0x20d   : > { %v932_v35 = vmul.f32 %v3494_v12, %v925_v33  ;;  %v940_v36 = vadd.f32 %v3495_v22, %v933_v34 }
 0x20e   : > { %v938_v26 = vadd.f32 %v3495_v22, %v931_v20 }
 0x20f   : > { %v939_v37 = vadd.f32 %v3495_v22, %v932_v35 }
 0x210   : > { %v941_v30 = vpack.c.bf16 %v938_v26, %v937_v25 }
 0x211   : > { %v942_v38 = vpack.c.bf16 %v940_v36, %v939_v37 }
 0x212   : > { %1119 = vmatmul.bf16.vlgmr.msra.gmra.mxu0 %v941_v30  ;;  %1138 = vmatmul.bf16.vlgmr.msra.gmra.mxu1 %v941_v30 }
 0x213   : > { %1157 = vmatmul.bf16.vlgmr.msra.gmra.mxu2 %v941_v30 }
 0x222   : > { %1124 = vmatmul.bf16.gmra.mxu0 %v942_v38  ;;  %1143 = vmatmul.bf16.gmra.mxu1 %v942_v38 }
 0x223   : > { %1162 = vmatmul.bf16.gmra.mxu2 %v942_v38 }
 0x28f   : > { %v1120_v42 = vpop.f32.mrf.mxu0  ;;  %v1139_v43 = vpop.f32.mrf.mxu1 }
 0x290   : > { %v1121_v44 = vadd.f32 %v1120_v42, %v977_v40  ;;  %v1140_v45 = vadd.f32 %v1139_v43, %v978_v41 }
 0x292   : > { %v4513_v46 = vpack.c.bf16 %v1140_v45, %v1121_v44 }
 0x294   : > { %v1178_v51 = vrot.slane %v4513_v46, 4  ;;  %v1180_v3 = vunpack.c.l.b16 %v4513_v46 }
 0x296   : > { %v1158_v27 = vpop.f32.mrf.mxu2  ;;  %v1183_v54 = vunpack.c.l.b16 %v1178_v51 }
 0x297   : > { %v1122_v47 = vpop.f32.mrf.mxu0  ;;  %v1141_v19 = vpop.f32.mrf.mxu1  ;;  %v1159_v6 = vadd.f32 %v1158_v27, %v979_v62 }
 0x298   : > { %v1123_v48 = vadd.f32 %v1122_v47, %v977_v40  ;;  %v1142_v49 = vadd.f32 %v1141_v19, %v978_v41 }
 0x299   : > { %v1169_v13 = vpack.c.bf16 %v1159_v6, %v1159_v6 }
 0x29a   : > { %v4515_v50 = vpack.c.bf16 %v1142_v49, %v1123_v48 }
 0x29b   : > { %v1297_v20 = vunpack.c.l.b16 %v1169_v13 }
 0x29c   : > { %v1179_v52 = vrot.slane %v4515_v50, 4  ;;  %v1181_v63 = vunpack.c.l.b16 %v4515_v50 }
 0x29e   : > { %v1160_v53 = vpop.f32.mrf.mxu2  ;;  %v1184_v55 = vunpack.c.l.b16 %v1179_v52  ;;  %v4524_v9 = vpack.c.b16 %v1181_v63, %v1180_v3 }
 0x29f   : > { %v1125_v56 = vpop.f32.mrf.mxu0  ;;  %v1144_v57 = vpop.f32.mrf.mxu1  ;;  %v1161_v0 = vadd.f32 %v1160_v53, %v979_v62 }
 0x2a0   : > { %v1185_v58 = vpack.c.b16 %v1184_v55, %v1183_v54  ;;  %v1126_v59 = vadd.f32 %v1125_v56, %v977_v40  ;;  %v1145_v60 = vadd.f32 %v1144_v57, %v978_v41 }
 0x2a1   : > { %v1171_v10 = vpack.c.bf16 %v1161_v0, %v1161_v0 }
 0x2a2   : > { %v1191_v61 = vsel %vm1186_vm13, %v1185_v58, 0  ;;  %v4521_v1 = vpack.c.bf16 %v1145_v60, %v1126_v59 }
 0x2a3   : > { %1200 = vmatpush.bf16.xpose.msra.mxu3 %v1191_v61  ;;  %v1298_v16 = vunpack.c.l.b16 %v1171_v10 }
 0x2a4   : > { %v1209_v12 = vrot.slane %v4521_v1, 4  ;;  %v1211_v32 = vunpack.c.l.b16 %v4521_v1 }
 0x2a5   : > { %v4532_v26 = vpack.c.b16 %v1298_v16, %v1297_v20 }
 0x2a6   : > { %v1163_v2 = vpop.f32.mrf.mxu2  ;;  %v1214_v18 = vunpack.c.l.b16 %v1209_v12 }
 0x2a7   : > { %v1127_v4 = vpop.f32.mrf.mxu0  ;;  %v1146_v5 = vpop.f32.mrf.mxu1  ;;  %v1164_v22 = vadd.f32 %v1163_v2, %v979_v62 }
 0x2a8   : > { %v1128_v7 = vadd.f32 %v1127_v4, %v977_v40  ;;  %v1147_v8 = vadd.f32 %v1146_v5, %v978_v41 }
 0x2a9   : > { %v1173_v30 = vpack.c.bf16 %v1164_v22, %v1164_v22 }
 0x2aa   : > { %v4526_v11 = vpack.c.bf16 %v1147_v8, %v1128_v7  ;;  %3047 = vmatmul.msk.bf16.vlgmr.msra.gmra.mxu3 %vm1186_vm13, %v4524_v9 }
 0x2ab   : > { %v1325_v33 = vunpack.c.l.b16 %v1173_v30 }
 0x2ac   : > { %v1210_v15 = vrot.slane %v4526_v11, 4  ;;  %v1212_v31 = vunpack.c.l.b16 %v4526_v11 }
 0x2ae   : > { %v1165_v17 = vpop.f32.mrf.mxu2  ;;  %v1215_v21 = vunpack.c.l.b16 %v1210_v15  ;;  %v4538_v34 = vpack.c.b16 %v1212_v31, %v1211_v32 }
 0x2af   : > { %v1166_v23 = vadd.f32 %v1165_v17, %v979_v62 }
 0x2b0   : > { %v1216_v24 = vpack.c.b16 %v1215_v21, %v1214_v18 }
 0x2b1   : > { %v1175_v25 = vpack.c.bf16 %v1166_v23, %v1166_v23 }
 0x2b2   : > { %v1221_v29 = vsel %vm1186_vm13, %v1216_v24, 0 }
 0x2b3   : > { %1230 = vmatpush.bf16.xpose.msrb.mxu3 %v1221_v29  ;;  %v1326_v28 = vunpack.c.l.b16 %v1175_v25 }
 0x2b5   : > { %v4540_v35 = vpack.c.b16 %v1326_v28, %v1325_v33 }
 0x2ba   : > { %3048 = vmatmul.msk.bf16.vlgmr.msrb.gmra.mxu3 %vm1186_vm13, %v4538_v34 }
 0x2bb   : > { %1311 = vmatpush.bf16.msra.mxu3 %v4532_v26 }
 0x2bf   : > { %1339 = vmatpush.bf16.msrb.mxu3 %v4540_v35 }
 0x32d   : > { %v1202_v36 = vpop.f32.mrf.mxu3 }
 0x32e   : > { %v1237_v37 = vmul.f32 0.17677669, %v1202_v36 }
 0x330   : > { %v1242_v38 = vsel %vm1241_vm14, %v1237_v37, -inf }
 0x331   : > { %1243 = vmax.xlane.f32.xlu2 %v1242_v38 }
 0x335   : > { %v1204_v39 = vpop.f32.mrf.mxu3 }
 0x336   : > { %v1238_v40 = vmul.f32 0.17677669, %v1204_v39 }
 0x338   : > { %v1245_v41 = vsel %vm1241_vm14, %v1238_v40, -inf }
 0x339   : > { %1246 = vmax.xlane.f32.xlu0 %v1245_v41 }
 0x33d   : > { %v1232_v42 = vpop.f32.mrf.mxu3 }
 0x33e   : > { %v1239_v43 = vmul.f32 0.17677669, %v1232_v42 }
 0x340   : > { %v1248_v44 = vsel %vm1241_vm14, %v1239_v43, -inf }
 0x341   : > { %1249 = vmax.xlane.f32.xlu1 %v1248_v44 }
 0x345   : > { %v1234_v45 = vpop.f32.mrf.mxu3 }
 0x346   : > { %v1240_v27 = vmul.f32 0.17677669, %v1234_v45 }
 0x348   : > { %v1251_v47 = vsel %vm1241_vm14, %v1240_v27, -inf }
 0x349   : > { %1252 = vmax.xlane.f32.xlu2 %v1251_v47 }
 0x361   : > { %1352 = vrot.lane.b32.xlu2 %v4515_v50, %s4028_s21 }
 0x369   : > { %1381 = vrot.lane.b32.xlu2 %v4521_v1, %s4028_s21 }
 0x3a4   : > { %v1244_v19 = vpop.xlane.xlu2 %1243 }
 0x3a5   : > { %v1254_v48 = vsub.f32 %v1237_v37, %v1244_v19 }
 0x3a7   : > { %v1258_v49 = vmul.f32 1.442695, %v1254_v48 }
 0x3a9   : > { %3510 = vpow2.f32 %v1258_v49 }
 0x3ac   : > { %v1247_v51 = vpop.xlane.xlu0 %1246 }
 0x3ad   : > { %v1255_v52 = vsub.f32 %v1238_v40, %v1247_v51 }
 0x3af   : > { %v3511_v53 = vpop.eup %3510  ;;  %v1260_v54 = vmul.f32 1.442695, %v1255_v52 }
 0x3b0   : > { %v1266_v55 = vsel %vm1241_vm14, %v3511_v53, 0.0 }
 0x3b1   : > { %3512 = vpow2.f32 %v1260_v54  ;;  %1267 = vadd.xlane.f32.xlu0 %v1266_v55 }
 0x3b4   : > { %v1250_v56 = vpop.xlane.xlu1 %1249 }
 0x3b5   : > { %v1256_v57 = vsub.f32 %v1239_v43, %v1250_v56 }
 0x3b7   : > { %v3513_v58 = vpop.eup %3512  ;;  %v1262_v59 = vmul.f32 1.442695, %v1256_v57 }
 0x3b8   : > { %v1269_v60 = vsel %vm1241_vm14, %v3513_v58, 0.0 }
 0x3b9   : > { %3514 = vpow2.f32 %v1262_v59  ;;  %1270 = vadd.xlane.f32.xlu1 %v1269_v60 }
 0x3bc   : > { %v1253_v63 = vpop.xlane.xlu2 %1252 }
 0x3bd   : > { %v1257_v0 = vsub.f32 %v1240_v27, %v1253_v63 }
 0x3bf   : > { %v4555_v61 = vpop.eup %3514  ;;  %v1264_v2 = vmul.f32 1.442695, %v1257_v0 }
 0x3c0   : > { %v1272_v62 = vsel %vm1241_vm14, %v4555_v61, 0.0 }
 0x3c1   : > { %1273 = vadd.xlane.f32.xlu2 %v1272_v62  ;;  %3516 = vpow2.f32 %v1264_v2 }
 0x3c4   : > { %v1353_v6 = vpop.permute.xlu2 %1352 }
 0x3c5   : > { %1356 = vrot.lane.b32.xlu0 %v4524_v9, %s4028_s21  ;;  %v1355_v17 = vrot.slane %v1353_v6, 4 }
 0x3c7   : > { %v4575_v3 = vpop.eup %3516  ;;  %v1359_v22 = vunpack.c.l.b16 %v1355_v17 }
 0x3c8   : > { %v1275_v4 = vsel %vm1241_vm14, %v4575_v3, 0.0 }
 0x3cc   : > { %v1382_v13 = vpop.permute.xlu2 %1381 }
 0x3cd   : > { %v1385_v25 = vrot.slane %v1382_v13, 4 }
 0x3cf   : > { %v1389_v28 = vunpack.c.l.b16 %v1385_v25 }
 0x3d2   : > { %1350 = vrot.lane.b32.xlu1 %v4513_v46, %s4028_s21 }
 0x3d9   : > { %1520 = vrot.lane.b32.xlu2 %v4515_v50, %s4029_s28 }
 0x3da   : > { %1383 = vrot.lane.b32.xlu1 %v4526_v11, %s4028_s21 }
 0x3e1   : > { %1549 = vrot.lane.b32.xlu2 %v4521_v1, %s4029_s28 }
 0x3e2   : > { %1387 = vrot.lane.b32.xlu1 %v4538_v34, %s4028_s21 }
 0x3e9   : > { %1688 = vrot.lane.b32.xlu2 %v4515_v50, %s4030_s20 }
 0x3ea   : > { %1551 = vrot.lane.b32.xlu1 %v4526_v11, %s4029_s28 }
 0x3ef   : > { %1276 = vadd.xlane.f32.xlu0 %v1275_v4 }
 0x3f1   : > { %1717 = vrot.lane.b32.xlu2 %v4521_v1, %s4030_s20 }
 0x3f2   : > { %1555 = vrot.lane.b32.xlu1 %v4538_v34, %s4029_s28 }
 0x3fa   : > { %1719 = vrot.lane.b32.xlu1 %v4526_v11, %s4030_s20 }
 0x403   : > { %1518 = vrot.lane.b32.xlu0 %v4513_v46, %s4029_s28 }
 0x40b   : > { %1524 = vrot.lane.b32.xlu0 %v4524_v9, %s4029_s28 }
 0x413   : > { %1686 = vrot.lane.b32.xlu0 %v4513_v46, %s4030_s20 }
 0x41b   : > { %1692 = vrot.lane.b32.xlu0 %v4524_v9, %s4030_s20 }
 0x423   : > { %1723 = vrot.lane.b32.xlu0 %v4538_v34, %s4030_s20 }
 0x424   : > { %v1268_v50 = vpop.xlane.xlu0 %1267 }
 0x425   : > { %3518 = vrcp.f32 %v1268_v50 }
 0x42b   : > { %v3519_v5 = vpop.eup %3518 }
 0x42c   : > { %v1271_v1 = vpop.xlane.xlu1 %1270  ;;  %v1282_v7 = vmul.f32 %v3519_v5, %v3511_v53 }
 0x42d   : > { %3520 = vrcp.f32 %v1271_v1 }
 0x42e   : > { %v1286_v10 = vpack.c.bf16 %v1282_v7, %v1282_v7 }
 0x430   : > { %v1292_v15 = vunpack.c.l.b16 %v1286_v10 }
 0x433   : > { %v3521_v8 = vpop.eup %3520 }
 0x434   : > { %v1283_v11 = vmul.f32 %v3521_v8, %v3513_v58  ;;  %v1274_v9 = vpop.xlane.xlu2 %1273 }
 0x435   : > { %3522 = vrcp.f32 %v1274_v9 }
 0x436   : > { %v1287_v12 = vpack.c.bf16 %v1283_v11, %v1283_v11 }
 0x437   : > { %v1357_v38 = vpop.permute.xlu0 %1356 }
 0x438   : > { %v1293_v46 = vunpack.c.l.b16 %v1287_v12 }
 0x43a   : > { %v1294_v16 = vpack.c.b16 %v1293_v46, %v1292_v15 }
 0x43b   : > { %v3523_v47 = vpop.eup %3522 }
 0x43c   : > { %3049 = vmatmul.msk.bf16.vlgmr.msra.gmra.mxu3 %vm1241_vm14, %v1294_v16  ;;  %v1521_v24 = vpop.permute.xlu2 %1520  ;;  %v1284_v49 = vmul.f32 %v3523_v47, %v4555_v61 }
 0x43d   : > { %v1523_v4 = vrot.slane %v1521_v24, 4 }
 0x43e   : > { %v1288_v53 = vpack.c.bf16 %v1284_v49, %v1284_v49 }
 0x43f   : > { %v1527_v1 = vunpack.c.l.b16 %v1523_v4 }
 0x440   : > { %v1320_v59 = vunpack.c.l.b16 %v1288_v53 }
 0x444   : > { %v1351_v18 = vpop.permute.xlu1 %1350  ;;  %v1550_v36 = vpop.permute.xlu2 %1549 }
 0x445   : > { %v1354_v21 = vrot.slane %v1351_v18, 4  ;;  %v1553_v39 = vrot.slane %v1550_v36, 4 }
 0x447   : > { %v1358_v23 = vunpack.c.l.b16 %v1354_v21  ;;  %v1557_v43 = vunpack.c.l.b16 %v1553_v39 }
 0x449   : > { %v1360_v20 = vpack.c.b16 %v1359_v22, %v1358_v23 }
 0x44b   : > { %v1365_v29 = vsel %vm1186_vm13, %v1360_v20, 0 }
 0x44c   : > { %v1384_v30 = vpop.permute.xlu1 %1383  ;;  %1374 = vmatpush.bf16.xpose.msra.mxu3 %v1365_v29  ;;  %v1689_v42 = vpop.permute.xlu2 %1688 }
 0x44d   : > { %v1386_v31 = vrot.slane %v1384_v30, 4  ;;  %v1691_v10 = vrot.slane %v1689_v42, 4 }
 0x44f   : > { %v1390_v32 = vunpack.c.l.b16 %v1386_v31  ;;  %v1695_v13 = vunpack.c.l.b16 %v1691_v10 }
 0x451   : > { %v1391_v33 = vpack.c.b16 %v1390_v32, %v1389_v28 }
 0x453   : > { %v1396_v34 = vsel %vm1186_vm13, %v1391_v33, 0 }
 0x454   : > { %1405 = vmatpush.bf16.xpose.msrb.mxu1 %v1396_v34  ;;  %v1388_v37 = vpop.permute.xlu1 %1387  ;;  %v1718_v51 = vpop.permute.xlu2 %1717 }
 0x455   : > { %v1721_v55 = vrot.slane %v1718_v51, 4 }
 0x457   : > { %v1725_v62 = vunpack.c.l.b16 %v1721_v55 }
 0x45b   : > { %3052 = vmatmul.msk.bf16.vlgmr.msrb.gmra.mxu1 %vm1186_vm13, %v1388_v37 }
 0x45c   : > { %v1552_v40 = vpop.permute.xlu1 %1551 }
 0x45d   : > { %v1554_v41 = vrot.slane %v1552_v40, 4 }
 0x45f   : > { %v1558_v44 = vunpack.c.l.b16 %v1554_v41 }
 0x461   : > { %v1559_v45 = vpack.c.b16 %v1558_v44, %v1557_v43 }
 0x462   : > { %v1277_v27 = vpop.xlane.xlu0 %1276 }
 0x463   : > { %3524 = vrcp.f32 %v1277_v27  ;;  %v1564_v19 = vsel %vm1186_vm13, %v1559_v45, 0 }
 0x464   : > { %1573 = vmatpush.bf16.xpose.msra.mxu1 %v1564_v19  ;;  %v1556_v48 = vpop.permute.xlu1 %1555 }
 0x469   : > { %v3525_v52 = vpop.eup %3524 }
 0x46a   : > { %v1285_v54 = vmul.f32 %v3525_v52, %v4575_v3 }
 0x46b   : > { %3056 = vmatmul.msk.bf16.vlgmr.msra.gmra.mxu1 %vm1186_vm13, %v1556_v48 }
 0x46c   : > { %v1289_v56 = vpack.c.bf16 %v1285_v54, %v1285_v54  ;;  %v1720_v57 = vpop.permute.xlu1 %1719 }
 0x46d   : > { %v1722_v58 = vrot.slane %v1720_v57, 4 }
 0x46e   : > { %v1321_v60 = vunpack.c.l.b16 %v1289_v56 }
 0x46f   : > { %v1726_v63 = vunpack.c.l.b16 %v1722_v58 }
 0x470   : > { %v1322_v0 = vpack.c.b16 %v1321_v60, %v1320_v59 }
 0x471   : > { %v1727_v2 = vpack.c.b16 %v1726_v63, %v1725_v62 }
 0x472   : > { %3050 = vmatmul.msk.bf16.vlgmr.msrb.gmra.mxu3 %vm1241_vm14, %v1322_v0 }
 0x473   : > { %v1732_v61 = vsel %vm1186_vm13, %v1727_v2, 0 }
 0x474   : > { %1741 = vmatpush.bf16.xpose.msrb.mxu1 %v1732_v61 }
 0x475   : > { %v1519_v50 = vpop.permute.xlu0 %1518 }
 0x476   : > { %v1522_v3 = vrot.slane %v1519_v50, 4 }
 0x478   : > { %v1526_v5 = vunpack.c.l.b16 %v1522_v3 }
 0x47a   : > { %v1528_v6 = vpack.c.b16 %v1527_v1, %v1526_v5 }
 0x47c   : > { %v1533_v7 = vsel %vm1186_vm13, %v1528_v6, 0 }
 0x47d   : > { %1542 = vmatpush.bf16.xpose.msrb.mxu0 %v1533_v7  ;;  %v1525_v8 = vpop.permute.xlu0 %1524 }
 0x482   : > { %3051 = vmatmul.msk.bf16.vlgmr.msra.gmra.mxu3 %vm1186_vm13, %v1357_v38 }
 0x484   : > { %3055 = vmatmul.msk.bf16.vlgmr.msrb.gmra.mxu0 %vm1186_vm13, %v1525_v8 }
 0x485   : > { %v1687_v11 = vpop.permute.xlu0 %1686 }
 0x486   : > { %v1690_v12 = vrot.slane %v1687_v11, 4 }
 0x488   : > { %v1694_v15 = vunpack.c.l.b16 %v1690_v12 }
 0x48a   : > { %v1696_v46 = vpack.c.b16 %v1695_v13, %v1694_v15 }
 0x48c   : > { %v1701_v16 = vsel %vm1186_vm13, %v1696_v46, 0 }
 0x48d   : > { %1710 = vmatpush.bf16.xpose.msra.mxu0 %v1701_v16  ;;  %v1693_v9 = vpop.permute.xlu0 %1692 }
 0x494   : > { %3059 = vmatmul.msk.bf16.vlgmr.msra.gmra.mxu0 %vm1186_vm13, %v1693_v9 }
 0x495   : > { %v1724_v17 = vpop.permute.xlu0 %1723 }
 0x496   : > { %3060 = vmatmul.msk.bf16.vlgmr.msrb.gmra.mxu1 %vm1186_vm13, %v1724_v17 }
 0x4bf   : > { %v1313_v18 = vpop.f32.mrf.mxu3 }
 0x4c0   : > { %v1346_v21 = vpack.c.bf16 %v1313_v18, %v1313_v18 }
 0x4c2   : > { %v4611_v20 = vunpack.c.l.b16 %v1346_v21 }
 0x4c7   : > { %v1315_v22 = vpop.f32.mrf.mxu3 }
 0x4c8   : > { %v1347_v23 = vpack.c.bf16 %v1315_v22, %v1315_v22 }
 0x4ca   : > { %v4613_v24 = vunpack.c.l.b16 %v1347_v23 }
 0x4cc   : > { %v1862_v25 = vpack.c.b16 %v4613_v24, %v4611_v20  ;;  %v3496_v20 = vld [vmem:[%s686_s12] ss:$0 sm:$0xff]  ;;  %s4999_s12 = scalar_lea.vmem [#allocation18], %s4365_s19  ;;  %s837_s19 = sld [smem:[#allocation5 + %s4242_s13]] }
 0x4d8   : > { %v1407_v29 = vpop.f32.mrf.mxu1 }
 0x4d9   : > { %v1414_v30 = vmul.f32 0.17677669, %v1407_v29 }
 0x4db   : > { %v1422_v31 = vsel %vm1241_vm14, %v1414_v30, -inf }
 0x4dc   : > { %1423 = vmax.xlane.f32.xlu0 %v1422_v31 }
 0x4e0   : > { %v1409_v28 = vpop.f32.mrf.mxu1 }
 0x4e1   : > { %v1415_v32 = vmul.f32 0.17677669, %v1409_v28 }
 0x4e3   : > { %v1425_v33 = vsel %vm1241_vm14, %v1415_v32, -inf }
 0x4e4   : > { %1426 = vmax.xlane.f32.xlu2 %v1425_v33 }
 0x4e8   : > { %v1575_v34 = vpop.f32.mrf.mxu1 }
 0x4e9   : > { %v4619_v36 = vmul.f32 0.17677669, %v1575_v34 }
 0x4eb   : > { %v1590_v37 = vsel %vm1241_vm14, %v4619_v36, -inf }
 0x4ec   : > { %1591 = vmax.xlane.f32.xlu2 %v1590_v37 }
 0x4f0   : > { %v1577_v19 = vpop.f32.mrf.mxu1 }
 0x4f1   : > { %v1583_v49 = vmul.f32 0.17677669, %v1577_v19 }
 0x4f3   : > { %v1593_v53 = vsel %vm1241_vm14, %v1583_v49, -inf }
 0x4f5   : > { %v1341_v38 = vpop.f32.mrf.mxu3 }
 0x4f6   : > { %v1348_v39 = vpack.c.bf16 %v1341_v38, %v1341_v38 }
 0x4f8   : > { %v4623_v42 = vunpack.c.l.b16 %v1348_v39 }
 0x4fd   : > { %v1343_v40 = vpop.f32.mrf.mxu3 }
 0x4fe   : > { %v1349_v41 = vpack.c.bf16 %v1343_v40, %v1343_v40 }
 0x500   : > { %v4625_v43 = vunpack.c.l.b16 %v1349_v41 }
 0x501   : > { %v1544_v44 = vpop.f32.mrf.mxu0 }
 0x502   : > { %v1863_v45 = vpack.c.b16 %v4625_v43, %v4623_v42  ;;  %v1580_v27 = vmul.f32 0.17677669, %v1544_v44 }
 0x504   : > { %v1584_v47 = vsel %vm1241_vm14, %v1580_v27, -inf }
 0x505   : > { %v1376_v48 = vpop.f32.mrf.mxu3  ;;  %1585 = vmax.xlane.f32.xlu1 %v1584_v47 }
 0x506   : > { %v4649_v5 = vmul.f32 0.17677669, %v1376_v48 }
 0x508   : > { %v1416_v6 = vsel %vm1241_vm14, %v4649_v5, -inf }
 0x509   : > { %v1546_v51 = vpop.f32.mrf.mxu0 }
 0x50a   : > { %v1581_v52 = vmul.f32 0.17677669, %v1546_v51 }
 0x50c   : > { %v1587_v54 = vsel %vm1241_vm14, %v1581_v52, -inf }
 0x50d   : > { %v1378_v55 = vpop.f32.mrf.mxu3  ;;  %1594 = vmax.xlane.f32.xlu1 %v1593_v53  ;;  %1588 = vmax.xlane.f32.xlu0 %v1587_v54 }
 0x50e   : > { %v4632_v56 = vmul.f32 0.17677669, %v1378_v55 }
 0x510   : > { %v1419_v60 = vsel %vm1241_vm14, %v4632_v56, -inf }
 0x511   : > { %v1712_v57 = vpop.f32.mrf.mxu0 }
 0x512   : > { %v4634_v58 = vmul.f32 0.17677669, %v1712_v57 }
 0x513   : > { %v1743_v59 = vpop.f32.mrf.mxu1 }
 0x514   : > { %v1752_v62 = vsel %vm1241_vm14, %v4634_v58, -inf  ;;  %v4640_v63 = vmul.f32 0.17677669, %v1743_v59 }
 0x515   : > { %1420 = vmax.xlane.f32.xlu1 %v1419_v60  ;;  %1753 = vmax.xlane.f32.xlu0 %v1752_v62 }
 0x516   : > { %v1758_v3 = vsel %vm1241_vm14, %v4640_v63, -inf }
 0x519   : > { %v1714_v0 = vpop.f32.mrf.mxu0 }
 0x51a   : > { %v4642_v2 = vmul.f32 0.17677669, %v1714_v0 }
 0x51b   : > { %v1745_v61 = vpop.f32.mrf.mxu1 }
 0x51c   : > { %v1751_v4 = vmul.f32 0.17677669, %v1745_v61  ;;  %v1755_v50 = vsel %vm1241_vm14, %v4642_v2, -inf }
 0x51d   : > { %1756 = vmax.xlane.f32.xlu2 %v1755_v50  ;;  %1759 = vmax.xlane.f32.xlu1 %v1758_v3 }
 0x51e   : > { %v1761_v1 = vsel %vm1241_vm14, %v1751_v4, -inf }
 0x51f   : > { %1762 = vmax.xlane.f32.xlu0 %v1761_v1 }
 0x525   : > { %1417 = vmax.xlane.f32.xlu2 %v1416_v6 }
 0x533   : > { %1469 = vrot.lane.b32.xlu0 %v4532_v26, %s4028_s21 }
 0x53b   : > { %1637 = vrot.lane.b32.xlu0 %v4532_v26, %s4029_s28 }
 0x54f   : > { %v1424_v7 = vpop.xlane.xlu0 %1423 }
 0x550   : > { %v1430_v8 = vsub.f32 %v1414_v30, %v1424_v7 }
 0x552   : > { %v1436_v10 = vmul.f32 1.442695, %v1430_v8 }
 0x554   : > { %3526 = vpow2.f32 %v1436_v10 }
 0x557   : > { %v1427_v11 = vpop.xlane.xlu2 %1426 }
 0x558   : > { %v1431_v12 = vsub.f32 %v1415_v32, %v1427_v11 }
 0x55a   : > { %v4657_v13 = vpop.eup %3526  ;;  %v1438_v15 = vmul.f32 1.442695, %v1431_v12 }
 0x55b   : > { %v1446_v46 = vsel %vm1241_vm14, %v4657_v13, 0.0 }
 0x55c   : > { %3528 = vpow2.f32 %v1438_v15  ;;  %1447 = vadd.xlane.f32.xlu2 %v1446_v46 }
 0x55f   : > { %v1592_v29 = vpop.xlane.xlu2 %1591 }
 0x560   : > { %v1598_v34 = vsub.f32 %v4619_v36, %v1592_v29 }
 0x562   : > { %v4661_v16 = vpop.eup %3528  ;;  %v1604_v38 = vmul.f32 1.442695, %v1598_v34 }
 0x563   : > { %v1449_v9 = vsel %vm1241_vm14, %v4661_v16, 0.0 }
 0x564   : > { %1450 = vadd.xlane.f32.xlu1 %v1449_v9 }
 0x578   : > { %v1586_v17 = vpop.xlane.xlu1 %1585 }
 0x579   : > { %v1596_v18 = vsub.f32 %v1580_v27, %v1586_v17 }
 0x57b   : > { %v1600_v21 = vmul.f32 1.442695, %v1596_v18 }
 0x57d   : > { %3530 = vpow2.f32 %v1600_v21 }
 0x580   : > { %v1595_v22 = vpop.xlane.xlu1 %1594  ;;  %v1589_v23 = vpop.xlane.xlu0 %1588 }
 0x581   : > { %v1599_v30 = vsub.f32 %v1583_v49, %v1595_v22  ;;  %v1597_v31 = vsub.f32 %v1581_v52, %v1589_v23 }
 0x583   : > { %v4665_v28 = vpop.eup %3530  ;;  %v1606_v32 = vmul.f32 1.442695, %v1599_v30  ;;  %v1602_v33 = vmul.f32 1.442695, %v1597_v31 }
 0x584   : > { %v1608_v37 = vsel %vm1241_vm14, %v4665_v28, 0.0 }
 0x585   : > { %3532 = vpow2.f32 %v1606_v32  ;;  %1609 = vadd.xlane.f32.xlu2 %v1608_v37 }
 0x586   : > { %3534 = vpow2.f32 %v1602_v33 }
 0x587   : > { %3536 = vpow2.f32 %v1604_v38 }
 0x588   : > { %v1754_v39 = vpop.xlane.xlu0 %1753  ;;  %v1421_v19 = vpop.xlane.xlu1 %1420 }
 0x589   : > { %v1764_v44 = vsub.f32 %v4634_v58, %v1754_v39  ;;  %v1429_v52 = vsub.f32 %v4632_v56, %v1421_v19 }
 0x58b   : > { %v4670_v40 = vpop.eup %3532  ;;  %v1768_v47 = vmul.f32 1.442695, %v1764_v44  ;;  %v1434_v55 = vmul.f32 1.442695, %v1429_v52 }
 0x58c   : > { %v4672_v41 = vpop.eup %3534  ;;  %v1617_v27 = vsel %vm1241_vm14, %v4670_v40, 0.0 }
 0x58d   : > { %1618 = vadd.xlane.f32.xlu0 %v1617_v27  ;;  %v1611_v36 = vsel %vm1241_vm14, %v4672_v41, 0.0  ;;  %v4679_v48 = vpop.eup %3536  ;;  %3538 = vpow2.f32 %v1768_v47 }
 0x58e   : > { %1612 = vadd.xlane.f32.xlu1 %v1611_v36  ;;  %v1614_v54 = vsel %vm1241_vm14, %v4679_v48, 0.0 }
 0x590   : > { %v1757_v57 = vpop.xlane.xlu2 %1756  ;;  %v1760_v12 = vpop.xlane.xlu1 %1759 }
 0x591   : > { %v1765_v59 = vsub.f32 %v4642_v2, %v1757_v57  ;;  %v1766_v17 = vsub.f32 %v4640_v63, %v1760_v12 }
 0x592   : > { %v1763_v49 = vpop.xlane.xlu0 %1762 }
 0x593   : > { %v1767_v51 = vsub.f32 %v1751_v4, %v1763_v49  ;;  %v4684_v58 = vpop.eup %3538  ;;  %v1770_v0 = vmul.f32 1.442695, %v1765_v59  ;;  %v1772_v22 = vmul.f32 1.442695, %v1766_v17 }
 0x594   : > { %v1776_v56 = vsel %vm1241_vm14, %v4684_v58, 0.0 }
 0x595   : > { %v1774_v53 = vmul.f32 1.442695, %v1767_v51 }
 0x596   : > { %1615 = vadd.xlane.f32.xlu1 %v1614_v54 }
 0x597   : > { %3540 = vpow2.f32 %v1774_v53 }
 0x598   : > { %3542 = vpow2.f32 %v1434_v55  ;;  %v1418_v6 = vpop.xlane.xlu2 %1417 }
 0x599   : > { %3544 = vpow2.f32 %v1770_v0  ;;  %v1428_v7 = vsub.f32 %v4649_v5, %v1418_v6 }
 0x59b   : > { %v1432_v8 = vmul.f32 1.442695, %v1428_v7 }
 0x59d   : > { %v4687_v60 = vpop.eup %3540  ;;  %1494 = vrot.lane.b32.xlu2 %v4540_v35, %s4028_s21  ;;  %3546 = vpow2.f32 %v1432_v8 }
 0x59e   : > { %1777 = vadd.xlane.f32.xlu1 %v1776_v56  ;;  %v1785_v62 = vsel %vm1241_vm14, %v4687_v60, 0.0  ;;  %v4695_v61 = vpop.eup %3542 }
 0x59f   : > { %1786 = vadd.xlane.f32.xlu0 %v1785_v62  ;;  %v1443_v2 = vsel %vm1241_vm14, %v4695_v61, 0.0  ;;  %v4699_v50 = vpop.eup %3544 }
 0x5a0   : > { %v1779_v3 = vsel %vm1241_vm14, %v4699_v50, 0.0 }
 0x5a3   : > { %v3547_v10 = vpop.eup %3546 }
 0x5a4   : > { %v1440_v11 = vsel %vm1241_vm14, %v3547_v10, 0.0 }
 0x5a5   : > { %v1470_v4 = vpop.permute.xlu0 %1469 }
 0x5a6   : > { %1444 = vadd.xlane.f32.xlu1 %v1443_v2  ;;  %1482 = vmatpush.bf16.msrb.mxu2 %v1470_v4 }
 0x5ad   : > { %v1638_v1 = vpop.permute.xlu0 %1637 }
 0x5ae   : > { %1780 = vadd.xlane.f32.xlu1 %v1779_v3  ;;  %1650 = vmatpush.bf16.msra.mxu2 %v1638_v1 }
 0x5c6   : > { %1441 = vadd.xlane.f32.xlu2 %v1440_v11 }
 0x5c7   : > { %1805 = vrot.lane.b32.xlu1 %v4532_v26, %s4030_s20 }
 0x5cf   : > { %1830 = vrot.lane.b32.xlu1 %v4540_v35, %s4030_s20  ;;  %v1448_v46 = vpop.xlane.xlu2 %1447 }
 0x5d7   : > { %v1451_v15 = vpop.xlane.xlu1 %1450 }
 0x5d8   : > { %3548 = vrcp.f32 %v1451_v15 }
 0x5d9   : > { %3550 = vrcp.f32 %v1448_v46 }
 0x5da   : > { %3552 = vpow2.f32 %v1772_v22 }
 0x5de   : > { %1662 = vrot.lane.b32.xlu2 %v4540_v35, %s4029_s28  ;;  %v3549_v5 = vpop.eup %3548 }
 0x5df   : > { %v3551_v9 = vpop.eup %3550  ;;  %v1459_v18 = vmul.f32 %v3549_v5, %v4661_v16 }
 0x5e0   : > { %v1458_v21 = vmul.f32 %v3551_v9, %v4657_v13  ;;  %v4714_v33 = vpop.eup %3552 }
 0x5e1   : > { %v1463_v23 = vpack.c.bf16 %v1459_v18, %v1459_v18  ;;  %v1782_v63 = vsel %vm1241_vm14, %v4714_v33, 0.0 }
 0x5e2   : > { %v1462_v29 = vpack.c.bf16 %v1458_v21, %v1458_v21 }
 0x5e3   : > { %v1492_v30 = vunpack.c.l.b16 %v1463_v23 }
 0x5e4   : > { %v1491_v35 = vunpack.c.l.b16 %v1462_v29 }
 0x5e6   : > { %v1493_v32 = vpack.c.b16 %v1492_v30, %v1491_v35 }
 0x5f8   : > { %v1610_v26 = vpop.xlane.xlu2 %1609 }
 0x600   : > { %v1495_v31 = vpop.permute.xlu2 %1494  ;;  %v1619_v38 = vpop.xlane.xlu0 %1618 }
 0x601   : > { %1507 = vmatpush.bf16.msrb.mxu3 %v1495_v31  ;;  %v1613_v16 = vpop.xlane.xlu1 %1612 }
 0x604   : > { %3054 = vmatmul.msk.bf16.vlgmr.msrb.gmra.mxu3 %vm1241_vm14, %v1493_v32 }
 0x607   : > { %1783 = vadd.xlane.f32.xlu2 %v1782_v63 }
 0x609   : > { %v1616_v13 = vpop.xlane.xlu1 %1615 }
 0x60a   : > { %3554 = vrcp.f32 %v1616_v13 }
 0x60b   : > { %3556 = vrcp.f32 %v1619_v38 }
 0x610   : > { %v3555_v44 = vpop.eup %3554 }
 0x611   : > { %v1778_v34 = vpop.xlane.xlu1 %1777  ;;  %v3557_v27 = vpop.eup %3556  ;;  %v1626_v36 = vmul.f32 %v3555_v44, %v4679_v48 }
 0x612   : > { %v1627_v47 = vmul.f32 %v3557_v27, %v4670_v40  ;;  %v1787_v23 = vpop.xlane.xlu0 %1786 }
 0x613   : > { %v1630_v52 = vpack.c.bf16 %v1626_v36, %v1626_v36 }
 0x614   : > { %v1631_v53 = vpack.c.bf16 %v1627_v47, %v1627_v47 }
 0x615   : > { %v1659_v55 = vunpack.c.l.b16 %v1630_v52 }
 0x616   : > { %v1660_v59 = vunpack.c.l.b16 %v1631_v53 }
 0x618   : > { %v1661_v48 = vpack.c.b16 %v1660_v59, %v1659_v55 }
 0x619   : > { %v1445_v37 = vpop.xlane.xlu1 %1444 }
 0x61a   : > { %3558 = vrcp.f32 %v1445_v37 }
 0x620   : > { %v3559_v51 = vpop.eup %3558 }
 0x621   : > { %v1781_v39 = vpop.xlane.xlu1 %1780  ;;  %v1457_v54 = vmul.f32 %v3559_v51, %v4695_v61 }
 0x623   : > { %v1461_v56 = vpack.c.bf16 %v1457_v54, %v1457_v54 }
 0x625   : > { %v1467_v40 = vunpack.c.l.b16 %v1461_v56 }
 0x639   : > { %v1806_v19 = vpop.permute.xlu1 %1805  ;;  %v1442_v49 = vpop.xlane.xlu2 %1441 }
 0x63a   : > { %3560 = vrcp.f32 %v1442_v49 }
 0x63b   : > { %3562 = vrcp.f32 %v1613_v16 }
 0x63c   : > { %3564 = vrcp.f32 %v1610_v26 }
 0x63d   : > { %3566 = vrcp.f32 %v1781_v39 }
 0x63e   : > { %3568 = vrcp.f32 %v1778_v34 }
 0x63f   : > { %3570 = vrcp.f32 %v1787_v23  ;;  %v3322_v23 = vld [vmem:[%s4383_s23 + $0x18] sm:$0xff] }
 0x640   : > { %v3561_v57 = vpop.eup %3560 }
 0x641   : > { %v1456_v62 = vmul.f32 %v3561_v57, %v3547_v10  ;;  %v1663_v0 = vpop.permute.xlu2 %1662  ;;  %v1831_v2 = vpop.permute.xlu1 %1830 }
 0x642   : > { %1675 = vmatpush.bf16.msra.mxu3 %v1663_v0  ;;  %v3563_v6 = vpop.eup %3562 }
 0x643   : > { %v1460_v4 = vpack.c.bf16 %v1456_v62, %v1456_v62  ;;  %v3565_v61 = vpop.eup %3564  ;;  %v1625_v7 = vmul.f32 %v3563_v6, %v4672_v41 }
 0x644   : > { %v1624_v8 = vmul.f32 %v3565_v61, %v4665_v28  ;;  %v3567_v5 = vpop.eup %3566 }
 0x645   : > { %v1466_v3 = vunpack.c.l.b16 %v1460_v4  ;;  %3058 = vmatmul.msk.bf16.vlgmr.msra.gmra.mxu3 %vm1241_vm14, %v1661_v48  ;;  %v1629_v10 = vpack.c.bf16 %v1625_v7, %v1625_v7  ;;  %v3569_v9 = vpop.eup %3568  ;;  %v1793_v17 = vmul.f32 %v3567_v5, %v4699_v50 }
 0x646   : > { %1843 = vmatpush.bf16.msrb.mxu3 %v1831_v2  ;;  %v1628_v11 = vpack.c.bf16 %v1624_v8, %v1624_v8  ;;  %v1792_v18 = vmul.f32 %v3569_v9, %v4684_v58  ;;  %v3571_v30 = vpop.eup %3570 }
 0x647   : > { %v1468_v1 = vpack.c.b16 %v1467_v40, %v1466_v3  ;;  %v1635_v12 = vunpack.c.l.b16 %v1629_v10  ;;  %v1797_v21 = vpack.c.bf16 %v1793_v17, %v1793_v17  ;;  %v1795_v35 = vmul.f32 %v3571_v30, %v4687_v60  ;;  %v3320_v30 = vld [vmem:[%s4383_s23 + $0x8] sm:$0xff] }
 0x648   : > { %v1634_v15 = vunpack.c.l.b16 %v1628_v11  ;;  %v1796_v26 = vpack.c.bf16 %v1792_v18, %v1792_v18 }
 0x649   : > { %3053 = vmatmul.msk.bf16.vlgmr.msrb.gmra.mxu2 %vm1241_vm14, %v1468_v1  ;;  %v1803_v41 = vunpack.c.l.b16 %v1797_v21  ;;  %v1799_v32 = vpack.c.bf16 %v1795_v35, %v1795_v35  ;;  %v3319_v35 = vld [vmem:[%s4383_s23] sm:$0xff] }
 0x64a   : > { %1818 = vmatpush.bf16.msrb.mxu2 %v1806_v19  ;;  %v1636_v46 = vpack.c.b16 %v1635_v12, %v1634_v15  ;;  %v1802_v22 = vunpack.c.l.b16 %v1796_v26  ;;  %v3326_v26 = vld [vmem:[%s4383_s23 + $0x38] sm:$0xff] }
 0x64b   : > { %v1828_v58 = vunpack.c.l.b16 %v1799_v32  ;;  %1992 = vmatpush.bf16.msrb.mxu0 %v3326_v26  ;;  %v3217_v26 = vld [vmem:[%s4398_s2 + $0xe8] sm:$0xf] }
 0x64c   : > { %v1804_v28 = vpack.c.b16 %v1803_v41, %v1802_v22  ;;  %v3325_v41 = vld [vmem:[%s4383_s23 + $0x30] sm:$0xff]  ;;  %v3324_v22 = vld [vmem:[%s4383_s23 + $0x28] sm:$0xff] }
 0x64f   : > { %1993 = vmatpush.bf16.msrb.mxu0 %v3325_v41  ;;  %v3358_v41 = vld [vmem:[%s4398_s2 + $0xf4] sm:$0xf0] }
 0x653   : > { %1994 = vmatpush.bf16.msrb.mxu0 %v3324_v22 }
 0x659   : > { %3057 = vmatmul.msk.bf16.vlgmr.msra.gmra.mxu2 %vm1241_vm14, %v1636_v46 }
 0x669   : > { %3061 = vmatmul.msk.bf16.vlgmr.msrb.gmra.mxu2 %vm1241_vm14, %v1804_v28  ;;  %v3323_v28 = vld [vmem:[%s4383_s23 + $0x20] sm:$0xff] }
 0x66a   : > { %1995 = vmatpush.bf16.msrb.mxu0 %v3323_v28  ;;  %v3218_v28 = vor.u32 %v3358_v41, %v3217_v26  ;;  %v3129_v26 = vld [vmem:[%s4398_s2 + $0x40] sm:$0xf]  ;;  %v3337_v41 = vld [vmem:[%s4398_s2 + $0x4c] sm:$0xf0] }
 0x66c   : > { %2358 = vmatpush.bf16.msra.mxu3 %v3218_v28  ;;  %v3130_v28 = vor.u32 %v3337_v41, %v3129_v26  ;;  %v3497_v26 = vld [vmem:[%s695_s0] ss:$0 sm:$0xff] }
 0x66e   : > { %1996 = vmatpush.bf16.msrb.mxu0 %v3322_v23  ;;  %v3356_v23 = vld [vmem:[%s4398_s2 + $0xec] sm:$0xf] }
 0x67a   : > { %v1784_v29 = vpop.xlane.xlu2 %1783 }
 0x67b   : > { %3572 = vrcp.f32 %v1784_v29  ;;  %v3321_v29 = vld [vmem:[%s4383_s23 + $0x10] sm:$0xff]  ;;  %s836_s23 = sld [smem:[#allocation4 + %s4242_s13]] }
 0x67c   : > { %1997 = vmatpush.bf16.msrb.mxu0 %v3321_v29  ;;  %v3219_v29 = vld [vmem:[%s4398_s2 + $0xf8] sm:$0xf0] }
 0x680   : > { %1998 = vmatpush.bf16.msrb.mxu0 %v3320_v30  ;;  %v3222_v30 = vor.u32 %v3356_v23, %v3219_v29  ;;  %v3131_v23 = vld [vmem:[%s4398_s2 + $0x50] sm:$0xf0]  ;;  %v3137_v29 = vld [vmem:[%s4398_s2 + $0x48] sm:$0xf] }
 0x681   : > { %v3573_v31 = vpop.eup %3572 }
 0x682   : > { %v1794_v50 = vmul.f32 %v3573_v31, %v4714_v33 }
 0x684   : > { %v1798_v63 = vpack.c.bf16 %v1794_v50, %v1794_v50  ;;  %1999 = vmatpush.bf16.msrb.mxu0 %v3319_v35  ;;  %v3193_v35 = vld [vmem:[%s4398_s2 + $0xc0] sm:$0xf] }
 0x686   : > { %v1827_v16 = vunpack.c.l.b16 %v1798_v63 }
 0x687   : > { %v1509_v13 = vpop.f32.mrf.mxu3 }
 0x688   : > { %v1829_v34 = vpack.c.b16 %v1828_v58, %v1827_v16  ;;  %v1516_v37 = vpack.c.bf16 %v1509_v13, %v1509_v13  ;;  %2377 = vmatpush.bf16.msra.mxu0 %v3222_v30  ;;  %v3338_v30 = vld [vmem:[%s4398_s2 + $0x54] sm:$0xf0] }
 0x68a   : > { %3062 = vmatmul.msk.bf16.vlgmr.msrb.gmra.mxu3 %vm1241_vm14, %v1829_v34  ;;  %v1870_v44 = vunpack.c.l.b16 %v1516_v37 }
 0x68f   : > { %v1511_v38 = vpop.f32.mrf.mxu3 }
 0x690   : > { %v1517_v39 = vpack.c.bf16 %v1511_v38, %v1511_v38 }
 0x692   : > { %v1871_v27 = vunpack.c.l.b16 %v1517_v39 }
 0x694   : > { %v1873_v36 = vpack.c.b16 %v1871_v27, %v1870_v44 }
 0x696   : > { %1876 = vrot.lane.b32.xlu2 %v1873_v36, %s4030_s20 }
 0x6c8   : > { %v1677_v0 = vpop.f32.mrf.mxu3 }
 0x6c9   : > { %v1684_v8 = vpack.c.bf16 %v1677_v0, %v1677_v0 }
 0x6cb   : > { %v1884_v11 = vunpack.c.l.b16 %v1684_v8 }
 0x6cc   : > { %v1484_v60 = vpop.f32.mrf.mxu2 }
 0x6cd   : > { %v1514_v47 = vpack.c.bf16 %v1484_v60, %v1484_v60  ;;  %v3598_v60 = vld [vmem:[#allocation2 + $0x10] sm:$0xff] }
 0x6cf   : > { %v1868_v33 = vunpack.c.l.b16 %v1514_v47 }
 0x6d0   : > { %v1679_v3 = vpop.f32.mrf.mxu3 }
 0x6d1   : > { %v1685_v61 = vpack.c.bf16 %v1679_v3, %v1679_v3 }
 0x6d3   : > { %v1885_v10 = vunpack.c.l.b16 %v1685_v61 }
 0x6d4   : > { %v1486_v19 = vpop.f32.mrf.mxu2 }
 0x6d5   : > { %v1515_v49 = vpack.c.bf16 %v1486_v19, %v1486_v19  ;;  %v1887_v12 = vpack.c.b16 %v1885_v10, %v1884_v11 }
 0x6d7   : > { %v1869_v51 = vunpack.c.l.b16 %v1515_v49 }
 0x6d9   : > { %v1872_v52 = vpack.c.b16 %v1869_v51, %v1868_v33 }
 0x6db   : > { %1874 = vrot.lane.b32.xlu0 %v1872_v52, %s4030_s20 }
 0x6dc   : > { %v1652_v53 = vpop.f32.mrf.mxu2 }
 0x6dd   : > { %v1682_v54 = vpack.c.bf16 %v1652_v53, %v1652_v53  ;;  %v3600_v53 = vld [vmem:[#allocation2 + $0x18] sm:$0xff] }
 0x6df   : > { %v1882_v59 = vunpack.c.l.b16 %v1682_v54 }
 0x6e4   : > { %v1654_v55 = vpop.f32.mrf.mxu2 }
 0x6e5   : > { %v1683_v57 = vpack.c.bf16 %v1654_v55, %v1654_v55 }
 0x6e7   : > { %v1883_v56 = vunpack.c.l.b16 %v1683_v57 }
 0x6e9   : > { %v1886_v62 = vpack.c.b16 %v1883_v56, %v1882_v59  ;;  %v3601_v56 = vld [vmem:[#allocation2 + $0x8] sm:$0xff] }
 0x6eb   : > { %1888 = vrot.lane.b32.xlu1 %v1886_v62, %s4029_s28 }
 0x6ec   : > { %v1820_v2 = vpop.f32.mrf.mxu2 }
 0x6ed   : > { %v1850_v48 = vpack.c.bf16 %v1820_v2, %v1820_v2 }
 0x6ef   : > { %v1896_v1 = vunpack.c.l.b16 %v1850_v48 }
 0x6f0   : > { %v1877_v13 = vpop.permute.xlu2 %1876 }
 0x6f1   : > { %v1911_v37 = vsel %vm1186_vm13, %v1863_v45, %v1877_v13  ;;  %v3599_v45 = vld [vmem:[#allocation2] sm:$0xff] }
 0x6f4   : > { %v1822_v4 = vpop.f32.mrf.mxu2 }
 0x6f5   : > { %v1851_v40 = vpack.c.bf16 %v1822_v4, %v1822_v4 }
 0x6f7   : > { %v1897_v6 = vunpack.c.l.b16 %v1851_v40 }
 0x6f9   : > { %v1900_v7 = vpack.c.b16 %v1897_v6, %v1896_v1 }
 0x6fb   : > { %1902 = vrot.lane.b32.xlu1 %v1900_v7, %s4028_s21 }
 0x703   : > { %1890 = vrot.lane.b32.xlu1 %v1887_v12, %s4029_s28 }
 0x70d   : > { %v1845_v15 = vpop.f32.mrf.mxu3 }
 0x70e   : > { %v1852_v46 = vpack.c.bf16 %v1845_v15, %v1845_v15 }
 0x710   : > { %v1898_v17 = vunpack.c.l.b16 %v1852_v46 }
 0x715   : > { %v1847_v5 = vpop.f32.mrf.mxu3 }
 0x716   : > { %v1853_v9 = vpack.c.bf16 %v1847_v5, %v1847_v5  ;;  %v3209_v5 = vld [vmem:[%s4398_s2 + $0xe0] sm:$0xf] }
 0x718   : > { %v1899_v18 = vunpack.c.l.b16 %v1853_v9  ;;  %v3357_v9 = vld [vmem:[%s4398_s2 + $0xec] sm:$0xf0] }
 0x71a   : > { %v1901_v21 = vpack.c.b16 %v1899_v18, %v1898_v17  ;;  %v3355_v17 = vld [vmem:[%s4398_s2 + $0xe4] sm:$0xf]  ;;  %v3210_v18 = vor.u32 %v3357_v9, %v3209_v5 }
 0x71c   : > { %1904 = vrot.lane.b32.xlu0 %v1901_v21, %s4028_s21  ;;  %v3211_v21 = vld [vmem:[%s4398_s2 + $0xf0] sm:$0xf0]  ;;  %2320 = vmatpush.bf16.msra.mxu1 %v3210_v18  ;;  %v3155_v18 = vld [vmem:[%s4398_s2 + $0x78] sm:$0xf0] }
 0x71d   : > { %v3214_v22 = vor.u32 %v3355_v17, %v3211_v21  ;;  %v3340_v17 = vld [vmem:[%s4398_s2 + $0x6c] sm:$0xf] }
 0x71e   : > { %v3158_v21 = vor.u32 %v3340_v17, %v3155_v18 }
 0x71f   : > { %2339 = vmatpush.bf16.msra.mxu2 %v3214_v22  ;;  %v3335_v22 = vld [vmem:[%s4398_s2 + $0x44] sm:$0xf] }
 0x74d   : > { %v1875_v32 = vpop.permute.xlu0 %1874 }
 0x74e   : > { %v1908_v50 = vsel %vm1186_vm13, %v1862_v25, %v1875_v32  ;;  %v2011_v25 = vstv %s836_s23  ;;  %v3351_v32 = vld [vmem:[%s4398_s2 + $0xc4] sm:$0xf] }
 0x75d   : > { %v1889_v31 = vpop.permute.xlu1 %1888 }
 0x75e   : > { %v1914_v63 = vsel %vm1912_vm15, %v1908_v50, %v1889_v31  ;;  %v3353_v31 = vld [vmem:[%s4398_s2 + $0xcc] sm:$0xf0] }
 0x75f   : > { %v3194_v50 = vor.u32 %v3353_v31, %v3193_v35  ;;  %v3134_v35 = vor.u32 %v3335_v22, %v3131_v23  ;;  %v3138_v31 = vor.u32 %v3338_v30, %v3137_v29  ;;  %v3498_v29 = vld [vmem:[%s4999_s12] ss:$0 sm:$0xff] }
 0x761   : > { %2321 = vmatpush.bf16.msra.mxu1 %v3194_v50  ;;  %v3139_v50 = vld [vmem:[%s4398_s2 + $0x58] sm:$0xf0] }
 0x76d   : > { %v1903_v58 = vpop.permute.xlu1 %1902 }
 0x76e   : > { %v1919_v16 = vsel %vm1917_vm0, %v1914_v63, %v1903_v58  ;;  %v3195_v63 = vld [vmem:[%s4398_s2 + $0xd0] sm:$0xf0]  ;;  %v3201_v58 = vld [vmem:[%s4398_s2 + $0xc8] sm:$0xf] }
 0x76f   : > { %2000 = vmatmul.bf16.vlgmr.msrb.gmra.mxu0 %v1919_v16  ;;  %v3354_v16 = vld [vmem:[%s4398_s2 + $0xd4] sm:$0xf0]  ;;  %v3198_v13 = vor.u32 %v3351_v32, %v3195_v63  ;;  %v3336_v32 = vld [vmem:[%s4398_s2 + $0x4c] sm:$0xf] }
 0x770   : > { %v3142_v63 = vor.u32 %v3336_v32, %v3139_v50 }
 0x771   : > { %2340 = vmatpush.bf16.msra.mxu2 %v3198_v13  ;;  %v3331_v13 = vld [vmem:[%s4398_s2 + $0x24] sm:$0xf] }
 0x775   : > { %v1891_v34 = vpop.permute.xlu1 %1890 }
 0x776   : > { %v1916_v38 = vsel %vm1912_vm15, %v1911_v37, %v1891_v34  ;;  %v3202_v34 = vor.u32 %v3354_v16, %v3201_v58  ;;  %v3352_v37 = vld [vmem:[%s4398_s2 + $0xcc] sm:$0xf]  ;;  %v3113_v58 = vld [vmem:[%s4398_s2 + $0x20] sm:$0xf]  ;;  %v3333_v16 = vld [vmem:[%s4398_s2 + $0x2c] sm:$0xf0] }
 0x778   : > { %2359 = vmatpush.bf16.msra.mxu3 %v3202_v34  ;;  %v3114_v34 = vor.u32 %v3333_v16, %v3113_v58 }
 0x78e   : > { %v1905_v39 = vpop.permute.xlu0 %1904 }
 0x78f   : > { %v1922_v44 = vsel %vm1917_vm0, %v1916_v38, %v1905_v39  ;;  %v3203_v38 = vld [vmem:[%s4398_s2 + $0xd8] sm:$0xf0] }
 0x790   : > { %2005 = vmatmul.bf16.gmra.mxu0 %v1922_v44  ;;  %v3206_v39 = vor.u32 %v3352_v37, %v3203_v38  ;;  %v3177_v44 = vld [vmem:[%s4398_s2 + $0xa0] sm:$0xf]  ;;  %v3115_v37 = vld [vmem:[%s4398_s2 + $0x30] sm:$0xf0]  ;;  %v3121_v38 = vld [vmem:[%s4398_s2 + $0x28] sm:$0xf] }
 0x792   : > { %2378 = vmatpush.bf16.msra.mxu0 %v3206_v39  ;;  %v3334_v39 = vld [vmem:[%s4398_s2 + $0x34] sm:$0xf0] }
 0x7ec   : > { %v2001_v24 = vpop.f32.mrf.mxu0 }
 0x7ed   : > { %v2002_v27 = vadd.f32 %v3496_v20, %v2001_v24  ;;  %v3347_v24 = vld [vmem:[%s4398_s2 + $0xa4] sm:$0xf] }
 0x7ef   : > { %v2012_v36 = vmul.f32 %v2011_v25, %v2002_v27  ;;  %v3179_v27 = vld [vmem:[%s4398_s2 + $0xb0] sm:$0xf0] }
 0x7f1   : > { %v4758_v47 = vadd.f32 %v3598_v60, %v2012_v36  ;;  %v3185_v36 = vld [vmem:[%s4398_s2 + $0xa8] sm:$0xf]  ;;  %v3350_v60 = vld [vmem:[%s4398_s2 + $0xb4] sm:$0xf0] }
 0x7f3   : > { %2022 = vadd.xlane.f32.xlu1 %v4758_v47 }
 0x7f4   : > { %v2003_v19 = vpop.f32.mrf.mxu0 }
 0x7f5   : > { %v2004_v42 = vadd.f32 %v3496_v20, %v2003_v19  ;;  %v3182_v19 = vor.u32 %v3347_v24, %v3179_v27  ;;  %v3122_v24 = vor.u32 %v3334_v39, %v3121_v38  ;;  %v3123_v27 = vld [vmem:[%s4398_s2 + $0x38] sm:$0xf0] }
 0x7f7   : > { %v2013_v43 = vmul.f32 %v2011_v25, %v2004_v42  ;;  %v3186_v42 = vor.u32 %v3350_v60, %v3185_v36  ;;  %2341 = vmatpush.bf16.msra.mxu2 %v3182_v19  ;;  %v3097_v19 = vld [vmem:[%s4398_s2] sm:$0xf] }
 0x7f9   : > { %v4761_v49 = vadd.f32 %v3599_v45, %v2013_v43  ;;  %v3348_v43 = vld [vmem:[%s4398_s2 + $0xac] sm:$0xf]  ;;  %v3187_v45 = vld [vmem:[%s4398_s2 + $0xb8] sm:$0xf0]  ;;  %2360 = vmatpush.bf16.msra.mxu3 %v3186_v42  ;;  %v3329_v42 = vld [vmem:[%s4398_s2 + $0xc] sm:$0xf0] }
 0x7fb   : > { %2024 = vadd.xlane.f32.xlu0 %v4761_v49 }
 0x80d   : > { %v2006_v33 = vpop.f32.mrf.mxu0 }
 0x80e   : > { %v2007_v51 = vadd.f32 %v3496_v20, %v2006_v33  ;;  %v3190_v33 = vor.u32 %v3348_v43, %v3187_v45  ;;  %v3327_v43 = vld [vmem:[%s4398_s2 + $0x4] sm:$0xf] }
 0x810   : > { %v2014_v52 = vmul.f32 %v2011_v25, %v2007_v51  ;;  %v3161_v51 = vld [vmem:[%s4398_s2 + $0x80] sm:$0xf]  ;;  %2379 = vmatpush.bf16.msra.mxu0 %v3190_v33  ;;  %v3098_v33 = vor.u32 %v3329_v42, %v3097_v19 }
 0x812   : > { %v4764_v54 = vadd.f32 %v3600_v53, %v2014_v52  ;;  %v3345_v52 = vld [vmem:[%s4398_s2 + $0x8c] sm:$0xf0]  ;;  %v3343_v53 = vld [vmem:[%s4398_s2 + $0x84] sm:$0xf] }
 0x814   : > { %2026 = vadd.xlane.f32.xlu2 %v4764_v54 }
 0x815   : > { %v2008_v55 = vpop.f32.mrf.mxu0 }
 0x816   : > { %v2009_v57 = vadd.f32 %v3496_v20, %v2008_v55  ;;  %v3349_v20 = vld [vmem:[%s4398_s2 + $0xac] sm:$0xf0]  ;;  %v3162_v55 = vor.u32 %v3345_v52, %v3161_v51  ;;  %v3099_v51 = vld [vmem:[%s4398_s2 + $0x10] sm:$0xf0]  ;;  %v3105_v52 = vld [vmem:[%s4398_s2 + $0x8] sm:$0xf] }
 0x818   : > { %v2015_v59 = vmul.f32 %v2011_v25, %v2009_v57  ;;  %v3178_v25 = vor.u32 %v3349_v20, %v3177_v44  ;;  %v3163_v57 = vld [vmem:[%s4398_s2 + $0x90] sm:$0xf0]  ;;  %v3118_v20 = vor.u32 %v3331_v13, %v3115_v37 }
 0x81a   : > { %v4767_v62 = vadd.f32 %v3601_v56, %v2015_v59  ;;  %2322 = vmatpush.bf16.msra.mxu1 %v3178_v25  ;;  %v3169_v59 = vld [vmem:[%s4398_s2 + $0x88] sm:$0xf]  ;;  %v3346_v56 = vld [vmem:[%s4398_s2 + $0x94] sm:$0xf0]  ;;  %v3332_v25 = vld [vmem:[%s4398_s2 + $0x2c] sm:$0xf] }
 0x81b   : > { %v3126_v60 = vor.u32 %v3332_v25, %v3123_v27 }
 0x81c   : > { %2028 = vadd.xlane.f32.xlu1 %v4767_v62 }
 0x81e   : > { %2323 = vmatpush.bf16.msra.mxu1 %v3162_v55  ;;  %v3330_v55 = vld [vmem:[%s4398_s2 + $0x14] sm:$0xf0] }
 0x866   : > { %v2023_v0 = vpop.xlane.xlu1 %2022 }
 0x867   : > { %v2030_v2 = vmul.f32 %v2023_v0, %v4427_v14  ;;  %v3166_v0 = vor.u32 %v3343_v53, %v3163_v57  ;;  %v3102_v53 = vor.u32 %v3327_v43, %v3099_v51  ;;  %v3328_v57 = vld [vmem:[%s4398_s2 + $0xc] sm:$0xf] }
 0x869   : > { %v4772_v48 = vsub.f32 %v4758_v47, %v2030_v2  ;;  %v3170_v2 = vor.u32 %v3346_v56, %v3169_v59  ;;  %2342 = vmatpush.bf16.msra.mxu2 %v3166_v0  ;;  %v3107_v59 = vld [vmem:[%s4398_s2 + $0x18] sm:$0xf0]  ;;  %v3106_v56 = vor.u32 %v3330_v55, %v3105_v52  ;;  %v3373_v55 = vld [vmem:[%s4401_s18 + $0x70] sm:$0xff] }
 0x86a   : > { %v3110_v0 = vor.u32 %v3328_v57, %v3107_v59  ;;  %v3372_v57 = vld [vmem:[%s4401_s18 + $0x68] sm:$0xff]  ;;  %v3365_v59 = vld [vmem:[%s4401_s18 + $0x30] sm:$0xff] }
 0x86b   : > { %v2038_v4 = vmul.f32 %v4772_v48, %v4772_v48  ;;  %2361 = vmatpush.bf16.msra.mxu3 %v3170_v2 }
 0x86d   : > { %2042 = vadd.xlane.f32.xlu0 %v2038_v4  ;;  %v3344_v4 = vld [vmem:[%s4398_s2 + $0x8c] sm:$0xf] }
 0x86e   : > { %v2025_v40 = vpop.xlane.xlu0 %2024 }
 0x86f   : > { %v2031_v3 = vmul.f32 %v2025_v40, %v4427_v14  ;;  %v3171_v40 = vld [vmem:[%s4398_s2 + $0x98] sm:$0xf0] }
 0x871   : > { %v4778_v1 = vsub.f32 %v4761_v49, %v2031_v3  ;;  %v3174_v3 = vor.u32 %v3344_v4, %v3171_v40 }
 0x873   : > { %v2039_v6 = vmul.f32 %v4778_v1, %v4778_v1  ;;  %2380 = vmatpush.bf16.msra.mxu0 %v3174_v3 }
 0x875   : > { %2044 = vadd.xlane.f32.xlu1 %v2039_v6  ;;  %v3145_v6 = vld [vmem:[%s4398_s2 + $0x60] sm:$0xf] }
 0x877   : > { %2381 = vmatpush.bf16.msra.mxu0 %v3158_v21 }
 0x87b   : > { %2382 = vmatpush.bf16.msra.mxu0 %v3142_v63 }
 0x87f   : > { %2383 = vmatpush.bf16.msra.mxu0 %v3126_v60 }
 0x883   : > { %2384 = vmatpush.bf16.msra.mxu0 %v3110_v0  ;;  %v3364_v0 = vld [vmem:[%s4401_s18 + $0x28] sm:$0xff] }
 0x887   : > { %v2027_v61 = vpop.xlane.xlu2 %2026 }
 0x888   : > { %v2032_v7 = vmul.f32 %v2027_v61, %v4427_v14  ;;  %v3341_v61 = vld [vmem:[%s4398_s2 + $0x6c] sm:$0xf0] }
 0x88a   : > { %v4784_v8 = vsub.f32 %v4764_v54, %v2032_v7  ;;  %v3339_v7 = vld [vmem:[%s4398_s2 + $0x64] sm:$0xf] }
 0x88c   : > { %v2040_v10 = vmul.f32 %v4784_v8, %v4784_v8 }
 0x88e   : > { %2046 = vadd.xlane.f32.xlu0 %v2040_v10  ;;  %v3146_v10 = vor.u32 %v3341_v61, %v3145_v6 }
 0x88f   : > { %v2029_v11 = vpop.xlane.xlu1 %2028 }
 0x890   : > { %v2033_v12 = vmul.f32 %v2029_v11, %v4427_v14  ;;  %v3147_v11 = vld [vmem:[%s4398_s2 + $0x70] sm:$0xf0]  ;;  %2324 = vmatpush.bf16.msra.mxu1 %v3146_v10 }
 0x891   : > { %v3150_v5 = vor.u32 %v3339_v7, %v3147_v11 }
 0x892   : > { %v4790_v15 = vsub.f32 %v4767_v62, %v2033_v12  ;;  %v3153_v12 = vld [vmem:[%s4398_s2 + $0x68] sm:$0xf] }
 0x893   : > { %2343 = vmatpush.bf16.msra.mxu2 %v3150_v5 }
 0x894   : > { %v2041_v46 = vmul.f32 %v4790_v15, %v4790_v15  ;;  %2325 = vmatpush.bf16.msra.mxu1 %v3130_v28 }
 0x896   : > { %2048 = vadd.xlane.f32.xlu2 %v2041_v46  ;;  %v3342_v46 = vld [vmem:[%s4398_s2 + $0x74] sm:$0xf0] }
 0x897   : > { %v3154_v9 = vor.u32 %v3342_v46, %v3153_v12  ;;  %2344 = vmatpush.bf16.msra.mxu2 %v3134_v35 }
 0x898   : > { %2326 = vmatpush.bf16.msra.mxu1 %v3114_v34 }
 0x899   : > { %2362 = vmatpush.bf16.msra.mxu3 %v3154_v9 }
 0x89b   : > { %2345 = vmatpush.bf16.msra.mxu2 %v3118_v20 }
 0x89c   : > { %2327 = vmatpush.bf16.msra.mxu1 %v3098_v33 }
 0x89d   : > { %2363 = vmatpush.bf16.msra.mxu3 %v3138_v31 }
 0x89f   : > { %2346 = vmatpush.bf16.msra.mxu2 %v3102_v53 }
 0x8a1   : > { %2364 = vmatpush.bf16.msra.mxu3 %v3122_v24 }
 0x8a5   : > { %2365 = vmatpush.bf16.msra.mxu3 %v3106_v56  ;;  %v3371_v56 = vld [vmem:[%s4401_s18 + $0x60] sm:$0xff] }
 0x8e0   : > { %v2043_v44 = vpop.xlane.xlu0 %2042 }
 0x8e1   : > { %v2050_v36 = vmul.f32 %v2043_v44, %v4427_v14 }
 0x8e3   : > { %v2054_v45 = vadd.f32 1e-05, %v2050_v36 }
 0x8e5   : > { %3574 = vrsqrt.f32 %v2054_v45  ;;  %vm2064_vm2 = vweird.f32 %v2054_v45 }
 0x8e8   : > { %v2045_v2 = vpop.xlane.xlu1 %2044 }
 0x8e9   : > { %v2051_v4 = vmul.f32 %v2045_v2, %v4427_v14  ;;  %v3370_v2 = vld [vmem:[%s4401_s18 + $0x58] sm:$0xff] }
 0x8eb   : > { %v3575_v40 = vpop.eup %3574  ;;  %v2055_v3 = vadd.f32 1e-05, %v2051_v4  ;;  %v3363_v4 = vld [vmem:[%s4401_s18 + $0x20] sm:$0xff] }
 0x8ec   : > { %v2059_v6 = vmul.f32 %v3575_v40, %v2054_v45  ;;  %vm2065_vm1 = vweird.f32 %v3575_v40 }
 0x8ed   : > { %3576 = vrsqrt.f32 %v2055_v3  ;;  %vm2066_vm3 = vmor %vm2064_vm2, %vm2065_vm1  ;;  %vm2074_vm5 = vweird.f32 %v2055_v3 }
 0x8ee   : > { %v2060_v61 = vmul.f32 %v3575_v40, %v2059_v6  ;;  %v2150_v6 = vld [vmem:[%s4419_s16] sm:$0xf] }
 0x8f0   : > { %v2061_v7 = vmul.f32 0.5, %v2060_v61  ;;  %v3368_v61 = vld [vmem:[%s4401_s18 + $0x48] sm:$0xff] }
 0x8f2   : > { %v2062_v10 = vsub.f32 1.5, %v2061_v7  ;;  %v4883_v7 = vperm.slane %v2150_v6, 3 }
 0x8f3   : > { %v3577_v11 = vpop.eup %3576 }
 0x8f4   : > { %v2063_v12 = vmul.f32 %v3575_v40, %v2062_v10  ;;  %v2069_v46 = vmul.f32 %v3577_v11, %v2055_v3  ;;  %vm2075_vm4 = vweird.f32 %v3577_v11  ;;  %v3362_v3 = vld [vmem:[%s4401_s18 + $0x18] sm:$0xff]  ;;  %v3361_v10 = vld [vmem:[%s4401_s18 + $0x10] sm:$0xff] }
 0x8f5   : > { %vm2076_vm6 = vmor %vm2074_vm5, %vm2075_vm4 }
 0x8f6   : > { %v2070_v5 = vmul.f32 %v3577_v11, %v2069_v46  ;;  %v2067_v9 = vsel %vm2066_vm3, %v3575_v40, %v2063_v12  ;;  %v3369_v40 = vld [vmem:[%s4401_s18 + $0x50] sm:$0xff] }
 0x8f7   : > { %v2098_v21 = vmul.f32 %v2067_v9, %v4772_v48 }
 0x8f8   : > { %v2071_v17 = vmul.f32 0.5, %v2070_v5  ;;  %v3360_v5 = vld [vmem:[%s4401_s18 + $0x8] sm:$0xff] }
 0x8f9   : > { %v2105_v23 = vmul.f32 %v3497_v26, %v2098_v21  ;;  %v3359_v21 = vld [vmem:[%s4401_s18] sm:$0xff] }
 0x8fa   : > { %v2072_v18 = vsub.f32 1.5, %v2071_v17  ;;  %v4889_v17 = vperm.slane %v2150_v6, 2 }
 0x8fb   : > { %v2112_v32 = vadd.f32 %v3498_v29, %v2105_v23 }
 0x8fc   : > { %v2073_v41 = vmul.f32 %v3577_v11, %v2072_v18 }
 0x8fe   : > { %v2077_v22 = vsel %vm2076_vm6, %v3577_v11, %v2073_v41  ;;  %v3367_v11 = vld [vmem:[%s4401_s18 + $0x40] sm:$0xff] }
 0x8ff   : > { %v2099_v28 = vmul.f32 %v2077_v22, %v4778_v1 }
 0x901   : > { %v2047_v30 = vpop.xlane.xlu0 %2046  ;;  %v2106_v35 = vmul.f32 %v3497_v26, %v2099_v28 }
 0x902   : > { %v2052_v31 = vmul.f32 %v2047_v30, %v4427_v14 }
 0x903   : > { %v2113_v50 = vadd.f32 %v3498_v29, %v2106_v35 }
 0x904   : > { %v2056_v63 = vadd.f32 1e-05, %v2052_v31 }
 0x905   : > { %v2116_v58 = vpack.c.bf16 %v2113_v50, %v2112_v32 }
 0x906   : > { %3578 = vrsqrt.f32 %v2056_v63  ;;  %vm2084_vm8 = vweird.f32 %v2056_v63 }
 0x907   : > { %2328 = vmatmul.bf16.vlgmr.msra.gmra.mxu1 %v2116_v58  ;;  %2347 = vmatmul.bf16.vlgmr.msra.gmra.mxu2 %v2116_v58 }
 0x908   : > { %2366 = vmatmul.bf16.vlgmr.msra.gmra.mxu3 %v2116_v58  ;;  %2385 = vmatmul.bf16.vlgmr.msra.gmra.mxu0 %v2116_v58 }
 0x909   : > { %v2049_v48 = vpop.xlane.xlu2 %2048 }
 0x90a   : > { %v2053_v16 = vmul.f32 %v2049_v48, %v4427_v14 }
 0x90c   : > { %v3579_v1 = vpop.eup %3578  ;;  %v2057_v13 = vadd.f32 1e-05, %v2053_v16 }
 0x90d   : > { %v2079_v34 = vmul.f32 %v3579_v1, %v2056_v63  ;;  %vm2085_vm7 = vweird.f32 %v3579_v1 }
 0x90e   : > { %3580 = vrsqrt.f32 %v2057_v13  ;;  %vm2086_vm9 = vmor %vm2084_vm8, %vm2085_vm7  ;;  %vm2094_vm11 = vweird.f32 %v2057_v13 }
 0x90f   : > { %v2080_v37 = vmul.f32 %v3579_v1, %v2079_v34 }
 0x911   : > { %v2081_v38 = vmul.f32 0.5, %v2080_v37 }
 0x913   : > { %v2082_v39 = vsub.f32 1.5, %v2081_v38 }
 0x914   : > { %v3581_v44 = vpop.eup %3580 }
 0x915   : > { %v2083_v20 = vmul.f32 %v3579_v1, %v2082_v39  ;;  %v2089_v24 = vmul.f32 %v3581_v44, %v2057_v13  ;;  %vm2095_vm10 = vweird.f32 %v3581_v44 }
 0x916   : > { %vm2096_vm12 = vmor %vm2094_vm11, %vm2095_vm10 }
 0x917   : > { %v2090_v25 = vmul.f32 %v3581_v44, %v2089_v24  ;;  %v2087_v27 = vsel %vm2086_vm9, %v3579_v1, %v2083_v20 }
 0x918   : > { %v2100_v14 = vmul.f32 %v2087_v27, %v4784_v8  ;;  %v3374_v8 = vld [vmem:[%s4401_s18 + $0x78] sm:$0xff] }
 0x919   : > { %v2091_v36 = vmul.f32 0.5, %v2090_v25  ;;  %2631 = vmatpush.bf16.msrb.mxu2 %v3374_v8 }
 0x91a   : > { %v2107_v45 = vmul.f32 %v3497_v26, %v2100_v14 }
 0x91b   : > { %v2092_v60 = vsub.f32 1.5, %v2091_v36 }
 0x91c   : > { %v2114_v51 = vadd.f32 %v3498_v29, %v2107_v45 }
 0x91d   : > { %v2093_v19 = vmul.f32 %v3581_v44, %v2092_v60  ;;  %2632 = vmatpush.bf16.msrb.mxu2 %v3373_v55 }
 0x91f   : > { %v2097_v42 = vsel %vm2096_vm12, %v3581_v44, %v2093_v19  ;;  %v4895_v19 = vperm.slane %v2150_v6, 1 }
 0x920   : > { %v2101_v43 = vmul.f32 %v2097_v42, %v4790_v15  ;;  %v3366_v15 = vld [vmem:[%s4401_s18 + $0x38] sm:$0xff] }
 0x921   : > { %2612 = vmatpush.bf16.msrb.mxu1 %v3366_v15  ;;  %2633 = vmatpush.bf16.msrb.mxu2 %v3372_v57  ;;  %v4899_v57 = vperm.slane %v2150_v6, 0 }
 0x922   : > { %v2108_v33 = vmul.f32 %v3497_v26, %v2101_v43 }
 0x924   : > { %v2115_v52 = vadd.f32 %v3498_v29, %v2108_v33 }
 0x925   : > { %2613 = vmatpush.bf16.msrb.mxu1 %v3365_v59  ;;  %2634 = vmatpush.bf16.msrb.mxu2 %v3371_v56 }
 0x926   : > { %v2117_v53 = vpack.c.bf16 %v2115_v52, %v2114_v51 }
 0x928   : > { %2333 = vmatmul.bf16.gmra.mxu1 %v2117_v53  ;;  %2352 = vmatmul.bf16.gmra.mxu2 %v2117_v53 }
 0x929   : > { %2371 = vmatmul.bf16.gmra.mxu3 %v2117_v53  ;;  %2390 = vmatmul.bf16.gmra.mxu0 %v2117_v53 }
 0x92a   : > { %2614 = vmatpush.bf16.msrb.mxu1 %v3364_v0  ;;  %2635 = vmatpush.bf16.msrb.mxu2 %v3370_v2 }
 0x92e   : > { %2615 = vmatpush.bf16.msrb.mxu1 %v3363_v4  ;;  %2636 = vmatpush.bf16.msrb.mxu2 %v3369_v40 }
 0x932   : > { %2616 = vmatpush.bf16.msrb.mxu1 %v3362_v3  ;;  %2637 = vmatpush.bf16.msrb.mxu2 %v3368_v61 }
 0x936   : > { %2617 = vmatpush.bf16.msrb.mxu1 %v3361_v10  ;;  %2638 = vmatpush.bf16.msrb.mxu2 %v3367_v11 }
 0x93a   : > { %2618 = vmatpush.bf16.msrb.mxu1 %v3360_v5 }
 0x93e   : > { %2619 = vmatpush.bf16.msrb.mxu1 %v3359_v21 }
 0x984   : > { %v2329_v25 = vpop.f32.mrf.mxu1 }
 0x985   : > { %v2386_v12 = vpop.f32.mrf.mxu0 }
 0x986   : > { %v2387_v46 = vadd.f32 %v2386_v12, %v4883_v7 }
 0x988   : > { %v2405_v9 = vmul.f32 0.044715, %v2387_v46  ;;  %v2397_v42 = vmul.f32 0.5, %v2387_v46 }
 0x98a   : > { %v2413_v18 = vmul.f32 %v2405_v9, %v2387_v46  ;;  %v2348_v13 = vpop.f32.mrf.mxu2 }
 0x98b   : > { %v2367_v26 = vpop.f32.mrf.mxu3  ;;  %v2349_v53 = vadd.f32 %v2348_v13, %v4895_v19 }
 0x98c   : > { %v2421_v41 = vmul.f32 %v2413_v18, %v2387_v46  ;;  %v2368_v22 = vadd.f32 %v2367_v26, %v4889_v17  ;;  %v2331_v4 = vpop.f32.mrf.mxu1 }
 0x98d   : > { %v2388_v28 = vpop.f32.mrf.mxu0  ;;  %v2332_v5 = vadd.f32 %v2331_v4, %v4899_v57 }
 0x98e   : > { %v2429_v23 = vadd.f32 %v2421_v41, %v2387_v46  ;;  %v2404_v29 = vmul.f32 0.044715, %v2368_v22  ;;  %v2389_v30 = vadd.f32 %v2388_v28, %v4883_v7  ;;  %v2396_v56 = vmul.f32 0.5, %v2368_v22 }
 0x98f   : > { %v2330_v46 = vadd.f32 %v2329_v25, %v4899_v57 }
 0x990   : > { %v2437_v35 = vmul.f32 0.7978846, %v2429_v23  ;;  %v2412_v31 = vmul.f32 %v2404_v29, %v2368_v22  ;;  %v2407_v32 = vmul.f32 0.044715, %v2389_v30  ;;  %v2399_v51 = vmul.f32 0.5, %v2389_v30 }
 0x992   : > { %v2420_v50 = vmul.f32 %v2412_v31, %v2368_v22  ;;  %v2415_v63 = vmul.f32 %v2407_v32, %v2389_v30  ;;  %3582 = vtanh.f32 %v2437_v35  ;;  %v2350_v45 = vpop.f32.mrf.mxu2 }
 0x993   : > { %v2369_v58 = vpop.f32.mrf.mxu3  ;;  %v2351_v8 = vadd.f32 %v2350_v45, %v4895_v19 }
 0x994   : > { %v2428_v48 = vadd.f32 %v2420_v50, %v2368_v22  ;;  %v2423_v16 = vmul.f32 %v2415_v63, %v2389_v30  ;;  %v2370_v1 = vadd.f32 %v2369_v58, %v4889_v17 }
 0x996   : > { %v2436_v34 = vmul.f32 0.7978846, %v2428_v48  ;;  %v2431_v37 = vadd.f32 %v2423_v16, %v2389_v30  ;;  %v2406_v38 = vmul.f32 0.044715, %v2370_v1  ;;  %v2398_v40 = vmul.f32 0.5, %v2370_v1 }
 0x998   : > { %v2439_v39 = vmul.f32 0.7978846, %v2431_v37  ;;  %v2414_v44 = vmul.f32 %v2406_v38, %v2370_v1  ;;  %3584 = vtanh.f32 %v2436_v34  ;;  %v3583_v20 = vpop.eup %3582 }
 0x999   : > { %v2453_v36 = vadd.f32 1.0, %v3583_v20 }
 0x99a   : > { %3586 = vtanh.f32 %v2439_v39  ;;  %v2422_v24 = vmul.f32 %v2414_v44, %v2370_v1 }
 0x99b   : > { %v2461_v33 = vmul.f32 %v2453_v36, %v2397_v42 }
 0x99c   : > { %v2430_v27 = vadd.f32 %v2422_v24, %v2370_v1 }
 0x99d   : > { %v2469_v59 = vmul.f32 %v2461_v33, %v2349_v53 }
 0x99e   : > { %v2438_v60 = vmul.f32 0.7978846, %v2430_v27  ;;  %v3585_v14 = vpop.eup %3584 }
 0x99f   : > { %v2452_v15 = vadd.f32 1.0, %v3585_v14 }
 0x9a0   : > { %v3587_v43 = vpop.eup %3586  ;;  %3588 = vtanh.f32 %v2438_v60 }
 0x9a1   : > { %v2455_v52 = vadd.f32 1.0, %v3587_v43  ;;  %v2460_v12 = vmul.f32 %v2452_v15, %v2396_v56 }
 0x9a3   : > { %v2463_v55 = vmul.f32 %v2455_v52, %v2399_v51  ;;  %v2468_v21 = vmul.f32 %v2460_v12, %v2330_v46 }
 0x9a5   : > { %v2471_v0 = vmul.f32 %v2463_v55, %v2351_v8  ;;  %v2334_v27 = vpop.f32.mrf.mxu1 }
 0x9a6   : > { %v3589_v2 = vpop.eup %3588  ;;  %v2391_v3 = vpop.f32.mrf.mxu0 }
 0x9a7   : > { %v2477_v61 = vpack.c.bf16 %v2471_v0, %v2469_v59  ;;  %v2392_v10 = vadd.f32 %v2391_v3, %v4883_v7  ;;  %v2454_v11 = vadd.f32 1.0, %v3589_v2 }
 0x9a9   : > { %v2409_v9 = vmul.f32 0.044715, %v2392_v10  ;;  %2639 = vmatmul.bf16.vlgmr.msrb.gmra.mxu2 %v2477_v61  ;;  %v2462_v6 = vmul.f32 %v2454_v11, %v2398_v40  ;;  %v2401_v43 = vmul.f32 0.5, %v2392_v10  ;;  %v2335_v11 = vadd.f32 %v2334_v27, %v4899_v57 }
 0x9ab   : > { %v2417_v18 = vmul.f32 %v2409_v9, %v2392_v10  ;;  %v2470_v26 = vmul.f32 %v2462_v6, %v2332_v5  ;;  %v2353_v37 = vpop.f32.mrf.mxu2  ;;  %v3499_v6 = vld [vmem:[%s818_s17] ss:$0 sm:$0xff] }
 0x9ac   : > { %v2372_v41 = vpop.f32.mrf.mxu3  ;;  %v2354_v53 = vadd.f32 %v2353_v37, %v4895_v19 }
 0x9ad   : > { %v2425_v22 = vmul.f32 %v2417_v18, %v2392_v10  ;;  %v2373_v28 = vadd.f32 %v2372_v41, %v4889_v17  ;;  %v2476_v23 = vpack.c.bf16 %v2470_v26, %v2468_v21  ;;  %v2336_v4 = vpop.f32.mrf.mxu1  ;;  %v2650_v41 = vstv %s837_s19 }
 0x9ae   : > { %v2393_v29 = vpop.f32.mrf.mxu0  ;;  %v2337_v12 = vadd.f32 %v2336_v4, %v4899_v57 }
 0x9af   : > { %v2433_v30 = vadd.f32 %v2425_v22, %v2392_v10  ;;  %v2408_v35 = vmul.f32 0.044715, %v2373_v28  ;;  %v2394_v31 = vadd.f32 %v2393_v29, %v4883_v7  ;;  %2620 = vmatmul.bf16.vlgmr.msrb.gmra.mxu1 %v2476_v23  ;;  %v2400_v0 = vmul.f32 0.5, %v2373_v28 }
 0x9b1   : > { %v2441_v32 = vmul.f32 0.7978846, %v2433_v30  ;;  %v2416_v50 = vmul.f32 %v2408_v35, %v2373_v28  ;;  %v2411_v63 = vmul.f32 0.044715, %v2394_v31  ;;  %v2403_v51 = vmul.f32 0.5, %v2394_v31 }
 0x9b3   : > { %v2419_v58 = vmul.f32 %v2411_v63, %v2394_v31  ;;  %v2424_v48 = vmul.f32 %v2416_v50, %v2373_v28  ;;  %3590 = vtanh.f32 %v2441_v32  ;;  %v2355_v33 = vpop.f32.mrf.mxu2 }
 0x9b4   : > { %v2374_v16 = vpop.f32.mrf.mxu3  ;;  %v2356_v8 = vadd.f32 %v2355_v33, %v4895_v19 }
 0x9b5   : > { %v2427_v1 = vmul.f32 %v2419_v58, %v2394_v31  ;;  %v2375_v13 = vadd.f32 %v2374_v16, %v4889_v17  ;;  %v2432_v34 = vadd.f32 %v2424_v48, %v2373_v28 }
 0x9b7   : > { %v2435_v38 = vadd.f32 %v2427_v1, %v2394_v31  ;;  %v2410_v39 = vmul.f32 0.044715, %v2375_v13  ;;  %v2440_v44 = vmul.f32 0.7978846, %v2432_v34  ;;  %v2402_v3 = vmul.f32 0.5, %v2375_v13 }
 0x9b9   : > { %v2443_v20 = vmul.f32 0.7978846, %v2435_v38  ;;  %v2418_v24 = vmul.f32 %v2410_v39, %v2375_v13  ;;  %3592 = vtanh.f32 %v2440_v44  ;;  %v3591_v7 = vpop.eup %3590 }
 0x9ba   : > { %v2457_v60 = vadd.f32 1.0, %v3591_v7 }
 0x9bb   : > { %3594 = vtanh.f32 %v2443_v20  ;;  %v2426_v25 = vmul.f32 %v2418_v24, %v2375_v13 }
 0x9bc   : > { %v2465_v17 = vmul.f32 %v2457_v60, %v2401_v43 }
 0x9bd   : > { %v2434_v36 = vadd.f32 %v2426_v25, %v2375_v13 }
 0x9be   : > { %v2473_v59 = vmul.f32 %v2465_v17, %v2354_v53 }
 0x9bf   : > { %v2442_v14 = vmul.f32 0.7978846, %v2434_v36  ;;  %v3593_v42 = vpop.eup %3592 }
 0x9c0   : > { %v2456_v15 = vadd.f32 1.0, %v3593_v42 }
 0x9c1   : > { %v3595_v45 = vpop.eup %3594  ;;  %3596 = vtanh.f32 %v2442_v14 }
 0x9c2   : > { %v2459_v52 = vadd.f32 1.0, %v3595_v45  ;;  %v2464_v10 = vmul.f32 %v2456_v15, %v2400_v0 }
 0x9c4   : > { %v2467_v55 = vmul.f32 %v2459_v52, %v2403_v51  ;;  %v2472_v19 = vmul.f32 %v2464_v10, %v2335_v11 }
 0x9c6   : > { %v2475_v56 = vmul.f32 %v2467_v55, %v2356_v8 }
 0x9c7   : > { %v3597_v2 = vpop.eup %3596 }
 0x9c8   : > { %v2479_v40 = vpack.c.bf16 %v2475_v56, %v2473_v59  ;;  %v2458_v61 = vadd.f32 1.0, %v3597_v2 }
 0x9ca   : > { %2644 = vmatmul.bf16.gmra.mxu2 %v2479_v40  ;;  %v2466_v46 = vmul.f32 %v2458_v61, %v2402_v3 }
 0x9cc   : > { %v2474_v5 = vmul.f32 %v2466_v46, %v2337_v12 }
 0x9ce   : > { %v2478_v9 = vpack.c.bf16 %v2474_v5, %v2472_v19 }
 0x9d0   : > { %2625 = vmatmul.bf16.gmra.mxu1 %v2478_v9 }
 0xa2c   : > { %v2621_v18 = vpop.f32.mrf.mxu1  ;;  %v2640_v21 = vpop.f32.mrf.mxu2 }
 0xa2d   : > { %v2622_v26 = vadd.f32 %v3499_v6, %v2621_v18 }
 0xa2f   : > { %v2641_v22 = vadd.f32 %v2640_v21, %v2622_v26 }
 0xa31   : > { %v2651_v28 = vmul.f32 %v2650_v41, %v2641_v22 }
 0xa33   : > { %v2655_v57 = vadd.f32 %v2651_v28, %v4758_v47 }
 0xa34   : > { %v2623_v23 = vpop.f32.mrf.mxu1  ;;  %v2642_v30 = vpop.f32.mrf.mxu2 }
 0xa35   : > { %2659 = vst [vmem:[#allocation2 + $0x10] sm:$0xff] %v2655_v57  ;;  %v2624_v29 = vadd.f32 %v3499_v6, %v2623_v23 }
 0xa37   : > { %v2643_v35 = vadd.f32 %v2642_v30, %v2624_v29 }
 0xa39   : > { %v2652_v31 = vmul.f32 %v2650_v41, %v2643_v35 }
 0xa3b   : > { %v2656_v32 = vadd.f32 %v2652_v31, %v4761_v49 }
 0xa3d   : > { %2660 = vst [vmem:[#allocation2] sm:$0xff] %v2656_v32 }
 0xa4d   : > { %v2626_v50 = vpop.f32.mrf.mxu1  ;;  %v2645_v63 = vpop.f32.mrf.mxu2 }
 0xa4e   : > { %v2627_v58 = vadd.f32 %v3499_v6, %v2626_v50 }
 0xa50   : > { %v2646_v48 = vadd.f32 %v2645_v63, %v2627_v58 }
 0xa52   : > { %v2653_v16 = vmul.f32 %v2650_v41, %v2646_v48 }
 0xa54   : > { %v2657_v1 = vadd.f32 %v2653_v16, %v4764_v54 }
 0xa55   : > { %v2628_v13 = vpop.f32.mrf.mxu1  ;;  %v2647_v47 = vpop.f32.mrf.mxu2 }
 0xa56   : > { %2661 = vst [vmem:[#allocation2 + $0x18] sm:$0xff] %v2657_v1  ;;  %v2629_v34 = vadd.f32 %v3499_v6, %v2628_v13 }
 0xa58   : > { %v2648_v37 = vadd.f32 %v2647_v47, %v2629_v34 }
 0xa5a   : > { %v2654_v38 = vmul.f32 %v2650_v41, %v2648_v37  ;;  %2666 = sbr.rel (%p3287_p7) target bundleno = 2659 (0xa63), region = 120 }
 0xa5c   : > { %v2658_v39 = vadd.f32 %v2654_v38, %v4767_v62 }
 0xa5e   : > { %2662 = vst [vmem:[#allocation2 + $0x8] sm:$0xff] %v2658_v39 }
 0xa5f   : > { %2667 = vst [vmem:[#allocation23] sm:$0xff] %v2655_v57 }
 0xa60   : > { %2668 = vst [vmem:[#allocation23 + $0x8] sm:$0xff] %v2656_v32 }
 0xa61   : > { %2669 = vst [vmem:[#allocation23 + $0x10] sm:$0xff] %v2657_v1 }
 0xa62   : > { %2670 = vst [vmem:[#allocation23 + $0x18] sm:$0xff] %v2658_v39 }
 0xa63 PF: > { %p3442_p12 = scmp.eq.s32.totalorder %s4242_s13, 1  ;;  %s4031_s17 = smov [#allocation23]  }
 0xa64   : > { %s2676_s30 = sshll.u32 %s4031_s17, 4  ;;  %s5001_s22 = sld [smem:[#allocation44_spill]]  ;;  %s2677_s30 = int_to_ptr.vmem [resolvable:$true] %s2676_s30 }
 0xa65   : > { %s4032_s3 = smov 128   ;;  %s4033_s16 = smov 8  }
 0xa6a   : > { %s2678_s26 = sshll.u32 %s5001_s22, 4  ;;  %s2679_s26 = int_to_ptr.hbm [resolvable:$true] %s2678_s26 }
 0xa6b   : > { %3404 = dma.vmem_to_hbm [thread:$0]  (%p3442_p12), %s2677_s30, 512, %s2679_s26, [#allocation8], %s4032_s3, %s4032_s3, %s4033_s16  }
 0xa6c   : > { %3997 = dma.done.wait (%p3442_p12), [#allocation8], 512  }
 0xa6d   : > { %3999 = vsyncadd (%p3442_p12), [#allocation8], 4294966784 }
 0xa6e PF: > { %s5002_s27 = sld [smem:[#allocation33_spill]]  ;;  %s5005_s0 = smov %s4006_s1 }
 0xa6f   : > { %s5003_s29 = sld [smem:[#allocation32_spill]] }
 0xa70   : > { %s5004_s26 = sld [smem:[#allocation34_spill]] }
 0xa74   : > { %p52_p1 = scmp.ge.s32.totalorder %s5002_s27, 4  }
 0xa75   : > { %s5006_s1 = smov %s5003_s29 }
 0xa76   :  { %54 = sbr.rel (!%p52_p1) target bundleno = 29 (0x1d), region = 227 }
 0xa7b   :  { %2695 = vsyncpa [#allocation7], 1 }
 0xa7c   :  { %2697 = vsyncpa [#allocation7 + $0x1], 1 }
 0xa7d   :  { %2698 = vsyncpa [#allocation10], 1 }
 0xa7e   :  { %2700 = vsyncpa [#allocation10 + $0x1], 1 }
 0xa7f   :  { %2701 = vsyncpa [#allocation13], 1 }
 0xa80   :  { %2703 = vsyncpa [#allocation13 + $0x1], 1 }
 0xa81   :  { %2704 = vsyncpa [#allocation16], 1 }
 0xa82   :  { %2706 = vsyncpa [#allocation16 + $0x1], 1 }
 0xa83   :  { %2707 = vsyncpa [#allocation19], 1 }
 0xa84   :  { %2709 = vsyncpa [#allocation19 + $0x1], 1 }
 0xa85   :  { %2710 = vsyncpa [#allocation22], 1 }
 0xa86   :  { %2712 = vsyncpa [#allocation22 + $0x1], 1 }
 0xa87   :  { %2713 = vsyncpa [#allocation8], 1 }
 0xa88   :  { %2715 = vsyncpa [#allocation8 + $0x1], 1 }

</bundles_post_ra>
